<compile_context>
chip_gen: v7x
topology: tpu7x:2x2x1
jax: 0.10.0
libtpu: 0.0.40
codegen_flags: <defaults>
</compile_context>

<pallas_src>
import jax
import jax.numpy as jnp
from jax.experimental import pallas as pl
from jax.experimental.pallas import tpu as pltpu

D_IN = 1024
D_HID = 1024
D_OUT = 1
TB_CAP = 512  # batch-tile cap: fills the MXU, amortizes per-step overhead


def mlp_kernel(x_ref, w1_ref, b1_ref, w2_ref, b2_ref, w3_ref, b3_ref, o_ref):
    # x tile arrives in f32; cast to bf16 on the VPU (convert folded into kernel).
    x_bf = x_ref[...].astype(jnp.bfloat16)
    # Layer 1: Linear(1024, 1024) + ReLU. bf16 operands on the MXU, f32 accumulate.
    h1 = jnp.dot(x_bf, w1_ref[...], preferred_element_type=jnp.float32)
    h1 = jnp.maximum(h1 + b1_ref[...], 0.0)                      # f32 VPU
    # Layer 2: Linear(1024, 1024) + ReLU.
    h2 = jnp.dot(h1.astype(jnp.bfloat16), w2_ref[...],
                 preferred_element_type=jnp.float32)
    h2 = jnp.maximum(h2 + b2_ref[...], 0.0)                      # f32 VPU
    # Layer 3: Linear(1024, 1). N=1 would waste an MXU pass, so do it as a VPU
    # multiply + cross-lane (XLU) reduction against the (1, 1024) weight row.
    out = jnp.sum(h2 * w3_ref[...], axis=-1, keepdims=True)      # (tb, 1) f32
    o_ref[...] = (out + b3_ref[0, 0]).astype(o_ref.dtype)


def prepare_params(w1, b1, w2, b2, w3, b3):
    """One-time conversion of f32 params (already in (in, out) layout) into the
    kernel's storage formats.  Call ONCE and reuse across forward calls so no
    per-call convert traffic hits HBM."""
    return (
        w1.astype(jnp.bfloat16),                    # (1024, 1024) bf16
        b1.reshape(1, D_HID).astype(jnp.float32),   # (1, 1024)   f32
        w2.astype(jnp.bfloat16),                    # (1024, 1024) bf16
        b2.reshape(1, D_HID).astype(jnp.float32),   # (1, 1024)   f32
        w3.reshape(1, D_HID).astype(jnp.float32),   # layer-3 weight as lane row
        b3.reshape(1, 1).astype(jnp.float32),       # scalar -> SMEM
    )


@jax.jit
def simple_model_forward(x, w1b, b1f, w2b, b2f, w3_row, b3f):
    x = x.astype(jnp.float32)
    B = x.shape[0]
    # Single batch tile up to 512 rows; no minimum-grid-steps heuristic.
    tb = min(TB_CAP, ((B + 7) // 8) * 8)
    grid = (pl.cdiv(B, tb),)

    flops = 2 * B * D_IN * D_HID + 2 * B * D_HID * D_HID + 2 * B * D_HID
    bytes_accessed = (
        B * D_IN * 4                                  # x (f32, cast in-kernel)
        + w1b.size * 2 + w2b.size * 2                 # bf16 weights
        + (b1f.size + b2f.size + w3_row.size + b3f.size) * 4
        + B * D_OUT * 4                               # output
    )

    out = pl.pallas_call(
        mlp_kernel,
        out_shape=jax.ShapeDtypeStruct((B, D_OUT), jnp.float32),
        grid_spec=pltpu.PrefetchScalarGridSpec(
            num_scalar_prefetch=0,
            grid=grid,
            in_specs=[
                pl.BlockSpec((tb, D_IN), lambda i: (i, 0)),         # x tile (f32)
                pl.BlockSpec((D_IN, D_HID), lambda i: (0, 0)),      # W1 (bf16, resident)
                pl.BlockSpec((1, D_HID), lambda i: (0, 0)),         # b1 (f32)
                pl.BlockSpec((D_HID, D_HID), lambda i: (0, 0)),     # W2 (bf16, resident)
                pl.BlockSpec((1, D_HID), lambda i: (0, 0)),         # b2 (f32)
                pl.BlockSpec((1, D_HID), lambda i: (0, 0)),         # W3 row (f32)
                pl.BlockSpec(memory_space=pltpu.MemorySpace.SMEM),  # b3 scalar in SMEM
            ],
            out_specs=pl.BlockSpec((tb, D_OUT), lambda i: (i, 0)),
        ),
        compiler_params=pltpu.CompilerParams(
            dimension_semantics=("parallel",),
            vmem_limit_bytes=32 << 20,   # working set ~18 MiB at tb=512
        ),
        cost_estimate=pl.CostEstimate(
            flops=flops, transcendentals=0, bytes_accessed=bytes_accessed),
    )(x, w1b, b1f, w2b, b2f, w3_row, b3f)

    return out


def init_params(key):
    """Deterministic init mimicking nn.Linear's U(-1/sqrt(fan_in), 1/sqrt(fan_in)),
    with weights materialized as (in, out)."""
    k1, k2, k3, k4, k5, k6 = jax.random.split(key, 6)

    def lin(kw, kb, fan_in, fan_out):
        bound = 1.0 / jnp.sqrt(fan_in)
        w = jax.random.uniform(kw, (fan_in, fan_out), jnp.float32, -bound, bound)
        b = jax.random.uniform(kb, (1, fan_out), jnp.float32, -bound, bound)
        return w, b

    w1, b1 = lin(k1, k2, D_IN, D_HID)
    w2, b2 = lin(k3, k4, D_HID, D_HID)
    w3, b3 = lin(k5, k6, D_HID, D_OUT)
    return w1, b1, w2, b2, w3, b3


if __name__ == "__main__":
    key = jax.random.PRNGKey(0)
    kx, kp = jax.random.split(key)

    B = 16  # small batch -> single grid step, one weight fetch
    x = jax.random.normal(kx, (B, D_IN), jnp.float32)
    w1, b1, w2, b2, w3, b3 = init_params(kp)

    prepared = prepare_params(w1, b1, w2, b2, w3, b3)  # one-time conversion
    out = simple_model_forward(x, *prepared)
    jax.block_until_ready(out)

    # Mixed-precision JAX reference using the same bf16-operand / f32-accumulate
    # recipe as the kernel (the bf16 cast is a deliberate precision choice; the
    # pure-f32 PyTorch model differs from this by ~1e-2 relative).
    h1 = jnp.maximum(
        jnp.dot(x.astype(jnp.bfloat16), w1.astype(jnp.bfloat16),
                preferred_element_type=jnp.float32) + b1, 0.0)
    h2 = jnp.maximum(
        jnp.dot(h1.astype(jnp.bfloat16), w2.astype(jnp.bfloat16),
                preferred_element_type=jnp.float32) + b2, 0.0)
    ref = h2 @ w3 + b3

    assert out.shape == (B, 1)
    max_err = float(jnp.max(jnp.abs(out - ref)))
    assert jnp.allclose(out, ref, atol=5e-3, rtol=5e-3), f"max_err={max_err}"

    print("KERNEL_OK")
</pallas_src>

<mosaic_0001>
module attributes {stable_mosaic.version = 11 : i64} {
  func.func @mlp_kernel(%arg0: i32, %arg1: memref<16x1024xf32, #tpu.memory_space<vmem>>, %arg2: memref<1024x1024xbf16, #tpu.memory_space<vmem>>, %arg3: memref<1x1024xf32, #tpu.memory_space<vmem>>, %arg4: memref<1024x1024xbf16, #tpu.memory_space<vmem>>, %arg5: memref<1x1024xf32, #tpu.memory_space<vmem>>, %arg6: memref<1x1024xf32, #tpu.memory_space<vmem>>, %arg7: memref<1x1xf32, #tpu.memory_space<smem>>, %arg8: memref<16x1xf32, #tpu.memory_space<vmem>>) attributes {dimension_semantics = [#tpu.dimension_semantics<parallel>], iteration_bounds = array<i64: 1>, scalar_prefetch = 0 : i64, scratch_operands = 0 : i64, tpu.core_type = #tpu.core_type<tc>, window_params = [{transform_indices = @transform_0, window_bounds = array<i64: 16, 1024>}, {pipeline_mode = #tpu.pipeline_mode<synchronous>, transform_indices = @transform_1, window_bounds = array<i64: 1024, 1024>}, {pipeline_mode = #tpu.pipeline_mode<synchronous>, transform_indices = @transform_2, window_bounds = array<i64: 1, 1024>}, {pipeline_mode = #tpu.pipeline_mode<synchronous>, transform_indices = @transform_3, window_bounds = array<i64: 1024, 1024>}, {pipeline_mode = #tpu.pipeline_mode<synchronous>, transform_indices = @transform_4, window_bounds = array<i64: 1, 1024>}, {pipeline_mode = #tpu.pipeline_mode<synchronous>, transform_indices = @transform_5, window_bounds = array<i64: 1, 1024>}, {transform_indices = @transform_6, window_bounds = array<i64: 1, 1>}, {transform_indices = @transform_7, window_bounds = array<i64: 16, 1>}]} {
    %c0 = arith.constant 0 : index
    %c0_0 = arith.constant 0 : index
    %0 = vector.load %arg1[%c0, %c0_0] : memref<16x1024xf32, #tpu.memory_space<vmem>>, vector<16x1024xf32>
    %1 = arith.truncf %0 : vector<16x1024xf32> to vector<16x1024xbf16>
    %c0_1 = arith.constant 0 : index
    %c0_2 = arith.constant 0 : index
    %2 = vector.load %arg2[%c0_1, %c0_2] : memref<1024x1024xbf16, #tpu.memory_space<vmem>>, vector<1024x1024xbf16>
    %cst = arith.constant dense<0.000000e+00> : vector<16x1024xf32>
    %3 = tpu.matmul %1, %2, %cst {dimension_numbers = #tpu.dot_dimension_numbers<[1], [0], [0], [1], [0, 0, 1, 1], [], []>} : vector<16x1024xbf16>, vector<1024x1024xbf16>, vector<16x1024xf32> -> vector<16x1024xf32>
    %c0_3 = arith.constant 0 : index
    %c0_4 = arith.constant 0 : index
    %4 = vector.load %arg3[%c0_3, %c0_4] : memref<1x1024xf32, #tpu.memory_space<vmem>>, vector<1x1024xf32>
    %5 = vector.broadcast %4 : vector<1x1024xf32> to vector<16x1024xf32>
    %6 = arith.addf %3, %5 : vector<16x1024xf32>
    %cst_5 = arith.constant 0.000000e+00 : f32
    %7 = vector.broadcast %cst_5 : f32 to vector<16x1024xf32>
    %8 = arith.maximumf %6, %7 : vector<16x1024xf32>
    %9 = arith.truncf %8 : vector<16x1024xf32> to vector<16x1024xbf16>
    %c0_6 = arith.constant 0 : index
    %c0_7 = arith.constant 0 : index
    %10 = vector.load %arg4[%c0_6, %c0_7] : memref<1024x1024xbf16, #tpu.memory_space<vmem>>, vector<1024x1024xbf16>
    %cst_8 = arith.constant dense<0.000000e+00> : vector<16x1024xf32>
    %11 = tpu.matmul %9, %10, %cst_8 {dimension_numbers = #tpu.dot_dimension_numbers<[1], [0], [0], [1], [0, 0, 1, 1], [], []>} : vector<16x1024xbf16>, vector<1024x1024xbf16>, vector<16x1024xf32> -> vector<16x1024xf32>
    %c0_9 = arith.constant 0 : index
    %c0_10 = arith.constant 0 : index
    %12 = vector.load %arg5[%c0_9, %c0_10] : memref<1x1024xf32, #tpu.memory_space<vmem>>, vector<1x1024xf32>
    %13 = vector.broadcast %12 : vector<1x1024xf32> to vector<16x1024xf32>
    %14 = arith.addf %11, %13 : vector<16x1024xf32>
    %cst_11 = arith.constant 0.000000e+00 : f32
    %15 = vector.broadcast %cst_11 : f32 to vector<16x1024xf32>
    %16 = arith.maximumf %14, %15 : vector<16x1024xf32>
    %c0_12 = arith.constant 0 : index
    %c0_13 = arith.constant 0 : index
    %17 = vector.load %arg6[%c0_12, %c0_13] : memref<1x1024xf32, #tpu.memory_space<vmem>>, vector<1x1024xf32>
    %18 = vector.broadcast %17 : vector<1x1024xf32> to vector<16x1024xf32>
    %19 = arith.mulf %16, %18 : vector<16x1024xf32>
    %cst_14 = arith.constant dense<0.000000e+00> : vector<16xf32>
    %20 = vector.multi_reduction <add>, %19, %cst_14 [1] : vector<16x1024xf32> to vector<16xf32>
    %21 = vector.shape_cast %20 : vector<16xf32> to vector<16x1xf32>
    %c0_15 = arith.constant 0 : index
    %c0_16 = arith.constant 0 : index
    %22 = memref.load %arg7[%c0_15, %c0_16] : memref<1x1xf32, #tpu.memory_space<smem>>
    %23 = vector.broadcast %22 : f32 to vector<16x1xf32>
    %24 = arith.addf %21, %23 : vector<16x1xf32>
    %c0_17 = arith.constant 0 : index
    %c0_18 = arith.constant 0 : index
    %25 = vector.load %arg8[%c0_17, %c0_18] : memref<16x1xf32, #tpu.memory_space<vmem>>, vector<16x1xf32>
    tpu.vector_store %arg8[%c0_17, %c0_18], %24 {strides = array<i32>} : memref<16x1xf32, #tpu.memory_space<vmem>>, vector<16x1xf32>,
    return
  }
  func.func @transform_0(%arg0: i32) -> (i32, i32) {
    %c0_i32 = arith.constant 0 : i32
    %c0_i32_0 = arith.constant 0 : i32
    return %arg0, %c0_i32 : i32, i32
  }
  func.func @transform_1(%arg0: i32) -> (i32, i32) {
    %c0_i32 = arith.constant 0 : i32
    %c0_i32_0 = arith.constant 0 : i32
    %c0_i32_1 = arith.constant 0 : i32
    return %c0_i32, %c0_i32_0 : i32, i32
  }
  func.func @transform_2(%arg0: i32) -> (i32, i32) {
    %c0_i32 = arith.constant 0 : i32
    %c0_i32_0 = arith.constant 0 : i32
    %c0_i32_1 = arith.constant 0 : i32
    return %c0_i32, %c0_i32_0 : i32, i32
  }
  func.func @transform_3(%arg0: i32) -> (i32, i32) {
    %c0_i32 = arith.constant 0 : i32
    %c0_i32_0 = arith.constant 0 : i32
    %c0_i32_1 = arith.constant 0 : i32
    return %c0_i32, %c0_i32_0 : i32, i32
  }
  func.func @transform_4(%arg0: i32) -> (i32, i32) {
    %c0_i32 = arith.constant 0 : i32
    %c0_i32_0 = arith.constant 0 : i32
    %c0_i32_1 = arith.constant 0 : i32
    return %c0_i32, %c0_i32_0 : i32, i32
  }
  func.func @transform_5(%arg0: i32) -> (i32, i32) {
    %c0_i32 = arith.constant 0 : i32
    %c0_i32_0 = arith.constant 0 : i32
    %c0_i32_1 = arith.constant 0 : i32
    return %c0_i32, %c0_i32_0 : i32, i32
  }
  func.func @transform_6(%arg0: i32) -> (i32, i32) {
    %c0_i32 = arith.constant 0 : i32
    %c0_i32_0 = arith.constant 0 : i32
    %c0_i32_1 = arith.constant 0 : i32
    return %c0_i32, %c0_i32_0 : i32, i32
  }
  func.func @transform_7(%arg0: i32) -> (i32, i32) {
    %c0_i32 = arith.constant 0 : i32
    %c0_i32_0 = arith.constant 0 : i32
    return %arg0, %c0_i32 : i32, i32
  }
}

</mosaic_0001>

<bundles_post_ra>
// kernel: simple_model_forward.1
= control target key start
LH: loop header
LB: loop body
LE: loop exit
PB: predicated region body
PF: predicated region fallthrough
CT: control target
= control target key end

     0   :  { %13 = vsyncpa [#allocation4], 0  ;;  %s9500_s0 = inlined_call_operand.hbm [shape: f32[16,1024], index: 0, kind: input, shape index: {}]   ;;  %s9501_s1 = inlined_call_operand.hbm [shape: bf16[1024,1024], index: 1, kind: input, shape index: {}]   ;;  %s9502_s2 = inlined_call_operand.hbm [shape: f32[1,1024], index: 2, kind: input, shape index: {}]   ;;  %s9503_s3 = inlined_call_operand.hbm [shape: bf16[1024,1024], index: 3, kind: input, shape index: {}]   ;;  %s9504_s4 = inlined_call_operand.hbm [shape: f32[1,1024], index: 4, kind: input, shape index: {}]   ;;  %s9505_s5 = inlined_call_operand.hbm [shape: f32[1,1024], index: 5, kind: input, shape index: {}]   ;;  %s9506_s6 = inlined_call_operand.<no memory space> [shape: f32[1,1], index: 6, kind: input, shape index: {}]   ;;  %s9507_s7 = inlined_call_operand.vmem [shape: f32[16,1], index: 7, kind: output, shape index: {}]  }
   0x1   :  { %14 = vsyncpa [#allocation6], 0 }
   0x2   :  { %15 = vsyncpa [#allocation9], 0 }
   0x3   :  { %16 = vsyncpa [#allocation12], 0  ;;  %s9165_s24 = smov [#allocation5]   ;;  %s9025_s28 = scalar_lea.hbm %s9501_s1, 65536 }
   0x4   :  { %s34_s25 = sshll.u32 %s9165_s24, 4  ;;  %p9026_p0 = scmp.ne.s32.totalorder %s9501_s1, %s9025_s28  ;;  %s35_s25 = int_to_ptr.vmem [resolvable:$true] %s34_s25 }
   0x5   :  { %p9029_p1 = scmp.lt.u32.totalorder %s9025_s28, %s9501_s1 }
   0x7   :  { %p9031_p2 = pnand %p9029_p1, %p9026_p0 }
   0x9   :  { %9034 = shalt.err (!%p9031_p2)
}
   0xa   :  { %s9035_s10 = scalar_lea.vmem %s35_s25, 65536  ;;  %p9040_p4 = scmp.lt.s32.totalorder %s35_s25, %s35_s25 }
   0xb   :  { %p9036_p3 = scmp.ne.s32.totalorder %s35_s25, %s9035_s10  ;;  %p9041_p5 = scmp.lt.s32.totalorder %s9035_s10, %s9035_s10 }
   0xd   :  { %p9042_p6 = por %p9041_p5, %p9040_p4 }
   0xf   :  { %p9043_p7 = pnand %p9042_p6, %p9036_p3 }
  0x11   :  { %9046 = shalt.err (!%p9043_p7)
}
  0x12   :  { %s9166_s11 = smov 512   ;;  %s9167_s12 = smov 32  }
  0x13   :  { %40 = dma.hbm_to_vmem [thread:$0]  %s9501_s1, 65536, %s35_s25, [#allocation6], %s9166_s11, %s9166_s11, %s9167_s12  }
  0x14   :  { %s9168_s15 = smov [#allocation8]   ;;  %s9169_s17 = smov [#allocation3]  }
  0x15   :  { %s56_s16 = sshll.u32 %s9168_s15, 4  ;;  %s22_s18 = sshll.u32 %s9169_s17, 4  ;;  %s57_s16 = int_to_ptr.vmem [resolvable:$true] %s56_s16  ;;  %s23_s18 = int_to_ptr.vmem [resolvable:$true] %s22_s18 }
  0x16   :  { %s9047_s21 = scalar_lea.hbm %s9503_s3, 65536 }
  0x17   :  { %p9048_p8 = scmp.ne.s32.totalorder %s9503_s3, %s9047_s21  ;;  %p9051_p9 = scmp.lt.u32.totalorder %s9047_s21, %s9503_s3 }
  0x19   :  { %p9053_p10 = pnand %p9051_p9, %p9048_p8 }
  0x1b   :  { %9056 = shalt.err (!%p9053_p10)
}
  0x1c   :  { %s9057_s1 = scalar_lea.vmem %s57_s16, 65536  ;;  %p9062_p12 = scmp.lt.s32.totalorder %s57_s16, %s57_s16 }
  0x1d   :  { %p9058_p11 = scmp.ne.s32.totalorder %s57_s16, %s9057_s1  ;;  %p9063_p13 = scmp.lt.s32.totalorder %s9057_s1, %s9057_s1 }
  0x1f   :  { %p9064_p0 = por %p9063_p13, %p9062_p12 }
  0x21   :  { %p9065_p1 = pnand %p9064_p0, %p9058_p11 }
  0x23   :  { %9068 = shalt.err (!%p9065_p1)
}
  0x24   :  { %62 = dma.hbm_to_vmem [thread:$0]  %s9503_s3, 65536, %s57_s16, [#allocation9], %s9166_s11, %s9166_s11, %s9167_s12  }
  0x25   :  { %s9069_s30 = scalar_lea.hbm %s9500_s0, 2048 }
  0x26   :  { %p9070_p2 = scmp.ne.s32.totalorder %s9500_s0, %s9069_s30  ;;  %p9073_p3 = scmp.lt.u32.totalorder %s9069_s30, %s9500_s0 }
  0x28   :  { %p9075_p4 = pnand %p9073_p3, %p9070_p2 }
  0x2a   :  { %9078 = shalt.err (!%p9075_p4)
}
  0x2b   :  { %s9079_s14 = scalar_lea.vmem %s23_s18, 2048  ;;  %p9084_p6 = scmp.lt.s32.totalorder %s23_s18, %s23_s18 }
  0x2c   :  { %p9080_p5 = scmp.ne.s32.totalorder %s23_s18, %s9079_s14  ;;  %p9085_p7 = scmp.lt.s32.totalorder %s9079_s14, %s9079_s14 }
  0x2e   :  { %p9086_p8 = por %p9085_p7, %p9084_p6 }
  0x30   :  { %p9087_p9 = pnand %p9086_p8, %p9080_p5 }
  0x32   :  { %9090 = shalt.err (!%p9087_p9)
}
  0x33   :  { %s9170_s3 = smov 1024   ;;  %s9171_s11 = smov 64  }
  0x34   :  { %28 = dma.hbm_to_vmem [thread:$0]  %s9500_s0, 2048, %s23_s18, [#allocation4], %s9170_s3, %s9170_s3, %s9171_s11  }
  0x35   :  { %s9172_s16 = smov [#allocation7]   ;;  %s9173_s19 = smov [#allocation10]  }
  0x36   :  { %s47_s17 = sshll.u32 %s9172_s16, 4  ;;  %s69_s20 = sshll.u32 %s9173_s19, 4  ;;  %s48_s17 = int_to_ptr.vmem [resolvable:$true] %s47_s17  ;;  %s70_s20 = int_to_ptr.vmem [resolvable:$true] %s69_s20 }
  0x37   :  { %s9091_s23 = scalar_lea.hbm %s9502_s2, 128 }
  0x38   :  { %p9092_p10 = scmp.ne.s32.totalorder %s9502_s2, %s9091_s23  ;;  %p9095_p11 = scmp.lt.u32.totalorder %s9091_s23, %s9502_s2 }
  0x3a   :  { %p9097_p12 = pnand %p9095_p11, %p9092_p10 }
  0x3c   :  { %9100 = shalt.err (!%p9097_p12)
}
  0x3d   :  { %s9101_s0 = scalar_lea.vmem %s48_s17, 128  ;;  %p9106_p0 = scmp.lt.s32.totalorder %s48_s17, %s48_s17 }
  0x3e   :  { %p9102_p13 = scmp.ne.s32.totalorder %s48_s17, %s9101_s0  ;;  %p9107_p1 = scmp.lt.s32.totalorder %s9101_s0, %s9101_s0 }
  0x40   :  { %p9108_p2 = por %p9107_p1, %p9106_p0 }
  0x42   :  { %p9109_p3 = pnand %p9108_p2, %p9102_p13 }
  0x44   :  { %9112 = shalt.err (!%p9109_p3)
}
  0x45   :  { %50 = dma.hbm_to_vmem [thread:$0]  %s9502_s2, 128, %s48_s17, [#allocation6]  }
  0x46   :  { %s9113_s30 = scalar_lea.hbm %s9504_s4, 128 }
  0x47   :  { %p9114_p4 = scmp.ne.s32.totalorder %s9504_s4, %s9113_s30  ;;  %p9117_p5 = scmp.lt.u32.totalorder %s9113_s30, %s9504_s4 }
  0x49   :  { %p9119_p6 = pnand %p9117_p5, %p9114_p4 }
  0x4b   :  { %9122 = shalt.err (!%p9119_p6)
}
  0x4c   :  { %s9123_s14 = scalar_lea.vmem %s70_s20, 128  ;;  %p9128_p8 = scmp.lt.s32.totalorder %s70_s20, %s70_s20 }
  0x4d   :  { %p9124_p7 = scmp.ne.s32.totalorder %s70_s20, %s9123_s14  ;;  %p9129_p9 = scmp.lt.s32.totalorder %s9123_s14, %s9123_s14 }
  0x4f   :  { %p9130_p10 = por %p9129_p9, %p9128_p8 }
  0x51   :  { %p9131_p11 = pnand %p9130_p10, %p9124_p7 }
  0x53   :  { %9134 = shalt.err (!%p9131_p11)
}
  0x54   :  { %72 = dma.hbm_to_vmem [thread:$0]  %s9504_s4, 128, %s70_s20, [#allocation9]  }
  0x55   :  { %s9174_s11 = smov [#allocation11]   ;;  %s9135_s17 = scalar_lea.hbm %s9505_s5, 128 }
  0x56   :  { %s79_s12 = sshll.u32 %s9174_s11, 4  ;;  %p9136_p12 = scmp.ne.s32.totalorder %s9505_s5, %s9135_s17  ;;  %s80_s12 = int_to_ptr.vmem [resolvable:$true] %s79_s12 }
  0x57   :  { %p9139_p13 = scmp.lt.u32.totalorder %s9135_s17, %s9505_s5 }
  0x59   :  { %p9141_p0 = pnand %p9139_p13, %p9136_p12 }
  0x5b   :  { %9144 = shalt.err (!%p9141_p0)
}
  0x5c   :  { %s9145_s24 = scalar_lea.vmem %s80_s12, 128  ;;  %p9150_p2 = scmp.lt.s32.totalorder %s80_s12, %s80_s12 }
  0x5d   :  { %p9146_p1 = scmp.ne.s32.totalorder %s80_s12, %s9145_s24  ;;  %p9151_p3 = scmp.lt.s32.totalorder %s9145_s24, %s9145_s24 }
  0x5f   :  { %p9152_p4 = por %p9151_p3, %p9150_p2 }
  0x61   :  { %p9153_p5 = pnand %p9152_p4, %p9146_p1 }
  0x63   :  { %9156 = shalt.err (!%p9153_p5)
}
  0x64   :  { %82 = dma.hbm_to_vmem [thread:$0]  %s9505_s5, 128, %s80_s12, [#allocation12]  }
  0x65   :  { %9157 = dma.done.wait [#allocation4], 2048  }
  0x66   :  { %9158 = vsyncadd [#allocation4], 4294965248 }
  0x67   :  { %9159 = dma.done.wait [#allocation6], 65664  }
  0x68   :  { %9160 = vsyncadd [#allocation6], 4294901632 }
  0x69   :  { %9161 = dma.done.wait [#allocation9], 65664  }
  0x6a   :  { %9162 = vsyncadd [#allocation9], 4294901632 }
  0x6b   :  { %9163 = dma.done.wait [#allocation12], 128  }
  0x6c   :  { %9164 = vsyncadd [#allocation12], 4294967168  ;;  %v127_v0 = vld [vmem:[#allocation5] sm:$0xff]  ;;  %v128_v2 = vld [vmem:[#allocation5 + $0x8] sm:$0xff]  ;;  %vm7851_vm0 = vcmask 7168  }
  0x6d   :  { %v131_v1 = vld [vmem:[#allocation5 + $0x20] sm:$0xff]  ;;  %v132_v4 = vld [vmem:[#allocation5 + $0x28] sm:$0xff] }
  0x6e   :  { %v7863_v3 = vcombine.high %v127_v0, %v131_v1  ;;  %v7862_v5 = vcombine.low %v127_v0, %v131_v1  ;;  %v135_v6 = vld [vmem:[#allocation5 + $0x40] sm:$0xff]  ;;  %v7865_v8 = vcombine.high %v128_v2, %v132_v4  ;;  %v7864_v9 = vcombine.low %v128_v2, %v132_v4  ;;  %v136_v11 = vld [vmem:[#allocation5 + $0x48] sm:$0xff] }
  0x6f   :  { %v139_v7 = vld [vmem:[#allocation5 + $0x60] sm:$0xff]  ;;  %v140_v12 = vld [vmem:[#allocation5 + $0x68] sm:$0xff] }
  0x70   :  { %v7871_v10 = vcombine.high %v135_v6, %v139_v7  ;;  %v143_v13 = vld [vmem:[#allocation5 + $0x80] sm:$0xff]  ;;  %3241 = vmatprep.subr.bf16.mxu0 %v7863_v3  ;;  %v7873_v14 = vcombine.high %v136_v11, %v140_v12  ;;  %v144_v16 = vld [vmem:[#allocation5 + $0x88] sm:$0xff]  ;;  %3413 = vmatprep.subr.bf16.mxu1 %v7865_v8  ;;  %v7870_v18 = vcombine.low %v135_v6, %v139_v7 }
  0x71   :  { %v147_v15 = vld [vmem:[#allocation5 + $0xa0] sm:$0xff]  ;;  %v148_v17 = vld [vmem:[#allocation5 + $0xa8] sm:$0xff]  ;;  %3242 = vmatpush1.bf16.msra.mxu0 %v7862_v5  ;;  %3414 = vmatpush1.bf16.msra.mxu1 %v7864_v9  ;;  %v7872_v19 = vcombine.low %v136_v11, %v140_v12 }
  0x72   :  { %3243 = vmatprep.subr.bf16.mxu0 %v7871_v10  ;;  %v7879_v20 = vcombine.high %v143_v13, %v147_v15  ;;  %3415 = vmatprep.subr.bf16.mxu1 %v7873_v14  ;;  %v7881_v21 = vcombine.high %v144_v16, %v148_v17  ;;  %v151_v22 = vld [vmem:[#allocation5 + $0xc0] sm:$0xff]  ;;  %v152_v24 = vld [vmem:[#allocation5 + $0xc8] sm:$0xff]  ;;  %v7878_v26 = vcombine.low %v143_v13, %v147_v15 }
  0x73   :  { %v155_v23 = vld [vmem:[#allocation5 + $0xe0] sm:$0xff]  ;;  %v156_v25 = vld [vmem:[#allocation5 + $0xe8] sm:$0xff]  ;;  %v7880_v27 = vcombine.low %v144_v16, %v148_v17 }
  0x74   :  { %v7887_v28 = vcombine.high %v151_v22, %v155_v23  ;;  %v7889_v29 = vcombine.high %v152_v24, %v156_v25  ;;  %v159_v30 = vld [vmem:[#allocation5 + $0x100] sm:$0xff]  ;;  %v160_v32 = vld [vmem:[#allocation5 + $0x108] sm:$0xff]  ;;  %v7886_v34 = vcombine.low %v151_v22, %v155_v23  ;;  %v7888_v35 = vcombine.low %v152_v24, %v156_v25 }
  0x75   :  { %3244 = vmatpush1.bf16.msra.mxu0 %v7870_v18  ;;  %3416 = vmatpush1.bf16.msra.mxu1 %v7872_v19  ;;  %v163_v31 = vld [vmem:[#allocation5 + $0x120] sm:$0xff]  ;;  %v164_v33 = vld [vmem:[#allocation5 + $0x128] sm:$0xff] }
  0x76   :  { %3245 = vmatprep.subr.bf16.mxu0 %v7879_v20  ;;  %3417 = vmatprep.subr.bf16.mxu1 %v7881_v21  ;;  %v7895_v36 = vcombine.high %v159_v30, %v163_v31  ;;  %v7897_v37 = vcombine.high %v160_v32, %v164_v33  ;;  %v167_v38 = vld [vmem:[#allocation5 + $0x140] sm:$0xff]  ;;  %v168_v40 = vld [vmem:[#allocation5 + $0x148] sm:$0xff]  ;;  %v7894_v42 = vcombine.low %v159_v30, %v163_v31 }
  0x77   :  { %v171_v39 = vld [vmem:[#allocation5 + $0x160] sm:$0xff]  ;;  %v172_v41 = vld [vmem:[#allocation5 + $0x168] sm:$0xff]  ;;  %v7896_v43 = vcombine.low %v160_v32, %v164_v33 }
  0x78   :  { %v7903_v44 = vcombine.high %v167_v38, %v171_v39  ;;  %v7905_v45 = vcombine.high %v168_v40, %v172_v41  ;;  %v175_v46 = vld [vmem:[#allocation5 + $0x180] sm:$0xff]  ;;  %v176_v48 = vld [vmem:[#allocation5 + $0x188] sm:$0xff]  ;;  %v7902_v50 = vcombine.low %v167_v38, %v171_v39  ;;  %v7904_v51 = vcombine.low %v168_v40, %v172_v41 }
  0x79   :  { %3246 = vmatpush1.bf16.msra.mxu0 %v7878_v26  ;;  %3418 = vmatpush1.bf16.msra.mxu1 %v7880_v27  ;;  %v179_v47 = vld [vmem:[#allocation5 + $0x1a0] sm:$0xff]  ;;  %v180_v49 = vld [vmem:[#allocation5 + $0x1a8] sm:$0xff] }
  0x7a   :  { %3247 = vmatprep.subr.bf16.mxu0 %v7887_v28  ;;  %3419 = vmatprep.subr.bf16.mxu1 %v7889_v29  ;;  %v7911_v52 = vcombine.high %v175_v46, %v179_v47  ;;  %v104_v53 = vld [vmem:[#allocation3 + $0x8] sm:$0xff]  ;;  %v7913_v55 = vcombine.high %v176_v48, %v180_v49  ;;  %v183_v56 = vld [vmem:[#allocation5 + $0x1c0] sm:$0xff]  ;;  %v7910_v61 = vcombine.low %v175_v46, %v179_v47 }
  0x7b   :  { %v112_v54 = vld [vmem:[#allocation3 + $0x48] sm:$0xff]  ;;  %v187_v57 = vld [vmem:[#allocation5 + $0x1e0] sm:$0xff]  ;;  %v7912_v62 = vcombine.low %v176_v48, %v180_v49 }
  0x7c   :  { %v9287_v58 = vpack.c.bf16 %v112_v54, %v104_v53  ;;  %v184_v59 = vld [vmem:[#allocation5 + $0x1c8] sm:$0xff]  ;;  %v7919_v63 = vcombine.high %v183_v56, %v187_v57  ;;  %v191_v1 = vld [vmem:[#allocation5 + $0x200] sm:$0xff]  ;;  %v7918_v5 = vcombine.low %v183_v56, %v187_v57 }
  0x7d   :  { %3248 = vmatpush1.bf16.msra.mxu0 %v7886_v34  ;;  %3420 = vmatpush1.bf16.msra.mxu1 %v7888_v35  ;;  %v188_v60 = vld [vmem:[#allocation5 + $0x1e8] sm:$0xff]  ;;  %v195_v2 = vld [vmem:[#allocation5 + $0x220] sm:$0xff] }
  0x7e   :  { %3249 = vmatprep.subr.bf16.mxu0 %v7895_v36  ;;  %3421 = vmatprep.subr.bf16.mxu1 %v7897_v37  ;;  %v7921_v0 = vcombine.high %v184_v59, %v188_v60  ;;  %v192_v3 = vld [vmem:[#allocation5 + $0x208] sm:$0xff]  ;;  %v7920_v6 = vcombine.low %v184_v59, %v188_v60  ;;  %v7927_v7 = vcombine.high %v191_v1, %v195_v2  ;;  %v199_v9 = vld [vmem:[#allocation5 + $0x240] sm:$0xff] }
  0x7f   :  { %3273 = vmatprep.mubr.bf16.mxu0 %v9287_v58  ;;  %3445 = vmatprep.mubr.bf16.mxu1 %v9287_v58  ;;  %v196_v4 = vld [vmem:[#allocation5 + $0x228] sm:$0xff]  ;;  %v203_v10 = vld [vmem:[#allocation5 + $0x260] sm:$0xff]  ;;  %v7926_v13 = vcombine.low %v191_v1, %v195_v2 }
  0x80   :  { %v7929_v8 = vcombine.high %v192_v3, %v196_v4  ;;  %v200_v11 = vld [vmem:[#allocation5 + $0x248] sm:$0xff]  ;;  %v7928_v14 = vcombine.low %v192_v3, %v196_v4  ;;  %v7935_v15 = vcombine.high %v199_v9, %v203_v10  ;;  %v207_v17 = vld [vmem:[#allocation5 + $0x280] sm:$0xff]  ;;  %v7934_v21 = vcombine.low %v199_v9, %v203_v10 }
  0x81   :  { %3250 = vmatpush1.bf16.msra.mxu0 %v7894_v42  ;;  %3422 = vmatpush1.bf16.msra.mxu1 %v7896_v43  ;;  %v204_v12 = vld [vmem:[#allocation5 + $0x268] sm:$0xff]  ;;  %v211_v18 = vld [vmem:[#allocation5 + $0x2a0] sm:$0xff] }
  0x82   :  { %3251 = vmatprep.subr.bf16.mxu0 %v7903_v44  ;;  %3423 = vmatprep.subr.bf16.mxu1 %v7905_v45  ;;  %v7937_v16 = vcombine.high %v200_v11, %v204_v12  ;;  %v208_v19 = vld [vmem:[#allocation5 + $0x288] sm:$0xff]  ;;  %v7936_v22 = vcombine.low %v200_v11, %v204_v12  ;;  %v7943_v23 = vcombine.high %v207_v17, %v211_v18  ;;  %v215_v25 = vld [vmem:[#allocation5 + $0x2c0] sm:$0xff] }
  0x83   :  { %v212_v20 = vld [vmem:[#allocation5 + $0x2a8] sm:$0xff]  ;;  %v219_v26 = vld [vmem:[#allocation5 + $0x2e0] sm:$0xff]  ;;  %v7942_v29 = vcombine.low %v207_v17, %v211_v18  ;;  %v106_v17 = vld [vmem:[#allocation3 + $0x18] sm:$0xff] }
  0x84   :  { %v7945_v24 = vcombine.high %v208_v19, %v212_v20  ;;  %v216_v27 = vld [vmem:[#allocation5 + $0x2c8] sm:$0xff]  ;;  %v7944_v30 = vcombine.low %v208_v19, %v212_v20  ;;  %v7951_v31 = vcombine.high %v215_v25, %v219_v26  ;;  %v223_v33 = vld [vmem:[#allocation5 + $0x300] sm:$0xff]  ;;  %v7950_v37 = vcombine.low %v215_v25, %v219_v26  ;;  %v114_v18 = vld [vmem:[#allocation3 + $0x58] sm:$0xff] }
  0x85   :  { %3252 = vmatpush1.bf16.msra.mxu0 %v7902_v50  ;;  %3424 = vmatpush1.bf16.msra.mxu1 %v7904_v51  ;;  %v220_v28 = vld [vmem:[#allocation5 + $0x2e8] sm:$0xff]  ;;  %v227_v34 = vld [vmem:[#allocation5 + $0x320] sm:$0xff]  ;;  %v9293_v25 = vpack.c.bf16 %v114_v18, %v106_v17 }
  0x86   :  { %3253 = vmatprep.subr.bf16.mxu0 %v7911_v52  ;;  %3425 = vmatprep.subr.bf16.mxu1 %v7913_v55  ;;  %v7953_v32 = vcombine.high %v216_v27, %v220_v28  ;;  %v224_v35 = vld [vmem:[#allocation5 + $0x308] sm:$0xff]  ;;  %v7952_v38 = vcombine.low %v216_v27, %v220_v28  ;;  %v7959_v39 = vcombine.high %v223_v33, %v227_v34  ;;  %v231_v41 = vld [vmem:[#allocation5 + $0x340] sm:$0xff] }
  0x87   :  { %v228_v36 = vld [vmem:[#allocation5 + $0x328] sm:$0xff]  ;;  %v235_v42 = vld [vmem:[#allocation5 + $0x360] sm:$0xff]  ;;  %v7958_v45 = vcombine.low %v223_v33, %v227_v34 }
  0x88   :  { %v7961_v40 = vcombine.high %v224_v35, %v228_v36  ;;  %v232_v43 = vld [vmem:[#allocation5 + $0x348] sm:$0xff]  ;;  %v7960_v46 = vcombine.low %v224_v35, %v228_v36  ;;  %v7967_v47 = vcombine.high %v231_v41, %v235_v42  ;;  %v239_v49 = vld [vmem:[#allocation5 + $0x380] sm:$0xff]  ;;  %v7966_v53 = vcombine.low %v231_v41, %v235_v42 }
  0x89   :  { %3254 = vmatpush1.bf16.msra.mxu0 %v7910_v61  ;;  %3426 = vmatpush1.bf16.msra.mxu1 %v7912_v62  ;;  %v236_v44 = vld [vmem:[#allocation5 + $0x368] sm:$0xff]  ;;  %v243_v50 = vld [vmem:[#allocation5 + $0x3a0] sm:$0xff] }
  0x8a   :  { %3255 = vmatprep.subr.bf16.mxu0 %v7919_v63  ;;  %3427 = vmatprep.subr.bf16.mxu1 %v7921_v0  ;;  %v7969_v48 = vcombine.high %v232_v43, %v236_v44  ;;  %v240_v51 = vld [vmem:[#allocation5 + $0x388] sm:$0xff]  ;;  %v7968_v54 = vcombine.low %v232_v43, %v236_v44  ;;  %v7975_v55 = vcombine.high %v239_v49, %v243_v50  ;;  %v247_v57 = vld [vmem:[#allocation5 + $0x3c0] sm:$0xff] }
  0x8b   :  { %v244_v52 = vld [vmem:[#allocation5 + $0x3a8] sm:$0xff]  ;;  %v251_v59 = vld [vmem:[#allocation5 + $0x3e0] sm:$0xff]  ;;  %v7974_v62 = vcombine.low %v239_v49, %v243_v50 }
  0x8c   :  { %v7977_v56 = vcombine.high %v240_v51, %v244_v52  ;;  %v248_v60 = vld [vmem:[#allocation5 + $0x3c8] sm:$0xff]  ;;  %v7976_v63 = vcombine.low %v240_v51, %v244_v52  ;;  %v7983_v0 = vcombine.high %v247_v57, %v251_v59  ;;  %v255_v2 = vld [vmem:[#allocation5 + $0x400] sm:$0xff] }
  0x8d   :  { %3256 = vmatpush1.bf16.msra.mxu0 %v7918_v5  ;;  %3428 = vmatpush1.bf16.msra.mxu1 %v7920_v6  ;;  %v252_v61 = vld [vmem:[#allocation5 + $0x3e8] sm:$0xff]  ;;  %v259_v3 = vld [vmem:[#allocation5 + $0x420] sm:$0xff]  ;;  %v7982_v6 = vcombine.low %v247_v57, %v251_v59 }
  0x8e   :  { %3257 = vmatprep.subr.bf16.mxu0 %v7927_v7  ;;  %3429 = vmatprep.subr.bf16.mxu1 %v7929_v8  ;;  %v7985_v1 = vcombine.high %v248_v60, %v252_v61  ;;  %v256_v4 = vld [vmem:[#allocation5 + $0x408] sm:$0xff]  ;;  %v103_v7 = vld [vmem:[#allocation3] sm:$0xff]  ;;  %v7984_v9 = vcombine.low %v248_v60, %v252_v61  ;;  %v7991_v10 = vcombine.high %v255_v2, %v259_v3 }
  0x8f   :  { %v260_v5 = vld [vmem:[#allocation5 + $0x428] sm:$0xff]  ;;  %v111_v8 = vld [vmem:[#allocation3 + $0x40] sm:$0xff]  ;;  %v7990_v19 = vcombine.low %v255_v2, %v259_v3 }
  0x90   :  { %v7993_v11 = vcombine.high %v256_v4, %v260_v5  ;;  %v263_v12 = vld [vmem:[#allocation5 + $0x440] sm:$0xff]  ;;  %v7992_v20 = vcombine.low %v256_v4, %v260_v5  ;;  %v272_v26 = vld [vmem:[#allocation5 + $0x488] sm:$0xff] }
  0x91   :  { %3258 = vmatpush1.bf16.msra.mxu0 %v7926_v13  ;;  %3430 = vmatpush1.bf16.msra.mxu1 %v7928_v14  ;;  %v267_v13 = vld [vmem:[#allocation5 + $0x460] sm:$0xff]  ;;  %v264_v14 = vld [vmem:[#allocation5 + $0x448] sm:$0xff] }
  0x92   :  { %3259 = vmatprep.subr.bf16.mxu0 %v7935_v15  ;;  %3431 = vmatprep.subr.bf16.mxu1 %v7937_v16  ;;  %v9291_v15 = vpack.c.bf16 %v111_v8, %v103_v7  ;;  %v268_v16 = vld [vmem:[#allocation5 + $0x468] sm:$0xff]  ;;  %v7998_v28 = vcombine.low %v263_v12, %v267_v13  ;;  %v283_v33 = vld [vmem:[#allocation5 + $0x4e0] sm:$0xff] }
  0x93   :  { %v276_v27 = vld [vmem:[#allocation5 + $0x4a8] sm:$0xff]  ;;  %v291_v41 = vld [vmem:[#allocation5 + $0x520] sm:$0xff] }
  0x94   :  { %v280_v34 = vld [vmem:[#allocation5 + $0x4c8] sm:$0xff]  ;;  %v299_v49 = vld [vmem:[#allocation5 + $0x560] sm:$0xff] }
  0x95   :  { %3260 = vmatpush1.bf16.msra.mxu0 %v7934_v21  ;;  %3432 = vmatpush1.bf16.msra.mxu1 %v7936_v22  ;;  %v7999_v21 = vcombine.high %v263_v12, %v267_v13  ;;  %v8001_v22 = vcombine.high %v264_v14, %v268_v16  ;;  %v284_v35 = vld [vmem:[#allocation5 + $0x4e8] sm:$0xff]  ;;  %v307_v57 = vld [vmem:[#allocation5 + $0x5a0] sm:$0xff] }
  0x96   :  { %3261 = vmatprep.subr.bf16.mxu0 %v7943_v23  ;;  %3433 = vmatprep.subr.bf16.mxu1 %v7945_v24  ;;  %v271_v23 = vld [vmem:[#allocation5 + $0x480] sm:$0xff]  ;;  %v288_v42 = vld [vmem:[#allocation5 + $0x508] sm:$0xff] }
  0x97   :  { %v275_v24 = vld [vmem:[#allocation5 + $0x4a0] sm:$0xff]  ;;  %v292_v43 = vld [vmem:[#allocation5 + $0x528] sm:$0xff] }
  0x98   :  { %v8006_v36 = vcombine.low %v271_v23, %v275_v24  ;;  %v296_v50 = vld [vmem:[#allocation5 + $0x548] sm:$0xff]  ;;  %v315_v2 = vld [vmem:[#allocation5 + $0x5e0] sm:$0xff] }
  0x99   :  { %3262 = vmatpush1.bf16.msra.mxu0 %v7942_v29  ;;  %3434 = vmatpush1.bf16.msra.mxu1 %v7944_v30  ;;  %v8000_v29 = vcombine.low %v264_v14, %v268_v16  ;;  %v8007_v30 = vcombine.high %v271_v23, %v275_v24  ;;  %v300_v51 = vld [vmem:[#allocation5 + $0x568] sm:$0xff]  ;;  %v327_v18 = vld [vmem:[#allocation5 + $0x640] sm:$0xff] }
  0x9a   :  { %3263 = vmatprep.subr.bf16.mxu0 %v7951_v31  ;;  %3435 = vmatprep.subr.bf16.mxu1 %v7953_v32  ;;  %v8009_v31 = vcombine.high %v272_v26, %v276_v27  ;;  %v279_v32 = vld [vmem:[#allocation5 + $0x4c0] sm:$0xff]  ;;  %v304_v59 = vld [vmem:[#allocation5 + $0x588] sm:$0xff] }
  0x9b   :  { %v8014_v44 = vcombine.low %v279_v32, %v283_v33  ;;  %v308_v60 = vld [vmem:[#allocation5 + $0x5a8] sm:$0xff] }
  0x9c   :  { %v312_v3 = vld [vmem:[#allocation5 + $0x5c8] sm:$0xff] }
  0x9d   :  { %3264 = vmatpush1.bf16.msra.mxu0 %v7950_v37  ;;  %3436 = vmatpush1.bf16.msra.mxu1 %v7952_v38  ;;  %v8008_v37 = vcombine.low %v272_v26, %v276_v27  ;;  %v8015_v38 = vcombine.high %v279_v32, %v283_v33  ;;  %v316_v4 = vld [vmem:[#allocation5 + $0x5e8] sm:$0xff]  ;;  %v335_v27 = vld [vmem:[#allocation5 + $0x680] sm:$0xff] }
  0x9e   :  { %3265 = vmatprep.subr.bf16.mxu0 %v7959_v39  ;;  %3437 = vmatprep.subr.bf16.mxu1 %v7961_v40  ;;  %v8017_v39 = vcombine.high %v280_v34, %v284_v35  ;;  %v287_v40 = vld [vmem:[#allocation5 + $0x500] sm:$0xff]  ;;  %v8049_v8 = vcombine.high %v312_v3, %v316_v4  ;;  %v324_v12 = vld [vmem:[#allocation5 + $0x628] sm:$0xff]  ;;  %v8048_v14 = vcombine.low %v312_v3, %v316_v4 }
  0x9f   :  { %v8022_v52 = vcombine.low %v287_v40, %v291_v41  ;;  %v375_v4 = vld [vmem:[#allocation5 + $0x7c0] sm:$0xff] }
  0xa1   :  { %3266 = vmatpush1.bf16.msra.mxu0 %v7958_v45  ;;  %3438 = vmatpush1.bf16.msra.mxu1 %v7960_v46  ;;  %v8016_v45 = vcombine.low %v280_v34, %v284_v35  ;;  %v8023_v46 = vcombine.high %v287_v40, %v291_v41  ;;  %v343_v35 = vld [vmem:[#allocation5 + $0x6c0] sm:$0xff] }
  0xa2   :  { %3267 = vmatprep.subr.bf16.mxu0 %v7967_v47  ;;  %3439 = vmatprep.subr.bf16.mxu1 %v7969_v48  ;;  %v8025_v47 = vcombine.high %v288_v42, %v292_v43  ;;  %v295_v48 = vld [vmem:[#allocation5 + $0x540] sm:$0xff] }
  0xa3   :  { %v8030_v61 = vcombine.low %v295_v48, %v299_v49 }
  0xa5   :  { %3268 = vmatpush1.bf16.msra.mxu0 %v7966_v53  ;;  %3440 = vmatpush1.bf16.msra.mxu1 %v7968_v54  ;;  %v8024_v53 = vcombine.low %v288_v42, %v292_v43  ;;  %v8031_v54 = vcombine.high %v295_v48, %v299_v49  ;;  %v351_v43 = vld [vmem:[#allocation5 + $0x700] sm:$0xff] }
  0xa6   :  { %3269 = vmatprep.subr.bf16.mxu0 %v7975_v55  ;;  %3441 = vmatprep.subr.bf16.mxu1 %v7977_v56  ;;  %v8033_v55 = vcombine.high %v296_v50, %v300_v51  ;;  %v303_v56 = vld [vmem:[#allocation5 + $0x580] sm:$0xff] }
  0xa7   :  { %v8038_v5 = vcombine.low %v303_v56, %v307_v57 }
  0xa9   :  { %3270 = vmatpush1.bf16.msra.mxu0 %v7974_v62  ;;  %3442 = vmatpush1.bf16.msra.mxu1 %v7976_v63  ;;  %v8032_v62 = vcombine.low %v296_v50, %v300_v51  ;;  %v8039_v63 = vcombine.high %v303_v56, %v307_v57  ;;  %v359_v51 = vld [vmem:[#allocation5 + $0x740] sm:$0xff] }
  0xaa   :  { %3271 = vmatprep.subr.bf16.mxu0 %v7983_v0  ;;  %3443 = vmatprep.subr.bf16.mxu1 %v7985_v1  ;;  %v8041_v0 = vcombine.high %v304_v59, %v308_v60  ;;  %v311_v1 = vld [vmem:[#allocation5 + $0x5c0] sm:$0xff] }
  0xab   :  { %v8047_v7 = vcombine.high %v311_v1, %v315_v2  ;;  %v8046_v13 = vcombine.low %v311_v1, %v315_v2 }
  0xad   :  { %3272 = vmatpush1.bf16.msra.mxu0 %v7982_v6  ;;  %3444 = vmatpush1.bf16.msra.mxu1 %v7984_v9  ;;  %v8040_v6 = vcombine.low %v304_v59, %v308_v60  ;;  %v319_v9 = vld [vmem:[#allocation5 + $0x600] sm:$0xff] }
  0xae   :  { %3284 = vmatprep.subr.bf16.mxu0 %v7991_v10  ;;  %3456 = vmatprep.subr.bf16.mxu1 %v7993_v11  ;;  %v323_v10 = vld [vmem:[#allocation5 + $0x620] sm:$0xff]  ;;  %v320_v11 = vld [vmem:[#allocation5 + $0x608] sm:$0xff] }
  0xaf   :  { %v8055_v16 = vcombine.high %v319_v9, %v323_v10  ;;  %v8057_v17 = vcombine.high %v320_v11, %v324_v12  ;;  %v8056_v23 = vcombine.low %v320_v11, %v324_v12  ;;  %v367_v60 = vld [vmem:[#allocation5 + $0x780] sm:$0xff] }
  0xb0   :  { %3274 = vmatmul.mubr.bf16.vlgmr.msra.gmra.mrb[0].mxu0 %v9291_v15  ;;  %3446 = vmatmul.mubr.bf16.vlgmr.msra.gmra.mrb[0].mxu1 %v9291_v15  ;;  %v383_v12 = vld [vmem:[#allocation5 + $0x800] sm:$0xff] }
  0xb1   :  { %3285 = vmatpush1.bf16.msra.mxu0 %v7990_v19  ;;  %3457 = vmatpush1.bf16.msra.mxu1 %v7992_v20  ;;  %v331_v19 = vld [vmem:[#allocation5 + $0x660] sm:$0xff]  ;;  %v328_v20 = vld [vmem:[#allocation5 + $0x648] sm:$0xff] }
  0xb2   :  { %3286 = vmatprep.subr.bf16.mxu0 %v7999_v21  ;;  %3458 = vmatprep.subr.bf16.mxu1 %v8001_v22  ;;  %v332_v21 = vld [vmem:[#allocation5 + $0x668] sm:$0xff]  ;;  %v8054_v22 = vcombine.low %v319_v9, %v323_v10  ;;  %v8063_v24 = vcombine.high %v327_v18, %v331_v19 }
  0xb3   :  { %3316 = vmatprep.mubr.bf16.mxu0 %v9293_v25  ;;  %3488 = vmatprep.mubr.bf16.mxu1 %v9293_v25  ;;  %v8065_v26 = vcombine.high %v328_v20, %v332_v21  ;;  %v8064_v32 = vcombine.low %v328_v20, %v332_v21 }
  0xb5   :  { %3287 = vmatpush1.bf16.msra.mxu0 %v7998_v28  ;;  %3459 = vmatpush1.bf16.msra.mxu1 %v8000_v29  ;;  %v339_v28 = vld [vmem:[#allocation5 + $0x6a0] sm:$0xff]  ;;  %v336_v29 = vld [vmem:[#allocation5 + $0x688] sm:$0xff] }
  0xb6   :  { %3288 = vmatprep.subr.bf16.mxu0 %v8007_v30  ;;  %3460 = vmatprep.subr.bf16.mxu1 %v8009_v31  ;;  %v340_v30 = vld [vmem:[#allocation5 + $0x6a8] sm:$0xff]  ;;  %v8062_v31 = vcombine.low %v327_v18, %v331_v19  ;;  %v8071_v33 = vcombine.high %v335_v27, %v339_v28  ;;  %v105_v18 = vld [vmem:[#allocation3 + $0x10] sm:$0xff] }
  0xb7   :  { %v8073_v34 = vcombine.high %v336_v29, %v340_v30  ;;  %v8072_v40 = vcombine.low %v336_v29, %v340_v30  ;;  %v113_v19 = vld [vmem:[#allocation3 + $0x50] sm:$0xff]  ;;  %v108_v29 = vld [vmem:[#allocation3 + $0x28] sm:$0xff] }
  0xb8   :  { %v116_v30 = vld [vmem:[#allocation3 + $0x68] sm:$0xff] }
  0xb9   :  { %3289 = vmatpush1.bf16.msra.mxu0 %v8006_v36  ;;  %3461 = vmatpush1.bf16.msra.mxu1 %v8008_v37  ;;  %v347_v36 = vld [vmem:[#allocation5 + $0x6e0] sm:$0xff]  ;;  %v344_v37 = vld [vmem:[#allocation5 + $0x6c8] sm:$0xff] }
  0xba   :  { %3290 = vmatprep.subr.bf16.mxu0 %v8015_v38  ;;  %3462 = vmatprep.subr.bf16.mxu1 %v8017_v39  ;;  %v348_v38 = vld [vmem:[#allocation5 + $0x6e8] sm:$0xff]  ;;  %v8070_v39 = vcombine.low %v335_v27, %v339_v28  ;;  %v8079_v41 = vcombine.high %v343_v35, %v347_v36  ;;  %v9299_v27 = vpack.c.bf16 %v113_v19, %v105_v18 }
  0xbb   :  { %v8081_v42 = vcombine.high %v344_v37, %v348_v38  ;;  %v8080_v48 = vcombine.low %v344_v37, %v348_v38  ;;  %v396_v28 = vld [vmem:[#allocation5 + $0x868] sm:$0xff]  ;;  %v9301_v37 = vpack.c.bf16 %v116_v30, %v108_v29 }
  0xbc   :  { %v400_v38 = vld [vmem:[#allocation5 + $0x888] sm:$0xff] }
  0xbd   :  { %3291 = vmatpush1.bf16.msra.mxu0 %v8014_v44  ;;  %3463 = vmatpush1.bf16.msra.mxu1 %v8016_v45  ;;  %v355_v44 = vld [vmem:[#allocation5 + $0x720] sm:$0xff]  ;;  %v352_v45 = vld [vmem:[#allocation5 + $0x708] sm:$0xff] }
  0xbe   :  { %3292 = vmatprep.subr.bf16.mxu0 %v8023_v46  ;;  %3464 = vmatprep.subr.bf16.mxu1 %v8025_v47  ;;  %v356_v46 = vld [vmem:[#allocation5 + $0x728] sm:$0xff]  ;;  %v8078_v47 = vcombine.low %v343_v35, %v347_v36  ;;  %v8087_v49 = vcombine.high %v351_v43, %v355_v44  ;;  %v399_v35 = vld [vmem:[#allocation5 + $0x880] sm:$0xff] }
  0xbf   :  { %v8089_v50 = vcombine.high %v352_v45, %v356_v46  ;;  %v8088_v56 = vcombine.low %v352_v45, %v356_v46  ;;  %v403_v36 = vld [vmem:[#allocation5 + $0x8a0] sm:$0xff]  ;;  %v408_v46 = vld [vmem:[#allocation5 + $0x8c8] sm:$0xff] }
  0xc0   :  { %v411_v45 = vld [vmem:[#allocation5 + $0x8e0] sm:$0xff] }
  0xc1   :  { %3293 = vmatpush1.bf16.msra.mxu0 %v8022_v52  ;;  %3465 = vmatpush1.bf16.msra.mxu1 %v8024_v53  ;;  %v363_v52 = vld [vmem:[#allocation5 + $0x760] sm:$0xff]  ;;  %v360_v53 = vld [vmem:[#allocation5 + $0x748] sm:$0xff] }
  0xc2   :  { %3294 = vmatprep.subr.bf16.mxu0 %v8031_v54  ;;  %3466 = vmatprep.subr.bf16.mxu1 %v8033_v55  ;;  %v364_v54 = vld [vmem:[#allocation5 + $0x768] sm:$0xff]  ;;  %v8086_v55 = vcombine.low %v351_v43, %v355_v44  ;;  %v8095_v57 = vcombine.high %v359_v51, %v363_v52  ;;  %v407_v44 = vld [vmem:[#allocation5 + $0x8c0] sm:$0xff] }
  0xc3   :  { %v8097_v59 = vcombine.high %v360_v53, %v364_v54  ;;  %v8096_v1 = vcombine.low %v360_v53, %v364_v54  ;;  %v419_v53 = vld [vmem:[#allocation5 + $0x920] sm:$0xff]  ;;  %v416_v54 = vld [vmem:[#allocation5 + $0x908] sm:$0xff] }
  0xc5   :  { %3295 = vmatpush1.bf16.msra.mxu0 %v8030_v61  ;;  %3467 = vmatpush1.bf16.msra.mxu1 %v8032_v62  ;;  %v371_v61 = vld [vmem:[#allocation5 + $0x7a0] sm:$0xff]  ;;  %v368_v62 = vld [vmem:[#allocation5 + $0x788] sm:$0xff] }
  0xc6   :  { %3296 = vmatprep.subr.bf16.mxu0 %v8039_v63  ;;  %3468 = vmatprep.subr.bf16.mxu1 %v8041_v0  ;;  %v372_v63 = vld [vmem:[#allocation5 + $0x7a8] sm:$0xff]  ;;  %v8094_v0 = vcombine.low %v359_v51, %v363_v52  ;;  %v8103_v2 = vcombine.high %v367_v60, %v371_v61  ;;  %v415_v52 = vld [vmem:[#allocation5 + $0x900] sm:$0xff] }
  0xc7   :  { %v8105_v3 = vcombine.high %v368_v62, %v372_v63  ;;  %v8104_v9 = vcombine.low %v368_v62, %v372_v63  ;;  %v427_v62 = vld [vmem:[#allocation5 + $0x960] sm:$0xff]  ;;  %v424_v63 = vld [vmem:[#allocation5 + $0x948] sm:$0xff] }
  0xc9   :  { %3297 = vmatpush1.bf16.msra.mxu0 %v8038_v5  ;;  %3469 = vmatpush1.bf16.msra.mxu1 %v8040_v6  ;;  %v379_v5 = vld [vmem:[#allocation5 + $0x7e0] sm:$0xff]  ;;  %v376_v6 = vld [vmem:[#allocation5 + $0x7c8] sm:$0xff] }
  0xca   :  { %3298 = vmatprep.subr.bf16.mxu0 %v8047_v7  ;;  %3470 = vmatprep.subr.bf16.mxu1 %v8049_v8  ;;  %v380_v7 = vld [vmem:[#allocation5 + $0x7e8] sm:$0xff]  ;;  %v8102_v8 = vcombine.low %v367_v60, %v371_v61  ;;  %v8111_v10 = vcombine.high %v375_v4, %v379_v5  ;;  %v423_v61 = vld [vmem:[#allocation5 + $0x940] sm:$0xff] }
  0xcb   :  { %v8113_v11 = vcombine.high %v376_v6, %v380_v7  ;;  %v8112_v20 = vcombine.low %v376_v6, %v380_v7  ;;  %v435_v6 = vld [vmem:[#allocation5 + $0x9a0] sm:$0xff]  ;;  %v432_v7 = vld [vmem:[#allocation5 + $0x988] sm:$0xff] }
  0xcd   :  { %3299 = vmatpush1.bf16.msra.mxu0 %v8046_v13  ;;  %3471 = vmatpush1.bf16.msra.mxu1 %v8048_v14  ;;  %v387_v13 = vld [vmem:[#allocation5 + $0x820] sm:$0xff]  ;;  %v384_v14 = vld [vmem:[#allocation5 + $0x808] sm:$0xff] }
  0xce   :  { %3300 = vmatprep.subr.bf16.mxu0 %v8055_v16  ;;  %3472 = vmatprep.subr.bf16.mxu1 %v8057_v17  ;;  %v388_v16 = vld [vmem:[#allocation5 + $0x828] sm:$0xff]  ;;  %v8110_v17 = vcombine.low %v375_v4, %v379_v5  ;;  %v8119_v21 = vcombine.high %v383_v12, %v387_v13  ;;  %v431_v5 = vld [vmem:[#allocation5 + $0x980] sm:$0xff] }
  0xcf   :  { %v8166_v18 = vcombine.low %v431_v5, %v435_v6 }
  0xd1   :  { %3301 = vmatpush1.bf16.msra.mxu0 %v8054_v22  ;;  %3473 = vmatpush1.bf16.msra.mxu1 %v8056_v23  ;;  %v8121_v22 = vcombine.high %v384_v14, %v388_v16  ;;  %v391_v23 = vld [vmem:[#allocation5 + $0x840] sm:$0xff] }
  0xd2   :  { %3302 = vmatprep.subr.bf16.mxu0 %v8063_v24  ;;  %3474 = vmatprep.subr.bf16.mxu1 %v8065_v26  ;;  %v395_v24 = vld [vmem:[#allocation5 + $0x860] sm:$0xff]  ;;  %v392_v26 = vld [vmem:[#allocation5 + $0x848] sm:$0xff] }
  0xd5   :  { %3303 = vmatpush1.bf16.msra.mxu0 %v8062_v31  ;;  %3475 = vmatpush1.bf16.msra.mxu1 %v8064_v32  ;;  %v8118_v31 = vcombine.low %v383_v12, %v387_v13  ;;  %v8120_v32 = vcombine.low %v384_v14, %v388_v16  ;;  %v439_v13 = vld [vmem:[#allocation5 + $0x9c0] sm:$0xff]  ;;  %v440_v16 = vld [vmem:[#allocation5 + $0x9c8] sm:$0xff] }
  0xd6   :  { %3304 = vmatprep.subr.bf16.mxu0 %v8071_v33  ;;  %3476 = vmatprep.subr.bf16.mxu1 %v8073_v34  ;;  %v8127_v33 = vcombine.high %v391_v23, %v395_v24  ;;  %v8129_v34 = vcombine.high %v392_v26, %v396_v28  ;;  %v443_v14 = vld [vmem:[#allocation5 + $0x9e0] sm:$0xff] }
  0xd9   :  { %3305 = vmatpush1.bf16.msra.mxu0 %v8070_v39  ;;  %3477 = vmatpush1.bf16.msra.mxu1 %v8072_v40  ;;  %v404_v39 = vld [vmem:[#allocation5 + $0x8a8] sm:$0xff]  ;;  %v8126_v40 = vcombine.low %v391_v23, %v395_v24  ;;  %v451_v23 = vld [vmem:[#allocation5 + $0xa20] sm:$0xff] }
  0xda   :  { %3306 = vmatprep.subr.bf16.mxu0 %v8079_v41  ;;  %3478 = vmatprep.subr.bf16.mxu1 %v8081_v42  ;;  %v8128_v41 = vcombine.low %v392_v26, %v396_v28  ;;  %v8135_v42 = vcombine.high %v399_v35, %v403_v36  ;;  %v8137_v43 = vcombine.high %v400_v38, %v404_v39  ;;  %v448_v24 = vld [vmem:[#allocation5 + $0xa08] sm:$0xff] }
  0xdb   :  { %v452_v26 = vld [vmem:[#allocation5 + $0xa28] sm:$0xff]  ;;  %v8174_v28 = vcombine.low %v439_v13, %v443_v14 }
  0xdd   :  { %3307 = vmatpush1.bf16.msra.mxu0 %v8078_v47  ;;  %3479 = vmatpush1.bf16.msra.mxu1 %v8080_v48  ;;  %v412_v47 = vld [vmem:[#allocation5 + $0x8e8] sm:$0xff]  ;;  %v8134_v48 = vcombine.low %v399_v35, %v403_v36 }
  0xde   :  { %3308 = vmatprep.subr.bf16.mxu0 %v8087_v49  ;;  %3480 = vmatprep.subr.bf16.mxu1 %v8089_v50  ;;  %v8136_v49 = vcombine.low %v400_v38, %v404_v39  ;;  %v8143_v50 = vcombine.high %v407_v44, %v411_v45  ;;  %v8145_v51 = vcombine.high %v408_v46, %v412_v47  ;;  %v460_v35 = vld [vmem:[#allocation5 + $0xa68] sm:$0xff] }
  0xdf   :  { %v8184_v38 = vcombine.low %v448_v24, %v452_v26 }
  0xe1   :  { %3309 = vmatpush1.bf16.msra.mxu0 %v8086_v55  ;;  %3481 = vmatpush1.bf16.msra.mxu1 %v8088_v56  ;;  %v420_v55 = vld [vmem:[#allocation5 + $0x928] sm:$0xff]  ;;  %v8142_v56 = vcombine.low %v407_v44, %v411_v45 }
  0xe2   :  { %3310 = vmatprep.subr.bf16.mxu0 %v8095_v57  ;;  %3482 = vmatprep.subr.bf16.mxu1 %v8097_v59  ;;  %v8144_v57 = vcombine.low %v408_v46, %v412_v47  ;;  %v8151_v59 = vcombine.high %v415_v52, %v419_v53  ;;  %v8153_v60 = vcombine.high %v416_v54, %v420_v55  ;;  %v468_v44 = vld [vmem:[#allocation5 + $0xaa8] sm:$0xff] }
  0xe5   :  { %3311 = vmatpush1.bf16.msra.mxu0 %v8094_v0  ;;  %3483 = vmatpush1.bf16.msra.mxu1 %v8096_v1  ;;  %v428_v0 = vld [vmem:[#allocation5 + $0x968] sm:$0xff]  ;;  %v8150_v1 = vcombine.low %v415_v52, %v419_v53 }
  0xe6   :  { %3312 = vmatprep.subr.bf16.mxu0 %v8103_v2  ;;  %3484 = vmatprep.subr.bf16.mxu1 %v8105_v3  ;;  %v8152_v2 = vcombine.low %v416_v54, %v420_v55  ;;  %v8159_v3 = vcombine.high %v423_v61, %v427_v62  ;;  %v8161_v4 = vcombine.high %v424_v63, %v428_v0  ;;  %v476_v52 = vld [vmem:[#allocation5 + $0xae8] sm:$0xff] }
  0xe9   :  { %3313 = vmatpush1.bf16.msra.mxu0 %v8102_v8  ;;  %3485 = vmatpush1.bf16.msra.mxu1 %v8104_v9  ;;  %v436_v8 = vld [vmem:[#allocation5 + $0x9a8] sm:$0xff]  ;;  %v8158_v9 = vcombine.low %v423_v61, %v427_v62 }
  0xea   :  { %3314 = vmatprep.subr.bf16.mxu0 %v8111_v10  ;;  %3486 = vmatprep.subr.bf16.mxu1 %v8113_v11  ;;  %v8160_v10 = vcombine.low %v424_v63, %v428_v0  ;;  %v8167_v11 = vcombine.high %v431_v5, %v435_v6  ;;  %v8169_v12 = vcombine.high %v432_v7, %v436_v8  ;;  %v484_v61 = vld [vmem:[#allocation5 + $0xb28] sm:$0xff] }
  0xeb   :  { %v8168_v19 = vcombine.low %v432_v7, %v436_v8  ;;  %v492_v5 = vld [vmem:[#allocation5 + $0xb68] sm:$0xff] }
  0xed   :  { %3315 = vmatpush1.bf16.msra.mxu0 %v8110_v17  ;;  %3487 = vmatpush1.bf16.msra.mxu1 %v8112_v20  ;;  %v444_v17 = vld [vmem:[#allocation5 + $0x9e8] sm:$0xff]  ;;  %v8175_v20 = vcombine.high %v439_v13, %v443_v14 }
  0xee   :  { %3327 = vmatprep.subr.bf16.mxu0 %v8119_v21  ;;  %3499 = vmatprep.subr.bf16.mxu1 %v8121_v22  ;;  %v8177_v21 = vcombine.high %v440_v16, %v444_v17  ;;  %v447_v22 = vld [vmem:[#allocation5 + $0xa00] sm:$0xff]  ;;  %v8176_v29 = vcombine.low %v440_v16, %v444_v17  ;;  %v500_v13 = vld [vmem:[#allocation5 + $0xba8] sm:$0xff] }
  0xef   :  { %v8183_v30 = vcombine.high %v447_v22, %v451_v23  ;;  %v8182_v36 = vcombine.low %v447_v22, %v451_v23  ;;  %v508_v22 = vld [vmem:[#allocation5 + $0xbe8] sm:$0xff] }
  0xf0   :  { %3317 = vmatmul.mubr.bf16.vlgmr.msra.gmra.mrb[0].mxu0 %v9299_v27  ;;  %3489 = vmatmul.mubr.bf16.vlgmr.msra.gmra.mrb[0].mxu1 %v9299_v27 }
  0xf1   :  { %3328 = vmatpush1.bf16.msra.mxu0 %v8118_v31  ;;  %3500 = vmatpush1.bf16.msra.mxu1 %v8120_v32  ;;  %v8185_v31 = vcombine.high %v448_v24, %v452_v26  ;;  %v455_v32 = vld [vmem:[#allocation5 + $0xa40] sm:$0xff] }
  0xf2   :  { %3329 = vmatprep.subr.bf16.mxu0 %v8127_v33  ;;  %3501 = vmatprep.subr.bf16.mxu1 %v8129_v34  ;;  %v459_v33 = vld [vmem:[#allocation5 + $0xa60] sm:$0xff]  ;;  %v456_v34 = vld [vmem:[#allocation5 + $0xa48] sm:$0xff] }
  0xf3   :  { %3359 = vmatprep.mubr.bf16.mxu0 %v9301_v37  ;;  %3531 = vmatprep.mubr.bf16.mxu1 %v9301_v37  ;;  %v8191_v39 = vcombine.high %v455_v32, %v459_v33  ;;  %v8190_v45 = vcombine.low %v455_v32, %v459_v33  ;;  %v8192_v46 = vcombine.low %v456_v34, %v460_v35  ;;  %v516_v32 = vld [vmem:[#allocation5 + $0xc28] sm:$0xff] }
  0xf5   :  { %3330 = vmatpush1.bf16.msra.mxu0 %v8126_v40  ;;  %3502 = vmatpush1.bf16.msra.mxu1 %v8128_v41  ;;  %v8193_v40 = vcombine.high %v456_v34, %v460_v35  ;;  %v463_v41 = vld [vmem:[#allocation5 + $0xa80] sm:$0xff] }
  0xf6   :  { %3331 = vmatprep.subr.bf16.mxu0 %v8135_v42  ;;  %3503 = vmatprep.subr.bf16.mxu1 %v8137_v43  ;;  %v467_v42 = vld [vmem:[#allocation5 + $0xaa0] sm:$0xff]  ;;  %v464_v43 = vld [vmem:[#allocation5 + $0xa88] sm:$0xff] }
  0xf7   :  { %v8199_v47 = vcombine.high %v463_v41, %v467_v42  ;;  %v8198_v53 = vcombine.low %v463_v41, %v467_v42  ;;  %v8200_v54 = vcombine.low %v464_v43, %v468_v44  ;;  %v107_v34 = vld [vmem:[#allocation3 + $0x20] sm:$0xff]  ;;  %v520_v42 = vld [vmem:[#allocation5 + $0xc48] sm:$0xff] }
  0xf8   :  { %v115_v35 = vld [vmem:[#allocation3 + $0x60] sm:$0xff] }
  0xf9   :  { %3332 = vmatpush1.bf16.msra.mxu0 %v8134_v48  ;;  %3504 = vmatpush1.bf16.msra.mxu1 %v8136_v49  ;;  %v8201_v48 = vcombine.high %v464_v43, %v468_v44  ;;  %v471_v49 = vld [vmem:[#allocation5 + $0xac0] sm:$0xff]  ;;  %v9307_v43 = vpack.c.bf16 %v115_v35, %v107_v34  ;;  %v524_v44 = vld [vmem:[#allocation5 + $0xc68] sm:$0xff] }
  0xfa   :  { %3333 = vmatprep.subr.bf16.mxu0 %v8143_v50  ;;  %3505 = vmatprep.subr.bf16.mxu1 %v8145_v51  ;;  %v475_v50 = vld [vmem:[#allocation5 + $0xae0] sm:$0xff]  ;;  %v472_v51 = vld [vmem:[#allocation5 + $0xac8] sm:$0xff] }
  0xfb   :  { %v8207_v55 = vcombine.high %v471_v49, %v475_v50  ;;  %v8206_v62 = vcombine.low %v471_v49, %v475_v50  ;;  %v8208_v63 = vcombine.low %v472_v51, %v476_v52  ;;  %v523_v41 = vld [vmem:[#allocation5 + $0xc60] sm:$0xff]  ;;  %v8257_v50 = vcombine.high %v520_v42, %v524_v44  ;;  %v568_v34 = vld [vmem:[#allocation5 + $0xdc8] sm:$0xff] }
  0xfc   :  { %v572_v35 = vld [vmem:[#allocation5 + $0xde8] sm:$0xff] }
  0xfd   :  { %3334 = vmatpush1.bf16.msra.mxu0 %v8142_v56  ;;  %3506 = vmatpush1.bf16.msra.mxu1 %v8144_v57  ;;  %v8209_v56 = vcombine.high %v472_v51, %v476_v52  ;;  %v479_v57 = vld [vmem:[#allocation5 + $0xb00] sm:$0xff] }
  0xfe   :  { %3335 = vmatprep.subr.bf16.mxu0 %v8151_v59  ;;  %3507 = vmatprep.subr.bf16.mxu1 %v8153_v60  ;;  %v483_v59 = vld [vmem:[#allocation5 + $0xb20] sm:$0xff]  ;;  %v480_v60 = vld [vmem:[#allocation5 + $0xb08] sm:$0xff] }
  0xff   :  { %v8215_v0 = vcombine.high %v479_v57, %v483_v59  ;;  %v8214_v6 = vcombine.low %v479_v57, %v483_v59  ;;  %v8216_v7 = vcombine.low %v480_v60, %v484_v61  ;;  %v527_v51 = vld [vmem:[#allocation5 + $0xc80] sm:$0xff]  ;;  %v8256_v57 = vcombine.low %v520_v42, %v524_v44  ;;  %v576_v44 = vld [vmem:[#allocation5 + $0xe08] sm:$0xff] }
 0x100   :  { %v531_v52 = vld [vmem:[#allocation5 + $0xca0] sm:$0xff] }
 0x101   :  { %3336 = vmatpush1.bf16.msra.mxu0 %v8150_v1  ;;  %3508 = vmatpush1.bf16.msra.mxu1 %v8152_v2  ;;  %v8217_v1 = vcombine.high %v480_v60, %v484_v61  ;;  %v487_v2 = vld [vmem:[#allocation5 + $0xb40] sm:$0xff]  ;;  %v8263_v59 = vcombine.high %v527_v51, %v531_v52 }
 0x102   :  { %3337 = vmatprep.subr.bf16.mxu0 %v8159_v3  ;;  %3509 = vmatprep.subr.bf16.mxu1 %v8161_v4  ;;  %v491_v3 = vld [vmem:[#allocation5 + $0xb60] sm:$0xff]  ;;  %v488_v4 = vld [vmem:[#allocation5 + $0xb48] sm:$0xff] }
 0x103   :  { %v8223_v8 = vcombine.high %v487_v2, %v491_v3  ;;  %v8222_v14 = vcombine.low %v487_v2, %v491_v3  ;;  %v8224_v16 = vcombine.low %v488_v4, %v492_v5  ;;  %v535_v61 = vld [vmem:[#allocation5 + $0xcc0] sm:$0xff] }
 0x104   :  { %v579_v42 = vld [vmem:[#allocation5 + $0xe20] sm:$0xff] }
 0x105   :  { %3338 = vmatpush1.bf16.msra.mxu0 %v8158_v9  ;;  %3510 = vmatpush1.bf16.msra.mxu1 %v8160_v10  ;;  %v8225_v9 = vcombine.high %v488_v4, %v492_v5  ;;  %v495_v10 = vld [vmem:[#allocation5 + $0xb80] sm:$0xff] }
 0x106   :  { %3339 = vmatprep.subr.bf16.mxu0 %v8167_v11  ;;  %3511 = vmatprep.subr.bf16.mxu1 %v8169_v12  ;;  %v499_v11 = vld [vmem:[#allocation5 + $0xba0] sm:$0xff]  ;;  %v496_v12 = vld [vmem:[#allocation5 + $0xb88] sm:$0xff] }
 0x107   :  { %v8231_v17 = vcombine.high %v495_v10, %v499_v11  ;;  %v8230_v23 = vcombine.low %v495_v10, %v499_v11  ;;  %v8232_v24 = vcombine.low %v496_v12, %v500_v13  ;;  %v543_v5 = vld [vmem:[#allocation5 + $0xd00] sm:$0xff] }
 0x109   :  { %3340 = vmatpush1.bf16.msra.mxu0 %v8166_v18  ;;  %3512 = vmatpush1.bf16.msra.mxu1 %v8168_v19  ;;  %v8233_v18 = vcombine.high %v496_v12, %v500_v13  ;;  %v503_v19 = vld [vmem:[#allocation5 + $0xbc0] sm:$0xff] }
 0x10a   :  { %3341 = vmatprep.subr.bf16.mxu0 %v8175_v20  ;;  %3513 = vmatprep.subr.bf16.mxu1 %v8177_v21  ;;  %v507_v20 = vld [vmem:[#allocation5 + $0xbe0] sm:$0xff]  ;;  %v504_v21 = vld [vmem:[#allocation5 + $0xbc8] sm:$0xff] }
 0x10b   :  { %v8239_v26 = vcombine.high %v503_v19, %v507_v20  ;;  %v8238_v33 = vcombine.low %v503_v19, %v507_v20  ;;  %v551_v13 = vld [vmem:[#allocation5 + $0xd40] sm:$0xff] }
 0x10d   :  { %3342 = vmatpush1.bf16.msra.mxu0 %v8174_v28  ;;  %3514 = vmatpush1.bf16.msra.mxu1 %v8176_v29  ;;  %v8241_v28 = vcombine.high %v504_v21, %v508_v22  ;;  %v511_v29 = vld [vmem:[#allocation5 + $0xc00] sm:$0xff] }
 0x10e   :  { %3343 = vmatprep.subr.bf16.mxu0 %v8183_v30  ;;  %3515 = vmatprep.subr.bf16.mxu1 %v8185_v31  ;;  %v515_v30 = vld [vmem:[#allocation5 + $0xc20] sm:$0xff]  ;;  %v512_v31 = vld [vmem:[#allocation5 + $0xc08] sm:$0xff] }
 0x111   :  { %3344 = vmatpush1.bf16.msra.mxu0 %v8182_v36  ;;  %3516 = vmatpush1.bf16.msra.mxu1 %v8184_v38  ;;  %v8240_v36 = vcombine.low %v504_v21, %v508_v22  ;;  %v8247_v38 = vcombine.high %v511_v29, %v515_v30  ;;  %v559_v22 = vld [vmem:[#allocation5 + $0xd80] sm:$0xff] }
 0x112   :  { %3345 = vmatprep.subr.bf16.mxu0 %v8191_v39  ;;  %3517 = vmatprep.subr.bf16.mxu1 %v8193_v40  ;;  %v8249_v39 = vcombine.high %v512_v31, %v516_v32  ;;  %v519_v40 = vld [vmem:[#allocation5 + $0xc40] sm:$0xff] }
 0x113   :  { %v8255_v49 = vcombine.high %v519_v40, %v523_v41 }
 0x115   :  { %3346 = vmatpush1.bf16.msra.mxu0 %v8190_v45  ;;  %3518 = vmatpush1.bf16.msra.mxu1 %v8192_v46  ;;  %v110_v45 = vld [vmem:[#allocation3 + $0x38] sm:$0xff] }
 0x116   :  { %3347 = vmatprep.subr.bf16.mxu0 %v8199_v47  ;;  %3519 = vmatprep.subr.bf16.mxu1 %v8201_v48  ;;  %v118_v46 = vld [vmem:[#allocation3 + $0x78] sm:$0xff]  ;;  %v8246_v47 = vcombine.low %v511_v29, %v515_v30  ;;  %v8248_v48 = vcombine.low %v512_v31, %v516_v32  ;;  %v567_v32 = vld [vmem:[#allocation5 + $0xdc0] sm:$0xff] }
 0x119   :  { %3348 = vmatpush1.bf16.msra.mxu0 %v8198_v53  ;;  %3520 = vmatpush1.bf16.msra.mxu1 %v8200_v54  ;;  %v9309_v53 = vpack.c.bf16 %v118_v46, %v110_v45  ;;  %v528_v54 = vld [vmem:[#allocation5 + $0xc88] sm:$0xff] }
 0x11a   :  { %3349 = vmatprep.subr.bf16.mxu0 %v8207_v55  ;;  %3521 = vmatprep.subr.bf16.mxu1 %v8209_v56  ;;  %v532_v55 = vld [vmem:[#allocation5 + $0xca8] sm:$0xff]  ;;  %v8254_v56 = vcombine.low %v519_v40, %v523_v41  ;;  %v8305_v40 = vcombine.high %v568_v34, %v572_v35  ;;  %v575_v41 = vld [vmem:[#allocation5 + $0xe00] sm:$0xff] }
 0x11b   :  { %v8265_v60 = vcombine.high %v528_v54, %v532_v55  ;;  %v8264_v2 = vcombine.low %v528_v54, %v532_v55  ;;  %v580_v45 = vld [vmem:[#allocation5 + $0xe28] sm:$0xff]  ;;  %v8310_v55 = vcombine.low %v575_v41, %v579_v42 }
 0x11c   :  { %v588_v54 = vld [vmem:[#allocation5 + $0xe68] sm:$0xff] }
 0x11d   :  { %3350 = vmatpush1.bf16.msra.mxu0 %v8206_v62  ;;  %3522 = vmatpush1.bf16.msra.mxu1 %v8208_v63  ;;  %v539_v62 = vld [vmem:[#allocation5 + $0xce0] sm:$0xff]  ;;  %v536_v63 = vld [vmem:[#allocation5 + $0xcc8] sm:$0xff] }
 0x11e   :  { %3351 = vmatprep.subr.bf16.mxu0 %v8215_v0  ;;  %3523 = vmatprep.subr.bf16.mxu1 %v8217_v1  ;;  %v540_v0 = vld [vmem:[#allocation5 + $0xce8] sm:$0xff]  ;;  %v8262_v1 = vcombine.low %v527_v51, %v531_v52  ;;  %v8271_v3 = vcombine.high %v535_v61, %v539_v62  ;;  %v587_v51 = vld [vmem:[#allocation5 + $0xe60] sm:$0xff] }
 0x11f   :  { %v8273_v4 = vcombine.high %v536_v63, %v540_v0  ;;  %v8272_v10 = vcombine.low %v536_v63, %v540_v0  ;;  %v584_v52 = vld [vmem:[#allocation5 + $0xe48] sm:$0xff] }
 0x120   :  { %v596_v63 = vld [vmem:[#allocation5 + $0xea8] sm:$0xff] }
 0x121   :  { %3352 = vmatpush1.bf16.msra.mxu0 %v8214_v6  ;;  %3524 = vmatpush1.bf16.msra.mxu1 %v8216_v7  ;;  %v547_v6 = vld [vmem:[#allocation5 + $0xd20] sm:$0xff]  ;;  %v544_v7 = vld [vmem:[#allocation5 + $0xd08] sm:$0xff] }
 0x122   :  { %3353 = vmatprep.subr.bf16.mxu0 %v8223_v8  ;;  %3525 = vmatprep.subr.bf16.mxu1 %v8225_v9  ;;  %v548_v8 = vld [vmem:[#allocation5 + $0xd28] sm:$0xff]  ;;  %v8270_v9 = vcombine.low %v535_v61, %v539_v62  ;;  %v8279_v11 = vcombine.high %v543_v5, %v547_v6  ;;  %v595_v61 = vld [vmem:[#allocation5 + $0xea0] sm:$0xff] }
 0x123   :  { %v8281_v12 = vcombine.high %v544_v7, %v548_v8  ;;  %v8280_v19 = vcombine.low %v544_v7, %v548_v8  ;;  %v592_v62 = vld [vmem:[#allocation5 + $0xe88] sm:$0xff] }
 0x124   :  { %v604_v7 = vld [vmem:[#allocation5 + $0xee8] sm:$0xff] }
 0x125   :  { %3354 = vmatpush1.bf16.msra.mxu0 %v8222_v14  ;;  %3526 = vmatpush1.bf16.msra.mxu1 %v8224_v16  ;;  %v555_v14 = vld [vmem:[#allocation5 + $0xd60] sm:$0xff]  ;;  %v552_v16 = vld [vmem:[#allocation5 + $0xd48] sm:$0xff] }
 0x126   :  { %3355 = vmatprep.subr.bf16.mxu0 %v8231_v17  ;;  %3527 = vmatprep.subr.bf16.mxu1 %v8233_v18  ;;  %v556_v17 = vld [vmem:[#allocation5 + $0xd68] sm:$0xff]  ;;  %v8278_v18 = vcombine.low %v543_v5, %v547_v6  ;;  %v8287_v20 = vcombine.high %v551_v13, %v555_v14  ;;  %v603_v5 = vld [vmem:[#allocation5 + $0xee0] sm:$0xff] }
 0x127   :  { %v8289_v21 = vcombine.high %v552_v16, %v556_v17  ;;  %v8288_v29 = vcombine.low %v552_v16, %v556_v17  ;;  %v600_v6 = vld [vmem:[#allocation5 + $0xec8] sm:$0xff] }
 0x128   :  { %v612_v16 = vld [vmem:[#allocation5 + $0xf28] sm:$0xff] }
 0x129   :  { %3356 = vmatpush1.bf16.msra.mxu0 %v8230_v23  ;;  %3528 = vmatpush1.bf16.msra.mxu1 %v8232_v24  ;;  %v563_v23 = vld [vmem:[#allocation5 + $0xda0] sm:$0xff]  ;;  %v560_v24 = vld [vmem:[#allocation5 + $0xd88] sm:$0xff] }
 0x12a   :  { %3357 = vmatprep.subr.bf16.mxu0 %v8239_v26  ;;  %3529 = vmatprep.subr.bf16.mxu1 %v8241_v28  ;;  %v564_v26 = vld [vmem:[#allocation5 + $0xda8] sm:$0xff]  ;;  %v8286_v28 = vcombine.low %v551_v13, %v555_v14  ;;  %v8295_v30 = vcombine.high %v559_v22, %v563_v23  ;;  %v611_v13 = vld [vmem:[#allocation5 + $0xf20] sm:$0xff] }
 0x12b   :  { %v8297_v31 = vcombine.high %v560_v24, %v564_v26  ;;  %v608_v14 = vld [vmem:[#allocation5 + $0xf08] sm:$0xff] }
 0x12d   :  { %3358 = vmatpush1.bf16.msra.mxu0 %v8238_v33  ;;  %3530 = vmatpush1.bf16.msra.mxu1 %v8240_v36  ;;  %v571_v33 = vld [vmem:[#allocation5 + $0xde0] sm:$0xff]  ;;  %v8294_v36 = vcombine.low %v559_v22, %v563_v23  ;;  %v616_v23 = vld [vmem:[#allocation5 + $0xf48] sm:$0xff] }
 0x12e   :  { %3370 = vmatprep.subr.bf16.mxu0 %v8247_v38  ;;  %3542 = vmatprep.subr.bf16.mxu1 %v8249_v39  ;;  %v8296_v38 = vcombine.low %v560_v24, %v564_v26  ;;  %v8303_v39 = vcombine.high %v567_v32, %v571_v33  ;;  %v8302_v46 = vcombine.low %v567_v32, %v571_v33  ;;  %v619_v22 = vld [vmem:[#allocation5 + $0xf60] sm:$0xff]  ;;  %v620_v24 = vld [vmem:[#allocation5 + $0xf68] sm:$0xff] }
 0x12f   :  { %v627_v32 = vld [vmem:[#allocation5 + $0xfa0] sm:$0xff]  ;;  %v624_v33 = vld [vmem:[#allocation5 + $0xf88] sm:$0xff] }
 0x130   :  { %3360 = vmatmul.mubr.bf16.vlgmr.msra.gmra.mrb[0].mxu0 %v9307_v43  ;;  %3532 = vmatmul.mubr.bf16.vlgmr.msra.gmra.mrb[0].mxu1 %v9307_v43 }
 0x131   :  { %3371 = vmatpush1.bf16.msra.mxu0 %v8246_v47  ;;  %3543 = vmatpush1.bf16.msra.mxu1 %v8248_v48  ;;  %v8304_v47 = vcombine.low %v568_v34, %v572_v35  ;;  %v8311_v48 = vcombine.high %v575_v41, %v579_v42  ;;  %v628_v34 = vld [vmem:[#allocation5 + $0xfa8] sm:$0xff]  ;;  %v635_v41 = vld [vmem:[#allocation5 + $0xfe0] sm:$0xff] }
 0x132   :  { %3372 = vmatprep.subr.bf16.mxu0 %v8255_v49  ;;  %3544 = vmatprep.subr.bf16.mxu1 %v8257_v50  ;;  %v8313_v49 = vcombine.high %v576_v44, %v580_v45  ;;  %v583_v50 = vld [vmem:[#allocation5 + $0xe40] sm:$0xff]  ;;  %v632_v42 = vld [vmem:[#allocation5 + $0xfc8] sm:$0xff] }
 0x133   :  { %3402 = vmatprep.mubr.bf16.mxu0 %v9309_v53  ;;  %3574 = vmatprep.mubr.bf16.mxu1 %v9309_v53  ;;  %v8318_v0 = vcombine.low %v583_v50, %v587_v51 }
 0x135   :  { %3373 = vmatpush1.bf16.msra.mxu0 %v8254_v56  ;;  %3545 = vmatpush1.bf16.msra.mxu1 %v8256_v57  ;;  %v8312_v56 = vcombine.low %v576_v44, %v580_v45  ;;  %v8319_v57 = vcombine.high %v583_v50, %v587_v51  ;;  %v636_v44 = vld [vmem:[#allocation5 + $0xfe8] sm:$0xff]  ;;  %v133_v50 = vld [vmem:[#allocation5 + $0x30] sm:$0xff]  ;;  %v130_v51 = vld [vmem:[#allocation5 + $0x18] sm:$0xff] }
 0x136   :  { %3374 = vmatprep.subr.bf16.mxu0 %v8263_v59  ;;  %3546 = vmatprep.subr.bf16.mxu1 %v8265_v60  ;;  %v8321_v59 = vcombine.high %v584_v52, %v588_v54  ;;  %v591_v60 = vld [vmem:[#allocation5 + $0xe80] sm:$0xff] }
 0x137   :  { %v8326_v8 = vcombine.low %v591_v60, %v595_v61 }
 0x139   :  { %3375 = vmatpush1.bf16.msra.mxu0 %v8262_v1  ;;  %3547 = vmatpush1.bf16.msra.mxu1 %v8264_v2  ;;  %v8320_v1 = vcombine.low %v584_v52, %v588_v54  ;;  %v8327_v2 = vcombine.high %v591_v60, %v595_v61  ;;  %v134_v52 = vld [vmem:[#allocation5 + $0x38] sm:$0xff]  ;;  %v137_v61 = vld [vmem:[#allocation5 + $0x50] sm:$0xff] }
 0x13a   :  { %3376 = vmatprep.subr.bf16.mxu0 %v8271_v3  ;;  %3548 = vmatprep.subr.bf16.mxu1 %v8273_v4  ;;  %v8329_v3 = vcombine.high %v592_v62, %v596_v63  ;;  %v599_v4 = vld [vmem:[#allocation5 + $0xec0] sm:$0xff]  ;;  %v7869_v60 = vcombine.high %v130_v51, %v134_v52 }
 0x13b   :  { %v8334_v17 = vcombine.low %v599_v4, %v603_v5 }
 0x13d   :  { %3377 = vmatpush1.bf16.msra.mxu0 %v8270_v9  ;;  %3549 = vmatpush1.bf16.msra.mxu1 %v8272_v10  ;;  %v8328_v9 = vcombine.low %v592_v62, %v596_v63  ;;  %v8335_v10 = vcombine.high %v599_v4, %v603_v5  ;;  %v141_v62 = vld [vmem:[#allocation5 + $0x70] sm:$0xff] }
 0x13e   :  { %3378 = vmatprep.subr.bf16.mxu0 %v8279_v11  ;;  %3550 = vmatprep.subr.bf16.mxu1 %v8281_v12  ;;  %v8337_v11 = vcombine.high %v600_v6, %v604_v7  ;;  %v607_v12 = vld [vmem:[#allocation5 + $0xf00] sm:$0xff]  ;;  %v7875_v4 = vcombine.high %v137_v61, %v141_v62 }
 0x13f   :  { %v8342_v26 = vcombine.low %v607_v12, %v611_v13 }
 0x141   :  { %3379 = vmatpush1.bf16.msra.mxu0 %v8278_v18  ;;  %3551 = vmatpush1.bf16.msra.mxu1 %v8280_v19  ;;  %v8336_v18 = vcombine.low %v600_v6, %v604_v7  ;;  %v8343_v19 = vcombine.high %v607_v12, %v611_v13  ;;  %v145_v6 = vld [vmem:[#allocation5 + $0x90] sm:$0xff] }
 0x142   :  { %3380 = vmatprep.subr.bf16.mxu0 %v8287_v20  ;;  %3552 = vmatprep.subr.bf16.mxu1 %v8289_v21  ;;  %v8345_v20 = vcombine.high %v608_v14, %v612_v16  ;;  %v615_v21 = vld [vmem:[#allocation5 + $0xf40] sm:$0xff]  ;;  %v149_v7 = vld [vmem:[#allocation5 + $0xb0] sm:$0xff] }
 0x143   :  { %v8350_v35 = vcombine.low %v615_v21, %v619_v22  ;;  %v7883_v12 = vcombine.high %v145_v6, %v149_v7 }
 0x145   :  { %3381 = vmatpush1.bf16.msra.mxu0 %v8286_v28  ;;  %3553 = vmatpush1.bf16.msra.mxu1 %v8288_v29  ;;  %v8344_v28 = vcombine.low %v608_v14, %v612_v16  ;;  %v8351_v29 = vcombine.high %v615_v21, %v619_v22  ;;  %v153_v14 = vld [vmem:[#allocation5 + $0xd0] sm:$0xff] }
 0x146   :  { %3382 = vmatprep.subr.bf16.mxu0 %v8295_v30  ;;  %3554 = vmatprep.subr.bf16.mxu1 %v8297_v31  ;;  %v8353_v30 = vcombine.high %v616_v23, %v620_v24  ;;  %v623_v31 = vld [vmem:[#allocation5 + $0xf80] sm:$0xff]  ;;  %v157_v16 = vld [vmem:[#allocation5 + $0xf0] sm:$0xff] }
 0x147   :  { %v8358_v45 = vcombine.low %v623_v31, %v627_v32  ;;  %v7891_v21 = vcombine.high %v153_v14, %v157_v16 }
 0x149   :  { %3383 = vmatpush1.bf16.msra.mxu0 %v8294_v36  ;;  %3555 = vmatpush1.bf16.msra.mxu1 %v8296_v38  ;;  %v8352_v36 = vcombine.low %v616_v23, %v620_v24  ;;  %v8359_v38 = vcombine.high %v623_v31, %v627_v32  ;;  %v161_v23 = vld [vmem:[#allocation5 + $0x110] sm:$0xff] }
 0x14a   :  { %3384 = vmatprep.subr.bf16.mxu0 %v8303_v39  ;;  %3556 = vmatprep.subr.bf16.mxu1 %v8305_v40  ;;  %v8361_v39 = vcombine.high %v624_v33, %v628_v34  ;;  %v631_v40 = vld [vmem:[#allocation5 + $0xfc0] sm:$0xff]  ;;  %v165_v24 = vld [vmem:[#allocation5 + $0x130] sm:$0xff] }
 0x14b   :  { %v8366_v54 = vcombine.low %v631_v40, %v635_v41  ;;  %v7899_v31 = vcombine.high %v161_v23, %v165_v24  ;;  %v169_v32 = vld [vmem:[#allocation5 + $0x150] sm:$0xff] }
 0x14d   :  { %3385 = vmatpush1.bf16.msra.mxu0 %v8302_v46  ;;  %3557 = vmatpush1.bf16.msra.mxu1 %v8304_v47  ;;  %v8360_v46 = vcombine.low %v624_v33, %v628_v34  ;;  %v8367_v47 = vcombine.high %v631_v40, %v635_v41  ;;  %v173_v33 = vld [vmem:[#allocation5 + $0x170] sm:$0xff]  ;;  %v170_v34 = vld [vmem:[#allocation5 + $0x158] sm:$0xff] }
 0x14e   :  { %3386 = vmatprep.subr.bf16.mxu0 %v8311_v48  ;;  %3558 = vmatprep.subr.bf16.mxu1 %v8313_v49  ;;  %v8369_v48 = vcombine.high %v632_v42, %v636_v44  ;;  %v129_v49 = vld [vmem:[#allocation5 + $0x10] sm:$0xff] }
 0x14f   :  { %v177_v41 = vld [vmem:[#allocation5 + $0x190] sm:$0xff] }
 0x151   :  { %3387 = vmatpush1.bf16.msra.mxu0 %v8310_v55  ;;  %3559 = vmatpush1.bf16.msra.mxu1 %v8312_v56  ;;  %v109_v55 = vld [vmem:[#allocation3 + $0x30] sm:$0xff] }
 0x152   :  { %3388 = vmatprep.subr.bf16.mxu0 %v8319_v57  ;;  %3560 = vmatprep.subr.bf16.mxu1 %v8321_v59  ;;  %v117_v56 = vld [vmem:[#allocation3 + $0x70] sm:$0xff]  ;;  %v8368_v57 = vcombine.low %v632_v42, %v636_v44  ;;  %v7867_v59 = vcombine.high %v129_v49, %v133_v50  ;;  %v178_v44 = vld [vmem:[#allocation5 + $0x198] sm:$0xff] }
 0x153   :  { %v9315_v63 = vpack.c.bf16 %v117_v56, %v109_v55  ;;  %v181_v42 = vld [vmem:[#allocation5 + $0x1b0] sm:$0xff] }
 0x154   :  { %v7914_v55 = vcombine.low %v177_v41, %v181_v42 }
 0x155   :  { %3389 = vmatpush1.bf16.msra.mxu0 %v8318_v0  ;;  %3561 = vmatpush1.bf16.msra.mxu1 %v8320_v1  ;;  %v138_v0 = vld [vmem:[#allocation5 + $0x58] sm:$0xff] }
 0x156   :  { %3390 = vmatprep.subr.bf16.mxu0 %v8327_v2  ;;  %3562 = vmatprep.subr.bf16.mxu1 %v8329_v3  ;;  %v142_v1 = vld [vmem:[#allocation5 + $0x78] sm:$0xff]  ;;  %v7866_v2 = vcombine.low %v129_v49, %v133_v50  ;;  %v7868_v3 = vcombine.low %v130_v51, %v134_v52  ;;  %v185_v50 = vld [vmem:[#allocation5 + $0x1d0] sm:$0xff] }
 0x157   :  { %v7877_v5 = vcombine.high %v138_v0, %v142_v1  ;;  %v189_v51 = vld [vmem:[#allocation5 + $0x1f0] sm:$0xff]  ;;  %v186_v52 = vld [vmem:[#allocation5 + $0x1d8] sm:$0xff] }
 0x159   :  { %3391 = vmatpush1.bf16.msra.mxu0 %v8326_v8  ;;  %3563 = vmatpush1.bf16.msra.mxu1 %v8328_v9  ;;  %v146_v8 = vld [vmem:[#allocation5 + $0x98] sm:$0xff] }
 0x15a   :  { %3392 = vmatprep.subr.bf16.mxu0 %v8335_v10  ;;  %3564 = vmatprep.subr.bf16.mxu1 %v8337_v11  ;;  %v150_v9 = vld [vmem:[#allocation5 + $0xb8] sm:$0xff]  ;;  %v7874_v10 = vcombine.low %v137_v61, %v141_v62  ;;  %v7876_v11 = vcombine.low %v138_v0, %v142_v1  ;;  %v197_v61 = vld [vmem:[#allocation5 + $0x230] sm:$0xff]  ;;  %v7922_v1 = vcombine.low %v185_v50, %v189_v51 }
 0x15b   :  { %v7885_v13 = vcombine.high %v146_v8, %v150_v9  ;;  %v194_v62 = vld [vmem:[#allocation5 + $0x218] sm:$0xff] }
 0x15c   :  { %v198_v0 = vld [vmem:[#allocation5 + $0x238] sm:$0xff] }
 0x15d   :  { %3393 = vmatpush1.bf16.msra.mxu0 %v8334_v17  ;;  %3565 = vmatpush1.bf16.msra.mxu1 %v8336_v18  ;;  %v154_v17 = vld [vmem:[#allocation5 + $0xd8] sm:$0xff] }
 0x15e   :  { %3394 = vmatprep.subr.bf16.mxu0 %v8343_v19  ;;  %3566 = vmatprep.subr.bf16.mxu1 %v8345_v20  ;;  %v158_v18 = vld [vmem:[#allocation5 + $0xf8] sm:$0xff]  ;;  %v7882_v19 = vcombine.low %v145_v6, %v149_v7  ;;  %v7884_v20 = vcombine.low %v146_v8, %v150_v9  ;;  %v205_v6 = vld [vmem:[#allocation5 + $0x270] sm:$0xff] }
 0x15f   :  { %v7893_v22 = vcombine.high %v154_v17, %v158_v18  ;;  %v202_v7 = vld [vmem:[#allocation5 + $0x258] sm:$0xff] }
 0x160   :  { %v206_v8 = vld [vmem:[#allocation5 + $0x278] sm:$0xff] }
 0x161   :  { %3395 = vmatpush1.bf16.msra.mxu0 %v8342_v26  ;;  %3567 = vmatpush1.bf16.msra.mxu1 %v8344_v28  ;;  %v162_v26 = vld [vmem:[#allocation5 + $0x118] sm:$0xff] }
 0x162   :  { %3396 = vmatprep.subr.bf16.mxu0 %v8351_v29  ;;  %3568 = vmatprep.subr.bf16.mxu1 %v8353_v30  ;;  %v166_v28 = vld [vmem:[#allocation5 + $0x138] sm:$0xff]  ;;  %v7890_v29 = vcombine.low %v153_v14, %v157_v16  ;;  %v7892_v30 = vcombine.low %v154_v17, %v158_v18  ;;  %v213_v14 = vld [vmem:[#allocation5 + $0x2b0] sm:$0xff] }
 0x163   :  { %v210_v16 = vld [vmem:[#allocation5 + $0x298] sm:$0xff] }
 0x164   :  { %v214_v17 = vld [vmem:[#allocation5 + $0x2b8] sm:$0xff] }
 0x165   :  { %3397 = vmatpush1.bf16.msra.mxu0 %v8350_v35  ;;  %3569 = vmatpush1.bf16.msra.mxu1 %v8352_v36  ;;  %v174_v35 = vld [vmem:[#allocation5 + $0x178] sm:$0xff]  ;;  %v7898_v36 = vcombine.low %v161_v23, %v165_v24  ;;  %v221_v23 = vld [vmem:[#allocation5 + $0x2f0] sm:$0xff] }
 0x166   :  { %3398 = vmatprep.subr.bf16.mxu0 %v8359_v38  ;;  %3570 = vmatprep.subr.bf16.mxu1 %v8361_v39  ;;  %v7900_v38 = vcombine.low %v162_v26, %v166_v28  ;;  %v7907_v39 = vcombine.high %v169_v32, %v173_v33  ;;  %v7909_v40 = vcombine.high %v170_v34, %v174_v35  ;;  %v218_v24 = vld [vmem:[#allocation5 + $0x2d8] sm:$0xff] }
 0x169   :  { %3399 = vmatpush1.bf16.msra.mxu0 %v8358_v45  ;;  %3571 = vmatpush1.bf16.msra.mxu1 %v8360_v46  ;;  %v182_v45 = vld [vmem:[#allocation5 + $0x1b8] sm:$0xff]  ;;  %v7906_v46 = vcombine.low %v169_v32, %v173_v33  ;;  %v229_v32 = vld [vmem:[#allocation5 + $0x330] sm:$0xff] }
 0x16a   :  { %3400 = vmatprep.subr.bf16.mxu0 %v8367_v47  ;;  %3572 = vmatprep.subr.bf16.mxu1 %v8369_v48  ;;  %v7908_v47 = vcombine.low %v170_v34, %v174_v35  ;;  %v7915_v48 = vcombine.high %v177_v41, %v181_v42  ;;  %v7917_v49 = vcombine.high %v178_v44, %v182_v45  ;;  %v226_v33 = vld [vmem:[#allocation5 + $0x318] sm:$0xff]  ;;  %v237_v41 = vld [vmem:[#allocation5 + $0x370] sm:$0xff] }
 0x16b   :  { %v7916_v56 = vcombine.low %v178_v44, %v182_v45  ;;  %v230_v34 = vld [vmem:[#allocation5 + $0x338] sm:$0xff] }
 0x16c   :  { %v234_v42 = vld [vmem:[#allocation5 + $0x358] sm:$0xff] }
 0x16d   :  { %3401 = vmatpush1.bf16.msra.mxu0 %v8366_v54  ;;  %3573 = vmatpush1.bf16.msra.mxu1 %v8368_v57  ;;  %v190_v54 = vld [vmem:[#allocation5 + $0x1f8] sm:$0xff]  ;;  %v7923_v57 = vcombine.high %v185_v50, %v189_v51  ;;  %v245_v50 = vld [vmem:[#allocation5 + $0x3b0] sm:$0xff] }
 0x16e   :  { %3585 = vmatprep.subr.bf16.mxu0 %v7867_v59  ;;  %3757 = vmatprep.subr.bf16.mxu1 %v7869_v60  ;;  %v7925_v59 = vcombine.high %v186_v52, %v190_v54  ;;  %v193_v60 = vld [vmem:[#allocation5 + $0x210] sm:$0xff]  ;;  %v238_v44 = vld [vmem:[#allocation5 + $0x378] sm:$0xff] }
 0x16f   :  { %v7930_v9 = vcombine.low %v193_v60, %v197_v61  ;;  %v242_v51 = vld [vmem:[#allocation5 + $0x398] sm:$0xff] }
 0x170   :  { %3403 = vmatmul.mubr.bf16.vlgmr.msra.gmra.mrb[0].mxu0 %v9315_v63  ;;  %3575 = vmatmul.mubr.bf16.vlgmr.msra.gmra.mrb[0].mxu1 %v9315_v63 }
 0x171   :  { %3586 = vmatpush1.bf16.msra.mxu0 %v7866_v2  ;;  %3758 = vmatpush1.bf16.msra.mxu1 %v7868_v3  ;;  %v7924_v2 = vcombine.low %v186_v52, %v190_v54  ;;  %v7931_v3 = vcombine.high %v193_v60, %v197_v61  ;;  %v246_v52 = vld [vmem:[#allocation5 + $0x3b8] sm:$0xff]  ;;  %v253_v60 = vld [vmem:[#allocation5 + $0x3f0] sm:$0xff] }
 0x172   :  { %3587 = vmatprep.subr.bf16.mxu0 %v7875_v4  ;;  %3759 = vmatprep.subr.bf16.mxu1 %v7877_v5  ;;  %v7933_v4 = vcombine.high %v194_v62, %v198_v0  ;;  %v201_v5 = vld [vmem:[#allocation5 + $0x250] sm:$0xff]  ;;  %v250_v61 = vld [vmem:[#allocation5 + $0x3d8] sm:$0xff] }
 0x173   :  { %3617 = vmatprep.mubr.bf16.mxu0 %v9287_v58  ;;  %3789 = vmatprep.mubr.bf16.mxu1 %v9287_v58  ;;  %v7901_v58 = vcombine.high %v162_v26, %v166_v28  ;;  %v7938_v18 = vcombine.low %v201_v5, %v205_v6  ;;  %v222_v26 = vld [vmem:[#allocation5 + $0x2f8] sm:$0xff] }
 0x175   :  { %3588 = vmatpush1.bf16.msra.mxu0 %v7874_v10  ;;  %3760 = vmatpush1.bf16.msra.mxu1 %v7876_v11  ;;  %v7932_v10 = vcombine.low %v194_v62, %v198_v0  ;;  %v7939_v11 = vcombine.high %v201_v5, %v205_v6  ;;  %v254_v62 = vld [vmem:[#allocation5 + $0x3f8] sm:$0xff]  ;;  %v261_v5 = vld [vmem:[#allocation5 + $0x430] sm:$0xff] }
 0x176   :  { %3589 = vmatprep.subr.bf16.mxu0 %v7883_v12  ;;  %3761 = vmatprep.subr.bf16.mxu1 %v7885_v13  ;;  %v7941_v12 = vcombine.high %v202_v7, %v206_v8  ;;  %v209_v13 = vld [vmem:[#allocation5 + $0x290] sm:$0xff]  ;;  %v258_v6 = vld [vmem:[#allocation5 + $0x418] sm:$0xff] }
 0x177   :  { %v7946_v28 = vcombine.low %v209_v13, %v213_v14 }
 0x179   :  { %3590 = vmatpush1.bf16.msra.mxu0 %v7882_v19  ;;  %3762 = vmatpush1.bf16.msra.mxu1 %v7884_v20  ;;  %v7940_v19 = vcombine.low %v202_v7, %v206_v8  ;;  %v7947_v20 = vcombine.high %v209_v13, %v213_v14  ;;  %v262_v7 = vld [vmem:[#allocation5 + $0x438] sm:$0xff]  ;;  %v269_v13 = vld [vmem:[#allocation5 + $0x470] sm:$0xff] }
 0x17a   :  { %3591 = vmatprep.subr.bf16.mxu0 %v7891_v21  ;;  %3763 = vmatprep.subr.bf16.mxu1 %v7893_v22  ;;  %v7949_v21 = vcombine.high %v210_v16, %v214_v17  ;;  %v217_v22 = vld [vmem:[#allocation5 + $0x2d0] sm:$0xff]  ;;  %v266_v14 = vld [vmem:[#allocation5 + $0x458] sm:$0xff] }
 0x17b   :  { %v7954_v35 = vcombine.low %v217_v22, %v221_v23 }
 0x17d   :  { %3592 = vmatpush1.bf16.msra.mxu0 %v7890_v29  ;;  %3764 = vmatpush1.bf16.msra.mxu1 %v7892_v30  ;;  %v7948_v29 = vcombine.low %v210_v16, %v214_v17  ;;  %v7955_v30 = vcombine.high %v217_v22, %v221_v23  ;;  %v270_v16 = vld [vmem:[#allocation5 + $0x478] sm:$0xff]  ;;  %v277_v22 = vld [vmem:[#allocation5 + $0x4b0] sm:$0xff] }
 0x17e   :  { %3593 = vmatprep.subr.bf16.mxu0 %v7899_v31  ;;  %3765 = vmatprep.subr.bf16.mxu1 %v7901_v58  ;;  %v7957_v31 = vcombine.high %v218_v24, %v222_v26  ;;  %v225_v58 = vld [vmem:[#allocation5 + $0x310] sm:$0xff]  ;;  %v274_v23 = vld [vmem:[#allocation5 + $0x498] sm:$0xff] }
 0x17f   :  { %v7962_v45 = vcombine.low %v225_v58, %v229_v32 }
 0x181   :  { %3594 = vmatpush1.bf16.msra.mxu0 %v7898_v36  ;;  %3766 = vmatpush1.bf16.msra.mxu1 %v7900_v38  ;;  %v7956_v36 = vcombine.low %v218_v24, %v222_v26  ;;  %v7963_v38 = vcombine.high %v225_v58, %v229_v32  ;;  %v278_v24 = vld [vmem:[#allocation5 + $0x4b8] sm:$0xff]  ;;  %v285_v58 = vld [vmem:[#allocation5 + $0x4f0] sm:$0xff] }
 0x182   :  { %3595 = vmatprep.subr.bf16.mxu0 %v7907_v39  ;;  %3767 = vmatprep.subr.bf16.mxu1 %v7909_v40  ;;  %v7965_v39 = vcombine.high %v226_v33, %v230_v34  ;;  %v233_v40 = vld [vmem:[#allocation5 + $0x350] sm:$0xff]  ;;  %v282_v32 = vld [vmem:[#allocation5 + $0x4d8] sm:$0xff] }
 0x183   :  { %v7970_v54 = vcombine.low %v233_v40, %v237_v41 }
 0x185   :  { %3596 = vmatpush1.bf16.msra.mxu0 %v7906_v46  ;;  %3768 = vmatpush1.bf16.msra.mxu1 %v7908_v47  ;;  %v7964_v46 = vcombine.low %v226_v33, %v230_v34  ;;  %v7971_v47 = vcombine.high %v233_v40, %v237_v41  ;;  %v286_v33 = vld [vmem:[#allocation5 + $0x4f8] sm:$0xff] }
 0x186   :  { %3597 = vmatprep.subr.bf16.mxu0 %v7915_v48  ;;  %3769 = vmatprep.subr.bf16.mxu1 %v7917_v49  ;;  %v7973_v48 = vcombine.high %v234_v42, %v238_v44  ;;  %v241_v49 = vld [vmem:[#allocation5 + $0x390] sm:$0xff]  ;;  %v290_v40 = vld [vmem:[#allocation5 + $0x518] sm:$0xff] }
 0x187   :  { %v7978_v0 = vcombine.low %v241_v49, %v245_v50  ;;  %v294_v41 = vld [vmem:[#allocation5 + $0x538] sm:$0xff] }
 0x189   :  { %3598 = vmatpush1.bf16.msra.mxu0 %v7914_v55  ;;  %3770 = vmatpush1.bf16.msra.mxu1 %v7916_v56  ;;  %v7972_v55 = vcombine.low %v234_v42, %v238_v44  ;;  %v7979_v56 = vcombine.high %v241_v49, %v245_v50  ;;  %v8020_v44 = vcombine.low %v282_v32, %v286_v33  ;;  %v302_v49 = vld [vmem:[#allocation5 + $0x578] sm:$0xff] }
 0x18a   :  { %3599 = vmatprep.subr.bf16.mxu0 %v7923_v57  ;;  %3771 = vmatprep.subr.bf16.mxu1 %v7925_v59  ;;  %v7981_v57 = vcombine.high %v242_v51, %v246_v52  ;;  %v249_v59 = vld [vmem:[#allocation5 + $0x3d0] sm:$0xff] }
 0x18b   :  { %v7986_v8 = vcombine.low %v249_v59, %v253_v60 }
 0x18d   :  { %3600 = vmatpush1.bf16.msra.mxu0 %v7922_v1  ;;  %3772 = vmatpush1.bf16.msra.mxu1 %v7924_v2  ;;  %v7980_v1 = vcombine.low %v242_v51, %v246_v52  ;;  %v7987_v2 = vcombine.high %v249_v59, %v253_v60  ;;  %v8028_v51 = vcombine.low %v290_v40, %v294_v41  ;;  %v310_v59 = vld [vmem:[#allocation5 + $0x5b8] sm:$0xff] }
 0x18e   :  { %3601 = vmatprep.subr.bf16.mxu0 %v7931_v3  ;;  %3773 = vmatprep.subr.bf16.mxu1 %v7933_v4  ;;  %v7989_v3 = vcombine.high %v250_v61, %v254_v62  ;;  %v257_v4 = vld [vmem:[#allocation5 + $0x410] sm:$0xff] }
 0x18f   :  { %v7994_v17 = vcombine.low %v257_v4, %v261_v5 }
 0x191   :  { %3602 = vmatpush1.bf16.msra.mxu0 %v7930_v9  ;;  %3774 = vmatpush1.bf16.msra.mxu1 %v7932_v10  ;;  %v7988_v9 = vcombine.low %v250_v61, %v254_v62  ;;  %v7995_v10 = vcombine.high %v257_v4, %v261_v5  ;;  %v318_v4 = vld [vmem:[#allocation5 + $0x5f8] sm:$0xff] }
 0x192   :  { %3603 = vmatprep.subr.bf16.mxu0 %v7939_v11  ;;  %3775 = vmatprep.subr.bf16.mxu1 %v7941_v12  ;;  %v7997_v11 = vcombine.high %v258_v6, %v262_v7  ;;  %v265_v12 = vld [vmem:[#allocation5 + $0x450] sm:$0xff] }
 0x193   :  { %v8002_v26 = vcombine.low %v265_v12, %v269_v13 }
 0x195   :  { %3604 = vmatpush1.bf16.msra.mxu0 %v7938_v18  ;;  %3776 = vmatpush1.bf16.msra.mxu1 %v7940_v19  ;;  %v7996_v18 = vcombine.low %v258_v6, %v262_v7  ;;  %v8003_v19 = vcombine.high %v265_v12, %v269_v13  ;;  %v326_v12 = vld [vmem:[#allocation5 + $0x638] sm:$0xff] }
 0x196   :  { %3605 = vmatprep.subr.bf16.mxu0 %v7947_v20  ;;  %3777 = vmatprep.subr.bf16.mxu1 %v7949_v21  ;;  %v8005_v20 = vcombine.high %v266_v14, %v270_v16  ;;  %v273_v21 = vld [vmem:[#allocation5 + $0x490] sm:$0xff] }
 0x197   :  { %v8010_v34 = vcombine.low %v273_v21, %v277_v22 }
 0x199   :  { %3606 = vmatpush1.bf16.msra.mxu0 %v7946_v28  ;;  %3778 = vmatpush1.bf16.msra.mxu1 %v7948_v29  ;;  %v8004_v28 = vcombine.low %v266_v14, %v270_v16  ;;  %v8011_v29 = vcombine.high %v273_v21, %v277_v22  ;;  %v334_v21 = vld [vmem:[#allocation5 + $0x678] sm:$0xff] }
 0x19a   :  { %3607 = vmatprep.subr.bf16.mxu0 %v7955_v30  ;;  %3779 = vmatprep.subr.bf16.mxu1 %v7957_v31  ;;  %v8013_v30 = vcombine.high %v274_v23, %v278_v24  ;;  %v281_v31 = vld [vmem:[#allocation5 + $0x4d0] sm:$0xff] }
 0x19b   :  { %v8018_v42 = vcombine.low %v281_v31, %v285_v58 }
 0x19d   :  { %3608 = vmatpush1.bf16.msra.mxu0 %v7954_v35  ;;  %3780 = vmatpush1.bf16.msra.mxu1 %v7956_v36  ;;  %v8019_v35 = vcombine.high %v281_v31, %v285_v58  ;;  %v8021_v36 = vcombine.high %v282_v32, %v286_v33  ;;  %v342_v31 = vld [vmem:[#allocation5 + $0x6b8] sm:$0xff] }
 0x19e   :  { %3609 = vmatprep.subr.bf16.mxu0 %v7963_v38  ;;  %3781 = vmatprep.subr.bf16.mxu1 %v7965_v39  ;;  %v289_v38 = vld [vmem:[#allocation5 + $0x510] sm:$0xff] }
 0x19f   :  { %v293_v39 = vld [vmem:[#allocation5 + $0x530] sm:$0xff] }
 0x1a0   :  { %v8026_v50 = vcombine.low %v289_v38, %v293_v39 }
 0x1a1   :  { %3610 = vmatpush1.bf16.msra.mxu0 %v7962_v45  ;;  %3782 = vmatpush1.bf16.msra.mxu1 %v7964_v46  ;;  %v8027_v45 = vcombine.high %v289_v38, %v293_v39  ;;  %v297_v46 = vld [vmem:[#allocation5 + $0x550] sm:$0xff]  ;;  %v350_v38 = vld [vmem:[#allocation5 + $0x6f8] sm:$0xff] }
 0x1a2   :  { %3611 = vmatprep.subr.bf16.mxu0 %v7971_v47  ;;  %3783 = vmatprep.subr.bf16.mxu1 %v7973_v48  ;;  %v301_v47 = vld [vmem:[#allocation5 + $0x570] sm:$0xff]  ;;  %v298_v48 = vld [vmem:[#allocation5 + $0x558] sm:$0xff] }
 0x1a3   :  { %v8035_v52 = vcombine.high %v297_v46, %v301_v47  ;;  %v8034_v60 = vcombine.low %v297_v46, %v301_v47  ;;  %v8036_v61 = vcombine.low %v298_v48, %v302_v49  ;;  %v358_v46 = vld [vmem:[#allocation5 + $0x738] sm:$0xff] }
 0x1a5   :  { %3612 = vmatpush1.bf16.msra.mxu0 %v7970_v54  ;;  %3784 = vmatpush1.bf16.msra.mxu1 %v7972_v55  ;;  %v8037_v54 = vcombine.high %v298_v48, %v302_v49  ;;  %v305_v55 = vld [vmem:[#allocation5 + $0x590] sm:$0xff] }
 0x1a6   :  { %3613 = vmatprep.subr.bf16.mxu0 %v7979_v56  ;;  %3785 = vmatprep.subr.bf16.mxu1 %v7981_v57  ;;  %v309_v56 = vld [vmem:[#allocation5 + $0x5b0] sm:$0xff]  ;;  %v306_v57 = vld [vmem:[#allocation5 + $0x598] sm:$0xff] }
 0x1a7   :  { %v8043_v62 = vcombine.high %v305_v55, %v309_v56  ;;  %v8042_v5 = vcombine.low %v305_v55, %v309_v56  ;;  %v8044_v6 = vcombine.low %v306_v57, %v310_v59  ;;  %v366_v55 = vld [vmem:[#allocation5 + $0x778] sm:$0xff] }
 0x1a9   :  { %3614 = vmatpush1.bf16.msra.mxu0 %v7978_v0  ;;  %3786 = vmatpush1.bf16.msra.mxu1 %v7980_v1  ;;  %v8045_v0 = vcombine.high %v306_v57, %v310_v59  ;;  %v313_v1 = vld [vmem:[#allocation5 + $0x5d0] sm:$0xff] }
 0x1aa   :  { %3615 = vmatprep.subr.bf16.mxu0 %v7987_v2  ;;  %3787 = vmatprep.subr.bf16.mxu1 %v7989_v3  ;;  %v317_v2 = vld [vmem:[#allocation5 + $0x5f0] sm:$0xff]  ;;  %v314_v3 = vld [vmem:[#allocation5 + $0x5d8] sm:$0xff] }
 0x1ab   :  { %v8051_v7 = vcombine.high %v313_v1, %v317_v2  ;;  %v8050_v13 = vcombine.low %v313_v1, %v317_v2  ;;  %v8052_v14 = vcombine.low %v314_v3, %v318_v4  ;;  %v374_v1 = vld [vmem:[#allocation5 + $0x7b8] sm:$0xff] }
 0x1ad   :  { %3616 = vmatpush1.bf16.msra.mxu0 %v7986_v8  ;;  %3788 = vmatpush1.bf16.msra.mxu1 %v7988_v9  ;;  %v8053_v8 = vcombine.high %v314_v3, %v318_v4  ;;  %v321_v9 = vld [vmem:[#allocation5 + $0x610] sm:$0xff] }
 0x1ae   :  { %3628 = vmatprep.subr.bf16.mxu0 %v7995_v10  ;;  %3800 = vmatprep.subr.bf16.mxu1 %v7997_v11  ;;  %v325_v10 = vld [vmem:[#allocation5 + $0x630] sm:$0xff]  ;;  %v322_v11 = vld [vmem:[#allocation5 + $0x618] sm:$0xff] }
 0x1af   :  { %v8059_v16 = vcombine.high %v321_v9, %v325_v10  ;;  %v8058_v22 = vcombine.low %v321_v9, %v325_v10  ;;  %v382_v9 = vld [vmem:[#allocation5 + $0x7f8] sm:$0xff] }
 0x1b0   :  { %3618 = vmatmul.mubr.bf16.vlgmr.msra.gmra.mrb[4].mxu0 %v9291_v15  ;;  %3790 = vmatmul.mubr.bf16.vlgmr.msra.gmra.mrb[4].mxu1 %v9291_v15  ;;  %v8012_v15 = vcombine.low %v274_v23, %v278_v24  ;;  %v8060_v23 = vcombine.low %v322_v11, %v326_v12 }
 0x1b1   :  { %3629 = vmatpush1.bf16.msra.mxu0 %v7994_v17  ;;  %3801 = vmatpush1.bf16.msra.mxu1 %v7996_v18  ;;  %v8061_v17 = vcombine.high %v322_v11, %v326_v12  ;;  %v329_v18 = vld [vmem:[#allocation5 + $0x650] sm:$0xff] }
 0x1b2   :  { %3630 = vmatprep.subr.bf16.mxu0 %v8003_v19  ;;  %3802 = vmatprep.subr.bf16.mxu1 %v8005_v20  ;;  %v333_v19 = vld [vmem:[#allocation5 + $0x670] sm:$0xff]  ;;  %v330_v20 = vld [vmem:[#allocation5 + $0x658] sm:$0xff] }
 0x1b3   :  { %3660 = vmatprep.mubr.bf16.mxu0 %v9293_v25  ;;  %3832 = vmatprep.mubr.bf16.mxu1 %v9293_v25  ;;  %v8029_v25 = vcombine.high %v290_v40, %v294_v41  ;;  %v8067_v24 = vcombine.high %v329_v18, %v333_v19  ;;  %v8066_v58 = vcombine.low %v329_v18, %v333_v19  ;;  %v390_v18 = vld [vmem:[#allocation5 + $0x838] sm:$0xff] }
 0x1b4   :  { %v8068_v32 = vcombine.low %v330_v20, %v334_v21 }
 0x1b5   :  { %3631 = vmatpush1.bf16.msra.mxu0 %v8002_v26  ;;  %3803 = vmatpush1.bf16.msra.mxu1 %v8004_v28  ;;  %v8069_v26 = vcombine.high %v330_v20, %v334_v21  ;;  %v337_v28 = vld [vmem:[#allocation5 + $0x690] sm:$0xff] }
 0x1b6   :  { %3632 = vmatprep.subr.bf16.mxu0 %v8011_v29  ;;  %3804 = vmatprep.subr.bf16.mxu1 %v8013_v30  ;;  %v341_v29 = vld [vmem:[#allocation5 + $0x6b0] sm:$0xff]  ;;  %v338_v30 = vld [vmem:[#allocation5 + $0x698] sm:$0xff] }
 0x1b7   :  { %v8075_v33 = vcombine.high %v337_v28, %v341_v29  ;;  %v8074_v39 = vcombine.low %v337_v28, %v341_v29  ;;  %v8076_v40 = vcombine.low %v338_v30, %v342_v31  ;;  %v398_v28 = vld [vmem:[#allocation5 + $0x878] sm:$0xff] }
 0x1b9   :  { %3633 = vmatpush1.bf16.msra.mxu0 %v8010_v34  ;;  %3805 = vmatpush1.bf16.msra.mxu1 %v8012_v15  ;;  %v8077_v34 = vcombine.high %v338_v30, %v342_v31  ;;  %v345_v15 = vld [vmem:[#allocation5 + $0x6d0] sm:$0xff] }
 0x1ba   :  { %3634 = vmatprep.subr.bf16.mxu0 %v8019_v35  ;;  %3806 = vmatprep.subr.bf16.mxu1 %v8021_v36  ;;  %v349_v35 = vld [vmem:[#allocation5 + $0x6f0] sm:$0xff]  ;;  %v346_v36 = vld [vmem:[#allocation5 + $0x6d8] sm:$0xff] }
 0x1bb   :  { %v8083_v41 = vcombine.high %v345_v15, %v349_v35  ;;  %v8082_v47 = vcombine.low %v345_v15, %v349_v35  ;;  %v8084_v48 = vcombine.low %v346_v36, %v350_v38  ;;  %v406_v15 = vld [vmem:[#allocation5 + $0x8b8] sm:$0xff] }
 0x1bd   :  { %3635 = vmatpush1.bf16.msra.mxu0 %v8018_v42  ;;  %3807 = vmatpush1.bf16.msra.mxu1 %v8020_v44  ;;  %v8085_v42 = vcombine.high %v346_v36, %v350_v38  ;;  %v353_v44 = vld [vmem:[#allocation5 + $0x710] sm:$0xff] }
 0x1be   :  { %3636 = vmatprep.subr.bf16.mxu0 %v8027_v45  ;;  %3808 = vmatprep.subr.bf16.mxu1 %v8029_v25  ;;  %v357_v45 = vld [vmem:[#allocation5 + $0x730] sm:$0xff]  ;;  %v354_v25 = vld [vmem:[#allocation5 + $0x718] sm:$0xff] }
 0x1bf   :  { %v8091_v49 = vcombine.high %v353_v44, %v357_v45  ;;  %v8090_v56 = vcombine.low %v353_v44, %v357_v45  ;;  %v8092_v57 = vcombine.low %v354_v25, %v358_v46  ;;  %v414_v44 = vld [vmem:[#allocation5 + $0x8f8] sm:$0xff] }
 0x1c1   :  { %3637 = vmatpush1.bf16.msra.mxu0 %v8026_v50  ;;  %3809 = vmatpush1.bf16.msra.mxu1 %v8028_v51  ;;  %v8093_v50 = vcombine.high %v354_v25, %v358_v46  ;;  %v361_v51 = vld [vmem:[#allocation5 + $0x750] sm:$0xff] }
 0x1c2   :  { %3638 = vmatprep.subr.bf16.mxu0 %v8035_v52  ;;  %3810 = vmatprep.subr.bf16.mxu1 %v8037_v54  ;;  %v365_v52 = vld [vmem:[#allocation5 + $0x770] sm:$0xff]  ;;  %v362_v54 = vld [vmem:[#allocation5 + $0x758] sm:$0xff] }
 0x1c3   :  { %v8099_v59 = vcombine.high %v361_v51, %v365_v52  ;;  %v8098_v2 = vcombine.low %v361_v51, %v365_v52  ;;  %v8100_v3 = vcombine.low %v362_v54, %v366_v55 }
 0x1c5   :  { %3639 = vmatpush1.bf16.msra.mxu0 %v8034_v60  ;;  %3811 = vmatpush1.bf16.msra.mxu1 %v8036_v61  ;;  %v8101_v60 = vcombine.high %v362_v54, %v366_v55  ;;  %v369_v61 = vld [vmem:[#allocation5 + $0x790] sm:$0xff] }
 0x1c6   :  { %3640 = vmatprep.subr.bf16.mxu0 %v8043_v62  ;;  %3812 = vmatprep.subr.bf16.mxu1 %v8045_v0  ;;  %v373_v62 = vld [vmem:[#allocation5 + $0x7b0] sm:$0xff]  ;;  %v370_v0 = vld [vmem:[#allocation5 + $0x798] sm:$0xff] }
 0x1c7   :  { %v8107_v4 = vcombine.high %v369_v61, %v373_v62  ;;  %v8106_v10 = vcombine.low %v369_v61, %v373_v62  ;;  %v8108_v11 = vcombine.low %v370_v0, %v374_v1  ;;  %v425_v55 = vld [vmem:[#allocation5 + $0x950] sm:$0xff] }
 0x1c9   :  { %3641 = vmatpush1.bf16.msra.mxu0 %v8042_v5  ;;  %3813 = vmatpush1.bf16.msra.mxu1 %v8044_v6  ;;  %v8109_v5 = vcombine.high %v370_v0, %v374_v1  ;;  %v377_v6 = vld [vmem:[#allocation5 + $0x7d0] sm:$0xff] }
 0x1ca   :  { %3642 = vmatprep.subr.bf16.mxu0 %v8051_v7  ;;  %3814 = vmatprep.subr.bf16.mxu1 %v8053_v8  ;;  %v381_v7 = vld [vmem:[#allocation5 + $0x7f0] sm:$0xff]  ;;  %v378_v8 = vld [vmem:[#allocation5 + $0x7d8] sm:$0xff] }
 0x1cb   :  { %v8115_v12 = vcombine.high %v377_v6, %v381_v7  ;;  %v8114_v19 = vcombine.low %v377_v6, %v381_v7  ;;  %v8116_v20 = vcombine.low %v378_v8, %v382_v9  ;;  %v433_v1 = vld [vmem:[#allocation5 + $0x990] sm:$0xff] }
 0x1cd   :  { %3643 = vmatpush1.bf16.msra.mxu0 %v8050_v13  ;;  %3815 = vmatpush1.bf16.msra.mxu1 %v8052_v14  ;;  %v8117_v13 = vcombine.high %v378_v8, %v382_v9  ;;  %v385_v14 = vld [vmem:[#allocation5 + $0x810] sm:$0xff] }
 0x1ce   :  { %3644 = vmatprep.subr.bf16.mxu0 %v8059_v16  ;;  %3816 = vmatprep.subr.bf16.mxu1 %v8061_v17  ;;  %v389_v16 = vld [vmem:[#allocation5 + $0x830] sm:$0xff]  ;;  %v386_v17 = vld [vmem:[#allocation5 + $0x818] sm:$0xff] }
 0x1cf   :  { %v8123_v21 = vcombine.high %v385_v14, %v389_v16  ;;  %v8122_v29 = vcombine.low %v385_v14, %v389_v16  ;;  %v8124_v30 = vcombine.low %v386_v17, %v390_v18  ;;  %v441_v9 = vld [vmem:[#allocation5 + $0x9d0] sm:$0xff] }
 0x1d1   :  { %3645 = vmatpush1.bf16.msra.mxu0 %v8058_v22  ;;  %3817 = vmatpush1.bf16.msra.mxu1 %v8060_v23  ;;  %v8125_v22 = vcombine.high %v386_v17, %v390_v18  ;;  %v393_v23 = vld [vmem:[#allocation5 + $0x850] sm:$0xff] }
 0x1d2   :  { %3646 = vmatprep.subr.bf16.mxu0 %v8067_v24  ;;  %3818 = vmatprep.subr.bf16.mxu1 %v8069_v26  ;;  %v397_v24 = vld [vmem:[#allocation5 + $0x870] sm:$0xff]  ;;  %v394_v26 = vld [vmem:[#allocation5 + $0x858] sm:$0xff] }
 0x1d3   :  { %v8131_v31 = vcombine.high %v393_v23, %v397_v24  ;;  %v8130_v35 = vcombine.low %v393_v23, %v397_v24  ;;  %v8132_v36 = vcombine.low %v394_v26, %v398_v28  ;;  %v449_v18 = vld [vmem:[#allocation5 + $0xa10] sm:$0xff] }
 0x1d5   :  { %3647 = vmatpush1.bf16.msra.mxu0 %v8066_v58  ;;  %3819 = vmatpush1.bf16.msra.mxu1 %v8068_v32  ;;  %v8133_v58 = vcombine.high %v394_v26, %v398_v28  ;;  %v401_v32 = vld [vmem:[#allocation5 + $0x890] sm:$0xff] }
 0x1d6   :  { %3648 = vmatprep.subr.bf16.mxu0 %v8075_v33  ;;  %3820 = vmatprep.subr.bf16.mxu1 %v8077_v34  ;;  %v405_v33 = vld [vmem:[#allocation5 + $0x8b0] sm:$0xff]  ;;  %v402_v34 = vld [vmem:[#allocation5 + $0x898] sm:$0xff] }
 0x1d7   :  { %v8139_v38 = vcombine.high %v401_v32, %v405_v33  ;;  %v8138_v45 = vcombine.low %v401_v32, %v405_v33  ;;  %v457_v28 = vld [vmem:[#allocation5 + $0xa50] sm:$0xff] }
 0x1d9   :  { %3649 = vmatpush1.bf16.msra.mxu0 %v8074_v39  ;;  %3821 = vmatpush1.bf16.msra.mxu1 %v8076_v40  ;;  %v8141_v39 = vcombine.high %v402_v34, %v406_v15  ;;  %v409_v40 = vld [vmem:[#allocation5 + $0x8d0] sm:$0xff] }
 0x1da   :  { %3650 = vmatprep.subr.bf16.mxu0 %v8083_v41  ;;  %3822 = vmatprep.subr.bf16.mxu1 %v8085_v42  ;;  %v413_v41 = vld [vmem:[#allocation5 + $0x8f0] sm:$0xff]  ;;  %v410_v42 = vld [vmem:[#allocation5 + $0x8d8] sm:$0xff] }
 0x1db   :  { %v8147_v25 = vcombine.high %v409_v40, %v413_v41  ;;  %v8149_v46 = vcombine.high %v410_v42, %v414_v44  ;;  %v8146_v51 = vcombine.low %v409_v40, %v413_v41  ;;  %v8148_v52 = vcombine.low %v410_v42, %v414_v44  ;;  %v473_v44 = vld [vmem:[#allocation5 + $0xad0] sm:$0xff] }
 0x1dd   :  { %3651 = vmatpush1.bf16.msra.mxu0 %v8082_v47  ;;  %3823 = vmatpush1.bf16.msra.mxu1 %v8084_v48  ;;  %v417_v47 = vld [vmem:[#allocation5 + $0x910] sm:$0xff] }
 0x1de   :  { %3652 = vmatprep.subr.bf16.mxu0 %v8091_v49  ;;  %3824 = vmatprep.subr.bf16.mxu1 %v8093_v50  ;;  %v421_v48 = vld [vmem:[#allocation5 + $0x930] sm:$0xff]  ;;  %v418_v49 = vld [vmem:[#allocation5 + $0x918] sm:$0xff] }
 0x1df   :  { %v422_v50 = vld [vmem:[#allocation5 + $0x938] sm:$0xff]  ;;  %v8155_v54 = vcombine.high %v417_v47, %v421_v48 }
 0x1e0   :  { %v8156_v61 = vcombine.low %v418_v49, %v422_v50 }
 0x1e1   :  { %3653 = vmatpush1.bf16.msra.mxu0 %v8090_v56  ;;  %3825 = vmatpush1.bf16.msra.mxu1 %v8092_v57  ;;  %v429_v56 = vld [vmem:[#allocation5 + $0x970] sm:$0xff]  ;;  %v426_v57 = vld [vmem:[#allocation5 + $0x958] sm:$0xff] }
 0x1e2   :  { %3654 = vmatprep.subr.bf16.mxu0 %v8099_v59  ;;  %3826 = vmatprep.subr.bf16.mxu1 %v8101_v60  ;;  %v430_v59 = vld [vmem:[#allocation5 + $0x978] sm:$0xff]  ;;  %v8154_v60 = vcombine.low %v417_v47, %v421_v48  ;;  %v8163_v62 = vcombine.high %v425_v55, %v429_v56 }
 0x1e3   :  { %v8165_v0 = vcombine.high %v426_v57, %v430_v59  ;;  %v8164_v6 = vcombine.low %v426_v57, %v430_v59  ;;  %v489_v59 = vld [vmem:[#allocation5 + $0xb50] sm:$0xff] }
 0x1e5   :  { %3655 = vmatpush1.bf16.msra.mxu0 %v8098_v2  ;;  %3827 = vmatpush1.bf16.msra.mxu1 %v8100_v3  ;;  %v437_v2 = vld [vmem:[#allocation5 + $0x9b0] sm:$0xff]  ;;  %v434_v3 = vld [vmem:[#allocation5 + $0x998] sm:$0xff] }
 0x1e6   :  { %3656 = vmatprep.subr.bf16.mxu0 %v8107_v4  ;;  %3828 = vmatprep.subr.bf16.mxu1 %v8109_v5  ;;  %v438_v4 = vld [vmem:[#allocation5 + $0x9b8] sm:$0xff]  ;;  %v8162_v5 = vcombine.low %v425_v55, %v429_v56  ;;  %v8171_v7 = vcombine.high %v433_v1, %v437_v2 }
 0x1e7   :  { %v8173_v8 = vcombine.high %v434_v3, %v438_v4  ;;  %v8172_v14 = vcombine.low %v434_v3, %v438_v4  ;;  %v497_v4 = vld [vmem:[#allocation5 + $0xb90] sm:$0xff] }
 0x1e9   :  { %3657 = vmatpush1.bf16.msra.mxu0 %v8106_v10  ;;  %3829 = vmatpush1.bf16.msra.mxu1 %v8108_v11  ;;  %v445_v10 = vld [vmem:[#allocation5 + $0x9f0] sm:$0xff]  ;;  %v442_v11 = vld [vmem:[#allocation5 + $0x9d8] sm:$0xff] }
 0x1ea   :  { %3658 = vmatprep.subr.bf16.mxu0 %v8115_v12  ;;  %3830 = vmatprep.subr.bf16.mxu1 %v8117_v13  ;;  %v446_v12 = vld [vmem:[#allocation5 + $0x9f8] sm:$0xff]  ;;  %v8170_v13 = vcombine.low %v433_v1, %v437_v2  ;;  %v8179_v16 = vcombine.high %v441_v9, %v445_v10 }
 0x1eb   :  { %v8181_v17 = vcombine.high %v442_v11, %v446_v12  ;;  %v8180_v23 = vcombine.low %v442_v11, %v446_v12  ;;  %v505_v12 = vld [vmem:[#allocation5 + $0xbd0] sm:$0xff] }
 0x1ed   :  { %3659 = vmatpush1.bf16.msra.mxu0 %v8114_v19  ;;  %3831 = vmatpush1.bf16.msra.mxu1 %v8116_v20  ;;  %v453_v19 = vld [vmem:[#allocation5 + $0xa30] sm:$0xff]  ;;  %v450_v20 = vld [vmem:[#allocation5 + $0xa18] sm:$0xff] }
 0x1ee   :  { %3671 = vmatprep.subr.bf16.mxu0 %v8123_v21  ;;  %3843 = vmatprep.subr.bf16.mxu1 %v8125_v22  ;;  %v454_v21 = vld [vmem:[#allocation5 + $0xa38] sm:$0xff]  ;;  %v8178_v22 = vcombine.low %v441_v9, %v445_v10  ;;  %v8187_v24 = vcombine.high %v449_v18, %v453_v19 }
 0x1ef   :  { %v8189_v26 = vcombine.high %v450_v20, %v454_v21  ;;  %v8188_v32 = vcombine.low %v450_v20, %v454_v21  ;;  %v513_v21 = vld [vmem:[#allocation5 + $0xc10] sm:$0xff] }
 0x1f0   :  { %3661 = vmatmul.mubr.bf16.vlgmr.msra.gmra.mrb[4].mxu0 %v9299_v27  ;;  %3833 = vmatmul.mubr.bf16.vlgmr.msra.gmra.mrb[4].mxu1 %v9299_v27  ;;  %v8140_v27 = vcombine.low %v402_v34, %v406_v15  ;;  %v465_v15 = vld [vmem:[#allocation5 + $0xa90] sm:$0xff] }
 0x1f1   :  { %3672 = vmatpush1.bf16.msra.mxu0 %v8122_v29  ;;  %3844 = vmatpush1.bf16.msra.mxu1 %v8124_v30  ;;  %v461_v29 = vld [vmem:[#allocation5 + $0xa70] sm:$0xff]  ;;  %v458_v30 = vld [vmem:[#allocation5 + $0xa58] sm:$0xff] }
 0x1f2   :  { %3673 = vmatprep.subr.bf16.mxu0 %v8131_v31  ;;  %3845 = vmatprep.subr.bf16.mxu1 %v8133_v58  ;;  %v462_v31 = vld [vmem:[#allocation5 + $0xa78] sm:$0xff]  ;;  %v8186_v58 = vcombine.low %v449_v18, %v453_v19  ;;  %v8195_v33 = vcombine.high %v457_v28, %v461_v29 }
 0x1f3   :  { %3703 = vmatprep.mubr.bf16.mxu0 %v9301_v37  ;;  %3875 = vmatprep.mubr.bf16.mxu1 %v9301_v37  ;;  %v8157_v37 = vcombine.high %v418_v49, %v422_v50  ;;  %v8197_v34 = vcombine.high %v458_v30, %v462_v31  ;;  %v8196_v40 = vcombine.low %v458_v30, %v462_v31  ;;  %v481_v50 = vld [vmem:[#allocation5 + $0xb10] sm:$0xff] }
 0x1f4   :  { %v521_v31 = vld [vmem:[#allocation5 + $0xc50] sm:$0xff] }
 0x1f5   :  { %3674 = vmatpush1.bf16.msra.mxu0 %v8130_v35  ;;  %3846 = vmatpush1.bf16.msra.mxu1 %v8132_v36  ;;  %v469_v35 = vld [vmem:[#allocation5 + $0xab0] sm:$0xff]  ;;  %v466_v36 = vld [vmem:[#allocation5 + $0xa98] sm:$0xff] }
 0x1f6   :  { %3675 = vmatprep.subr.bf16.mxu0 %v8139_v38  ;;  %3847 = vmatprep.subr.bf16.mxu1 %v8141_v39  ;;  %v470_v38 = vld [vmem:[#allocation5 + $0xab8] sm:$0xff]  ;;  %v8194_v39 = vcombine.low %v457_v28, %v461_v29  ;;  %v8203_v41 = vcombine.high %v465_v15, %v469_v35 }
 0x1f7   :  { %v8205_v42 = vcombine.high %v466_v36, %v470_v38  ;;  %v8204_v47 = vcombine.low %v466_v36, %v470_v38  ;;  %v529_v38 = vld [vmem:[#allocation5 + $0xc90] sm:$0xff] }
 0x1f9   :  { %3676 = vmatpush1.bf16.msra.mxu0 %v8138_v45  ;;  %3848 = vmatpush1.bf16.msra.mxu1 %v8140_v27  ;;  %v477_v45 = vld [vmem:[#allocation5 + $0xaf0] sm:$0xff]  ;;  %v474_v27 = vld [vmem:[#allocation5 + $0xad8] sm:$0xff] }
 0x1fa   :  { %3677 = vmatprep.subr.bf16.mxu0 %v8147_v25  ;;  %3849 = vmatprep.subr.bf16.mxu1 %v8149_v46  ;;  %v478_v25 = vld [vmem:[#allocation5 + $0xaf8] sm:$0xff]  ;;  %v8202_v46 = vcombine.low %v465_v15, %v469_v35  ;;  %v8211_v48 = vcombine.high %v473_v44, %v477_v45 }
 0x1fb   :  { %v8213_v49 = vcombine.high %v474_v27, %v478_v25  ;;  %v8212_v55 = vcombine.low %v474_v27, %v478_v25  ;;  %v537_v25 = vld [vmem:[#allocation5 + $0xcd0] sm:$0xff] }
 0x1fd   :  { %3678 = vmatpush1.bf16.msra.mxu0 %v8146_v51  ;;  %3850 = vmatpush1.bf16.msra.mxu1 %v8148_v52  ;;  %v485_v51 = vld [vmem:[#allocation5 + $0xb30] sm:$0xff]  ;;  %v482_v52 = vld [vmem:[#allocation5 + $0xb18] sm:$0xff] }
 0x1fe   :  { %3679 = vmatprep.subr.bf16.mxu0 %v8155_v54  ;;  %3851 = vmatprep.subr.bf16.mxu1 %v8157_v37  ;;  %v486_v54 = vld [vmem:[#allocation5 + $0xb38] sm:$0xff]  ;;  %v8210_v37 = vcombine.low %v473_v44, %v477_v45  ;;  %v8219_v56 = vcombine.high %v481_v50, %v485_v51 }
 0x1ff   :  { %v8221_v57 = vcombine.high %v482_v52, %v486_v54  ;;  %v8220_v1 = vcombine.low %v482_v52, %v486_v54  ;;  %v545_v54 = vld [vmem:[#allocation5 + $0xd10] sm:$0xff] }
 0x201   :  { %3680 = vmatpush1.bf16.msra.mxu0 %v8154_v60  ;;  %3852 = vmatpush1.bf16.msra.mxu1 %v8156_v61  ;;  %v493_v60 = vld [vmem:[#allocation5 + $0xb70] sm:$0xff]  ;;  %v490_v61 = vld [vmem:[#allocation5 + $0xb58] sm:$0xff] }
 0x202   :  { %3681 = vmatprep.subr.bf16.mxu0 %v8163_v62  ;;  %3853 = vmatprep.subr.bf16.mxu1 %v8165_v0  ;;  %v494_v62 = vld [vmem:[#allocation5 + $0xb78] sm:$0xff]  ;;  %v8218_v0 = vcombine.low %v481_v50, %v485_v51  ;;  %v8227_v2 = vcombine.high %v489_v59, %v493_v60 }
 0x203   :  { %v8229_v3 = vcombine.high %v490_v61, %v494_v62  ;;  %v8228_v9 = vcombine.low %v490_v61, %v494_v62  ;;  %v553_v62 = vld [vmem:[#allocation5 + $0xd50] sm:$0xff] }
 0x205   :  { %3682 = vmatpush1.bf16.msra.mxu0 %v8162_v5  ;;  %3854 = vmatpush1.bf16.msra.mxu1 %v8164_v6  ;;  %v501_v5 = vld [vmem:[#allocation5 + $0xbb0] sm:$0xff]  ;;  %v498_v6 = vld [vmem:[#allocation5 + $0xb98] sm:$0xff] }
 0x206   :  { %3683 = vmatprep.subr.bf16.mxu0 %v8171_v7  ;;  %3855 = vmatprep.subr.bf16.mxu1 %v8173_v8  ;;  %v502_v7 = vld [vmem:[#allocation5 + $0xbb8] sm:$0xff]  ;;  %v8226_v8 = vcombine.low %v489_v59, %v493_v60  ;;  %v8235_v10 = vcombine.high %v497_v4, %v501_v5 }
 0x207   :  { %v8237_v11 = vcombine.high %v498_v6, %v502_v7  ;;  %v8236_v18 = vcombine.low %v498_v6, %v502_v7 }
 0x209   :  { %3684 = vmatpush1.bf16.msra.mxu0 %v8170_v13  ;;  %3856 = vmatpush1.bf16.msra.mxu1 %v8172_v14  ;;  %v509_v13 = vld [vmem:[#allocation5 + $0xbf0] sm:$0xff]  ;;  %v506_v14 = vld [vmem:[#allocation5 + $0xbd8] sm:$0xff] }
 0x20a   :  { %3685 = vmatprep.subr.bf16.mxu0 %v8179_v16  ;;  %3857 = vmatprep.subr.bf16.mxu1 %v8181_v17  ;;  %v510_v16 = vld [vmem:[#allocation5 + $0xbf8] sm:$0xff]  ;;  %v8234_v17 = vcombine.low %v497_v4, %v501_v5  ;;  %v8243_v19 = vcombine.high %v505_v12, %v509_v13  ;;  %v639_v5 = vld [vmem:[#allocation7] sm:$0xff] }
 0x20b   :  { %v8245_v20 = vcombine.high %v506_v14, %v510_v16  ;;  %v8244_v28 = vcombine.low %v506_v14, %v510_v16  ;;  %v562_v16 = vld [vmem:[#allocation5 + $0xd98] sm:$0xff] }
 0x20d   :  { %3686 = vmatpush1.bf16.msra.mxu0 %v8178_v22  ;;  %3858 = vmatpush1.bf16.msra.mxu1 %v8180_v23  ;;  %v517_v22 = vld [vmem:[#allocation5 + $0xc30] sm:$0xff]  ;;  %v514_v23 = vld [vmem:[#allocation5 + $0xc18] sm:$0xff] }
 0x20e   :  { %3687 = vmatprep.subr.bf16.mxu0 %v8187_v24  ;;  %3859 = vmatprep.subr.bf16.mxu1 %v8189_v26  ;;  %v518_v24 = vld [vmem:[#allocation5 + $0xc38] sm:$0xff]  ;;  %v8242_v26 = vcombine.low %v505_v12, %v509_v13  ;;  %v8251_v29 = vcombine.high %v513_v21, %v517_v22  ;;  %v561_v12 = vld [vmem:[#allocation5 + $0xd90] sm:$0xff] }
 0x20f   :  { %v8253_v30 = vcombine.high %v514_v23, %v518_v24  ;;  %v8252_v15 = vcombine.low %v514_v23, %v518_v24  ;;  %v565_v13 = vld [vmem:[#allocation5 + $0xdb0] sm:$0xff] }
 0x210   :  { %v8299_v23 = vcombine.high %v561_v12, %v565_v13 }
 0x211   :  { %3688 = vmatpush1.bf16.msra.mxu0 %v8186_v58  ;;  %3860 = vmatpush1.bf16.msra.mxu1 %v8188_v32  ;;  %v525_v58 = vld [vmem:[#allocation5 + $0xc70] sm:$0xff]  ;;  %v522_v32 = vld [vmem:[#allocation5 + $0xc58] sm:$0xff] }
 0x212   :  { %3689 = vmatprep.subr.bf16.mxu0 %v8195_v33  ;;  %3861 = vmatprep.subr.bf16.mxu1 %v8197_v34  ;;  %v526_v33 = vld [vmem:[#allocation5 + $0xc78] sm:$0xff]  ;;  %v8250_v34 = vcombine.low %v513_v21, %v517_v22  ;;  %v8259_v35 = vcombine.high %v521_v31, %v525_v58 }
 0x213   :  { %v8261_v36 = vcombine.high %v522_v32, %v526_v33  ;;  %v8260_v44 = vcombine.low %v522_v32, %v526_v33  ;;  %v570_v32 = vld [vmem:[#allocation5 + $0xdd8] sm:$0xff] }
 0x214   :  { %v574_v33 = vld [vmem:[#allocation5 + $0xdf8] sm:$0xff] }
 0x215   :  { %3690 = vmatpush1.bf16.msra.mxu0 %v8194_v39  ;;  %3862 = vmatpush1.bf16.msra.mxu1 %v8196_v40  ;;  %v533_v39 = vld [vmem:[#allocation5 + $0xcb0] sm:$0xff]  ;;  %v530_v40 = vld [vmem:[#allocation5 + $0xc98] sm:$0xff] }
 0x216   :  { %3691 = vmatprep.subr.bf16.mxu0 %v8203_v41  ;;  %3863 = vmatprep.subr.bf16.mxu1 %v8205_v42  ;;  %v534_v41 = vld [vmem:[#allocation5 + $0xcb8] sm:$0xff]  ;;  %v8258_v42 = vcombine.low %v521_v31, %v525_v58  ;;  %v8267_v45 = vcombine.high %v529_v38, %v533_v39  ;;  %v8266_v50 = vcombine.low %v529_v38, %v533_v39 }
 0x217   :  { %v8269_v27 = vcombine.high %v530_v40, %v534_v41  ;;  %v8298_v38 = vcombine.low %v561_v12, %v565_v13  ;;  %v586_v12 = vld [vmem:[#allocation5 + $0xe58] sm:$0xff] }
 0x218   :  { %v590_v13 = vld [vmem:[#allocation5 + $0xe78] sm:$0xff] }
 0x219   :  { %3692 = vmatpush1.bf16.msra.mxu0 %v8202_v46  ;;  %3864 = vmatpush1.bf16.msra.mxu1 %v8204_v47  ;;  %v541_v46 = vld [vmem:[#allocation5 + $0xcf0] sm:$0xff]  ;;  %v538_v47 = vld [vmem:[#allocation5 + $0xcd8] sm:$0xff] }
 0x21a   :  { %3693 = vmatprep.subr.bf16.mxu0 %v8211_v48  ;;  %3865 = vmatprep.subr.bf16.mxu1 %v8213_v49  ;;  %v542_v48 = vld [vmem:[#allocation5 + $0xcf8] sm:$0xff]  ;;  %v641_v49 = vlaneseq  ;;  %v8275_v51 = vcombine.high %v537_v25, %v541_v46  ;;  %v8274_v59 = vcombine.low %v537_v25, %v541_v46 }
 0x21b   :  { %v8277_v52 = vcombine.high %v538_v47, %v542_v48  ;;  %v8276_v60 = vcombine.low %v538_v47, %v542_v48  ;;  %v8309_v48 = vcombine.high %v570_v32, %v574_v33 }
 0x21d   :  { %3694 = vmatpush1.bf16.msra.mxu0 %v8210_v37  ;;  %3866 = vmatpush1.bf16.msra.mxu1 %v8212_v55  ;;  %v549_v37 = vld [vmem:[#allocation5 + $0xd30] sm:$0xff]  ;;  %v546_v55 = vld [vmem:[#allocation5 + $0xd18] sm:$0xff] }
 0x21e   :  { %3695 = vmatprep.subr.bf16.mxu0 %v8219_v56  ;;  %3867 = vmatprep.subr.bf16.mxu1 %v8221_v57  ;;  %v550_v56 = vld [vmem:[#allocation5 + $0xd38] sm:$0xff]  ;;  %v9333_v57 = vshrl.u32 %v641_v49, 7  ;;  %v8282_v4 = vcombine.low %v545_v54, %v549_v37  ;;  %v577_v49 = vld [vmem:[#allocation5 + $0xe10] sm:$0xff] }
 0x21f   :  { %v8285_v61 = vcombine.high %v546_v55, %v550_v56 }
 0x220   :  { %v9339_v6 = vsub.s32 2, %v9333_v57  ;;  %v9342_v7 = vsub.s32 1, %v9333_v57 }
 0x221   :  { %3696 = vmatpush1.bf16.msra.mxu0 %v8218_v0  ;;  %3868 = vmatpush1.bf16.msra.mxu1 %v8220_v1  ;;  %v557_v0 = vld [vmem:[#allocation5 + $0xd70] sm:$0xff]  ;;  %v9336_v1 = vsub.s32 0, %v9333_v57 }
 0x222   :  { %3697 = vmatprep.subr.bf16.mxu0 %v8227_v2  ;;  %3869 = vmatprep.subr.bf16.mxu1 %v8229_v3  ;;  %v554_v2 = vld [vmem:[#allocation5 + $0xd58] sm:$0xff] }
 0x223   :  { %v558_v3 = vld [vmem:[#allocation5 + $0xd78] sm:$0xff]  ;;  %v644_v14 = vrot.slane %v639_v5, %v9336_v1 }
 0x224   :  { %v8292_v22 = vcombine.low %v554_v2, %v558_v3 }
 0x225   :  { %3698 = vmatpush1.bf16.msra.mxu0 %v8226_v8  ;;  %3870 = vmatpush1.bf16.msra.mxu1 %v8228_v9  ;;  %v8284_v8 = vcombine.low %v546_v55, %v550_v56  ;;  %v9345_v9 = vsub.s32 3, %v9333_v57  ;;  %v582_v55 = vld [vmem:[#allocation5 + $0xe38] sm:$0xff] }
 0x226   :  { %3699 = vmatprep.subr.bf16.mxu0 %v8235_v10  ;;  %3871 = vmatprep.subr.bf16.mxu1 %v8237_v11  ;;  %v8291_v10 = vcombine.high %v553_v62, %v557_v0  ;;  %v8293_v11 = vcombine.high %v554_v2, %v558_v3 }
 0x227   :  { %v656_v21 = vrot.slane %v639_v5, %v9345_v9 }
 0x229   :  { %3700 = vmatpush1.bf16.msra.mxu0 %v8234_v17  ;;  %3872 = vmatpush1.bf16.msra.mxu1 %v8236_v18  ;;  %v566_v17 = vld [vmem:[#allocation5 + $0xdb8] sm:$0xff]  ;;  %v652_v18 = vrot.slane %v639_v5, %v9339_v6 }
 0x22a   :  { %3701 = vmatprep.subr.bf16.mxu0 %v8243_v19  ;;  %3873 = vmatprep.subr.bf16.mxu1 %v8245_v20  ;;  %v648_v19 = vrot.slane %v639_v5, %v9342_v7  ;;  %v8290_v20 = vcombine.low %v553_v62, %v557_v0  ;;  %v8300_v39 = vcombine.low %v562_v16, %v566_v17 }
 0x22d   :  { %3702 = vmatpush1.bf16.msra.mxu0 %v8242_v26  ;;  %3874 = vmatpush1.bf16.msra.mxu1 %v8244_v28  ;;  %v8301_v26 = vcombine.high %v562_v16, %v566_v17  ;;  %v569_v28 = vld [vmem:[#allocation5 + $0xdd0] sm:$0xff] }
 0x22e   :  { %3714 = vmatprep.subr.bf16.mxu0 %v8251_v29  ;;  %3886 = vmatprep.subr.bf16.mxu1 %v8253_v30  ;;  %v573_v29 = vld [vmem:[#allocation5 + $0xdf0] sm:$0xff] }
 0x22f   :  { %v8306_v47 = vcombine.low %v569_v28, %v573_v29 }
 0x230   :  { %3704 = vmatmul.mubr.bf16.vlgmr.msra.gmra.mrb[4].mxu0 %v9307_v43  ;;  %3876 = vmatmul.mubr.bf16.vlgmr.msra.gmra.mrb[4].mxu1 %v9307_v43  ;;  %v8268_v43 = vcombine.low %v530_v40, %v534_v41 }
 0x231   :  { %3715 = vmatpush1.bf16.msra.mxu0 %v8250_v34  ;;  %3887 = vmatpush1.bf16.msra.mxu1 %v8252_v15 }
 0x232   :  { %3716 = vmatprep.subr.bf16.mxu0 %v8259_v35  ;;  %3888 = vmatprep.subr.bf16.mxu1 %v8261_v36 }
 0x233   :  { %3746 = vmatprep.mubr.bf16.mxu0 %v9309_v53  ;;  %3918 = vmatprep.mubr.bf16.mxu1 %v9309_v53  ;;  %v8283_v53 = vcombine.high %v545_v54, %v549_v37  ;;  %v8308_v54 = vcombine.low %v570_v32, %v574_v33  ;;  %v578_v37 = vld [vmem:[#allocation5 + $0xe18] sm:$0xff] }
 0x234   :  { %v8317_v5 = vcombine.high %v578_v37, %v582_v55  ;;  %v8316_v16 = vcombine.low %v578_v37, %v582_v55 }
 0x235   :  { %3717 = vmatpush1.bf16.msra.mxu0 %v8258_v42  ;;  %3889 = vmatpush1.bf16.msra.mxu1 %v8260_v44 }
 0x236   :  { %3718 = vmatprep.subr.bf16.mxu0 %v8267_v45  ;;  %3890 = vmatprep.subr.bf16.mxu1 %v8269_v27  ;;  %v8307_v45 = vcombine.high %v569_v28, %v573_v29  ;;  %v601_v29 = vld [vmem:[#allocation5 + $0xed0] sm:$0xff] }
 0x239   :  { %3719 = vmatpush1.bf16.msra.mxu0 %v8266_v50  ;;  %3891 = vmatpush1.bf16.msra.mxu1 %v8268_v43  ;;  %v581_v50 = vld [vmem:[#allocation5 + $0xe30] sm:$0xff] }
 0x23a   :  { %3720 = vmatprep.subr.bf16.mxu0 %v8275_v51  ;;  %3892 = vmatprep.subr.bf16.mxu1 %v8277_v52  ;;  %v8315_v2 = vcombine.high %v577_v49, %v581_v50 }
 0x23d   :  { %3721 = vmatpush1.bf16.msra.mxu0 %v8274_v59  ;;  %3893 = vmatpush1.bf16.msra.mxu1 %v8276_v60 }
 0x23e   :  { %3722 = vmatprep.subr.bf16.mxu0 %v8283_v53  ;;  %3894 = vmatprep.subr.bf16.mxu1 %v8285_v61 }
 0x241   :  { %3723 = vmatpush1.bf16.msra.mxu0 %v8282_v4  ;;  %3895 = vmatpush1.bf16.msra.mxu1 %v8284_v8  ;;  %v585_v8 = vld [vmem:[#allocation5 + $0xe50] sm:$0xff] }
 0x242   :  { %3724 = vmatprep.subr.bf16.mxu0 %v8291_v10  ;;  %3896 = vmatprep.subr.bf16.mxu1 %v8293_v11  ;;  %v589_v10 = vld [vmem:[#allocation5 + $0xe70] sm:$0xff] }
 0x243   :  { %v3404_v24 = vpop.f32.mrb[0].mxu0  ;;  %v3576_v31 = vpop.f32.mrb[0].mxu1  ;;  %v8323_v17 = vcombine.high %v585_v8, %v589_v10 }
 0x244   :  { %v8886_v30 = vadd.f32 %v3404_v24, %v644_v14  ;;  %v3406_v58 = vpop.f32.mrb[1].mxu0  ;;  %v8890_v34 = vadd.f32 %v3576_v31, %v652_v18  ;;  %v3578_v35 = vpop.f32.mrb[1].mxu1  ;;  %v8324_v24 = vcombine.low %v586_v12, %v590_v13  ;;  %v602_v31 = vld [vmem:[#allocation5 + $0xed8] sm:$0xff] }
 0x245   :  { %v8887_v15 = vadd.f32 %v3406_v58, %v648_v19  ;;  %v3408_v36 = vpop.f32.mrb[2].mxu0  ;;  %3725 = vmatpush1.bf16.msra.mxu0 %v8290_v20  ;;  %v8891_v40 = vadd.f32 %v3578_v35, %v656_v21  ;;  %v3580_v42 = vpop.f32.mrb[2].mxu1  ;;  %3897 = vmatpush1.bf16.msra.mxu1 %v8292_v22  ;;  %v597_v20 = vld [vmem:[#allocation5 + $0xeb0] sm:$0xff]  ;;  %v598_v22 = vld [vmem:[#allocation5 + $0xeb8] sm:$0xff] }
 0x246   :  { %v8888_v41 = vadd.f32 %v3408_v36, %v644_v14  ;;  %v3410_v44 = vpop.f32.mrb[3].mxu0  ;;  %3726 = vmatprep.subr.bf16.mxu0 %v8299_v23  ;;  %v8892_v27 = vadd.f32 %v3580_v42, %v652_v18  ;;  %v3582_v46 = vpop.f32.mrb[3].mxu1  ;;  %3898 = vmatprep.subr.bf16.mxu1 %v8301_v26  ;;  %v3929_v43 = vmax.f32 %v8886_v30, 0.0  ;;  %v3931_v56 = vmax.f32 %v8890_v34, 0.0  ;;  %v605_v30 = vld [vmem:[#allocation5 + $0xef0] sm:$0xff]  ;;  %v606_v58 = vld [vmem:[#allocation5 + $0xef8] sm:$0xff] }
 0x247   :  { %v8889_v25 = vadd.f32 %v3410_v44, %v648_v19  ;;  %v8893_v52 = vadd.f32 %v3582_v46, %v656_v21  ;;  %v3930_v59 = vmax.f32 %v8887_v15, 0.0  ;;  %v3932_v61 = vmax.f32 %v8891_v40, 0.0  ;;  %v593_v19 = vld [vmem:[#allocation5 + $0xe90] sm:$0xff]  ;;  %v594_v21 = vld [vmem:[#allocation5 + $0xe98] sm:$0xff] }
 0x248   :  { %v3937_v51 = vmax.f32 %v8888_v41, 0.0  ;;  %v3939_v60 = vmax.f32 %v8892_v27, 0.0  ;;  %v8314_v14 = vcombine.low %v577_v49, %v581_v50  ;;  %v8325_v18 = vcombine.high %v586_v12, %v590_v13  ;;  %v609_v35 = vld [vmem:[#allocation5 + $0xf10] sm:$0xff]  ;;  %v622_v46 = vld [vmem:[#allocation5 + $0xf78] sm:$0xff]  ;;  %v3953_v12 = vld [vmem:[#allocation8] sm:$0xff] }
 0x249   :  { %v3938_v53 = vmax.f32 %v8889_v25, 0.0  ;;  %3727 = vmatpush1.bf16.msra.mxu0 %v8298_v38  ;;  %v3940_v0 = vmax.f32 %v8893_v52, 0.0  ;;  %3899 = vmatpush1.bf16.msra.mxu1 %v8300_v39  ;;  %v8322_v23 = vcombine.low %v585_v8, %v589_v10  ;;  %v8331_v26 = vcombine.high %v593_v19, %v597_v20  ;;  %v613_v36 = vld [vmem:[#allocation5 + $0xf30] sm:$0xff]  ;;  %v610_v38 = vld [vmem:[#allocation5 + $0xf18] sm:$0xff]  ;;  %v3957_v13 = vld [vmem:[#allocation8 + $0x20] sm:$0xff] }
 0x24a   :  { %v9351_v62 = vpack.c.bf16 %v3937_v51, %v3929_v43  ;;  %3728 = vmatprep.subr.bf16.mxu0 %v8307_v45  ;;  %v9353_v3 = vpack.c.bf16 %v3939_v60, %v3931_v56  ;;  %3900 = vmatprep.subr.bf16.mxu1 %v8309_v48  ;;  %v8333_v28 = vcombine.high %v594_v21, %v598_v22  ;;  %v614_v39 = vld [vmem:[#allocation5 + $0xf38] sm:$0xff]  ;;  %v617_v45 = vld [vmem:[#allocation5 + $0xf50] sm:$0xff] }
 0x24b   :  { %v9355_v4 = vpack.c.bf16 %v3938_v53, %v3930_v59  ;;  %v9357_v11 = vpack.c.bf16 %v3940_v0, %v3932_v61  ;;  %v8330_v32 = vcombine.low %v593_v19, %v597_v20  ;;  %v8332_v33 = vcombine.low %v594_v21, %v598_v22  ;;  %v621_v27 = vld [vmem:[#allocation5 + $0xf70] sm:$0xff]  ;;  %v618_v25 = vld [vmem:[#allocation5 + $0xf58] sm:$0xff]  ;;  %v3961_v21 = vld [vmem:[#allocation8 + $0x40] sm:$0xff] }
 0x24c   :  { %v8339_v34 = vcombine.high %v601_v29, %v605_v30  ;;  %v8341_v15 = vcombine.high %v602_v31, %v606_v58  ;;  %v8338_v40 = vcombine.low %v601_v29, %v605_v30  ;;  %v8340_v41 = vcombine.low %v602_v31, %v606_v58  ;;  %v625_v43 = vld [vmem:[#allocation5 + $0xf90] sm:$0xff]  ;;  %v626_v52 = vld [vmem:[#allocation5 + $0xf98] sm:$0xff]  ;;  %v3965_v22 = vld [vmem:[#allocation8 + $0x60] sm:$0xff] }
 0x24d   :  { %3729 = vmatpush1.bf16.msra.mxu0 %v8306_v47  ;;  %3901 = vmatpush1.bf16.msra.mxu1 %v8308_v54  ;;  %v8347_v42 = vcombine.high %v609_v35, %v613_v36  ;;  %v8349_v44 = vcombine.high %v610_v38, %v614_v39  ;;  %v8346_v47 = vcombine.low %v609_v35, %v613_v36  ;;  %v629_v51 = vld [vmem:[#allocation5 + $0xfb0] sm:$0xff]  ;;  %v630_v54 = vld [vmem:[#allocation5 + $0xfb8] sm:$0xff]  ;;  %v3969_v30 = vld [vmem:[#allocation8 + $0x80] sm:$0xff] }
 0x24e   :  { %3730 = vmatprep.subr.bf16.mxu0 %v8315_v2  ;;  %3902 = vmatprep.subr.bf16.mxu1 %v8317_v5  ;;  %v8348_v48 = vcombine.low %v610_v38, %v614_v39  ;;  %v8355_v49 = vcombine.high %v617_v45, %v621_v27  ;;  %v8357_v50 = vcombine.high %v618_v25, %v622_v46  ;;  %v633_v60 = vld [vmem:[#allocation5 + $0xfd0] sm:$0xff]  ;;  %v634_v61 = vld [vmem:[#allocation5 + $0xfd8] sm:$0xff]  ;;  %v3973_v31 = vld [vmem:[#allocation8 + $0xa0] sm:$0xff] }
 0x24f   :  { %v8354_v37 = vcombine.low %v617_v45, %v621_v27  ;;  %v8356_v55 = vcombine.low %v618_v25, %v622_v46  ;;  %v8363_v56 = vcombine.high %v625_v43, %v629_v51  ;;  %v8365_v59 = vcombine.high %v626_v52, %v630_v54  ;;  %v637_v53 = vld [vmem:[#allocation5 + $0xff0] sm:$0xff]  ;;  %v638_v0 = vld [vmem:[#allocation5 + $0xff8] sm:$0xff]  ;;  %v3977_v38 = vld [vmem:[#allocation8 + $0xc0] sm:$0xff] }
 0x250   :  { %v8362_v2 = vcombine.low %v625_v43, %v629_v51  ;;  %v8364_v5 = vcombine.low %v626_v52, %v630_v54  ;;  %v8371_v8 = vcombine.high %v633_v60, %v637_v53  ;;  %v8373_v10 = vcombine.high %v634_v61, %v638_v0  ;;  %v3981_v39 = vld [vmem:[#allocation8 + $0xe0] sm:$0xff]  ;;  %v3986_v46 = vld [vmem:[#allocation8 + $0x108] sm:$0xff] }
 0x251   :  { %3731 = vmatpush1.bf16.msra.mxu0 %v8314_v14  ;;  %3903 = vmatpush1.bf16.msra.mxu1 %v8316_v16  ;;  %v3954_v14 = vld [vmem:[#allocation8 + $0x8] sm:$0xff]  ;;  %v8375_v19 = vcombine.high %v3953_v12, %v3957_v13  ;;  %v8383_v29 = vcombine.high %v3961_v21, %v3965_v22  ;;  %v8391_v35 = vcombine.high %v3969_v30, %v3973_v31  ;;  %v3985_v27 = vld [vmem:[#allocation8 + $0x100] sm:$0xff] }
 0x252   :  { %3732 = vmatprep.subr.bf16.mxu0 %v8323_v17  ;;  %3904 = vmatprep.subr.bf16.mxu1 %v8325_v18  ;;  %v3958_v16 = vld [vmem:[#allocation8 + $0x28] sm:$0xff]  ;;  %v8370_v17 = vcombine.low %v633_v60, %v637_v53  ;;  %v8372_v18 = vcombine.low %v634_v61, %v638_v0  ;;  %v3989_v25 = vld [vmem:[#allocation8 + $0x120] sm:$0xff] }
 0x253   :  { %v8377_v20 = vcombine.high %v3954_v14, %v3958_v16  ;;  %v3993_v51 = vld [vmem:[#allocation8 + $0x140] sm:$0xff]  ;;  %v3994_v54 = vld [vmem:[#allocation8 + $0x148] sm:$0xff] }
 0x254   :  { %v3997_v52 = vld [vmem:[#allocation8 + $0x160] sm:$0xff]  ;;  %v4002_v0 = vld [vmem:[#allocation8 + $0x188] sm:$0xff] }
 0x255   :  { %3733 = vmatpush1.bf16.msra.mxu0 %v8322_v23  ;;  %3905 = vmatpush1.bf16.msra.mxu1 %v8324_v24  ;;  %v8374_v23 = vcombine.low %v3953_v12, %v3957_v13  ;;  %v3962_v24 = vld [vmem:[#allocation8 + $0x48] sm:$0xff]  ;;  %v4001_v53 = vld [vmem:[#allocation8 + $0x180] sm:$0xff] }
 0x256   :  { %3734 = vmatprep.subr.bf16.mxu0 %v8331_v26  ;;  %3906 = vmatprep.subr.bf16.mxu1 %v8333_v28  ;;  %v3966_v26 = vld [vmem:[#allocation8 + $0x68] sm:$0xff]  ;;  %v8376_v28 = vcombine.low %v3954_v14, %v3958_v16  ;;  %v4005_v61 = vld [vmem:[#allocation8 + $0x1a0] sm:$0xff] }
 0x257   :  { %v8385_v58 = vcombine.high %v3962_v24, %v3966_v26  ;;  %v4009_v13 = vld [vmem:[#allocation8 + $0x1c0] sm:$0xff]  ;;  %v4010_v16 = vld [vmem:[#allocation8 + $0x1c8] sm:$0xff] }
 0x258   :  { %v4013_v14 = vld [vmem:[#allocation8 + $0x1e0] sm:$0xff] }
 0x259   :  { %3735 = vmatpush1.bf16.msra.mxu0 %v8330_v32  ;;  %3907 = vmatpush1.bf16.msra.mxu1 %v8332_v33  ;;  %v3970_v32 = vld [vmem:[#allocation8 + $0x88] sm:$0xff] }
 0x25a   :  { %3736 = vmatprep.subr.bf16.mxu0 %v8339_v34  ;;  %3908 = vmatprep.subr.bf16.mxu1 %v8341_v15  ;;  %v3974_v33 = vld [vmem:[#allocation8 + $0xa8] sm:$0xff]  ;;  %v8382_v34 = vcombine.low %v3961_v21, %v3965_v22  ;;  %v8384_v15 = vcombine.low %v3962_v24, %v3966_v26  ;;  %v4017_v22 = vld [vmem:[#allocation8 + $0x200] sm:$0xff] }
 0x25b   :  { %v8393_v36 = vcombine.high %v3970_v32, %v3974_v33  ;;  %v4018_v24 = vld [vmem:[#allocation8 + $0x208] sm:$0xff] }
 0x25c   :  { %v4022_v26 = vld [vmem:[#allocation8 + $0x228] sm:$0xff] }
 0x25d   :  { %3737 = vmatpush1.bf16.msra.mxu0 %v8338_v40  ;;  %3909 = vmatpush1.bf16.msra.mxu1 %v8340_v41  ;;  %v3978_v40 = vld [vmem:[#allocation8 + $0xc8] sm:$0xff] }
 0x25e   :  { %3738 = vmatprep.subr.bf16.mxu0 %v8347_v42  ;;  %3910 = vmatprep.subr.bf16.mxu1 %v8349_v44  ;;  %v3982_v41 = vld [vmem:[#allocation8 + $0xe8] sm:$0xff]  ;;  %v8390_v42 = vcombine.low %v3969_v30, %v3973_v31  ;;  %v8399_v44 = vcombine.high %v3977_v38, %v3981_v39  ;;  %v8441_v31 = vcombine.high %v4018_v24, %v4022_v26 }
 0x25f   :  { %v8401_v45 = vcombine.high %v3978_v40, %v3982_v41 }
 0x261   :  { %3739 = vmatpush1.bf16.msra.mxu0 %v8346_v47  ;;  %3911 = vmatpush1.bf16.msra.mxu1 %v8348_v48  ;;  %v3990_v47 = vld [vmem:[#allocation8 + $0x128] sm:$0xff]  ;;  %v8398_v48 = vcombine.low %v3977_v38, %v3981_v39  ;;  %v4033_v39 = vld [vmem:[#allocation8 + $0x280] sm:$0xff] }
 0x262   :  { %3740 = vmatprep.subr.bf16.mxu0 %v8355_v49  ;;  %3912 = vmatprep.subr.bf16.mxu1 %v8357_v50  ;;  %v8400_v49 = vcombine.low %v3978_v40, %v3982_v41  ;;  %v8407_v50 = vcombine.high %v3985_v27, %v3989_v25  ;;  %v8409_v43 = vcombine.high %v3986_v46, %v3990_v47  ;;  %v4037_v40 = vld [vmem:[#allocation8 + $0x2a0] sm:$0xff]  ;;  %v4034_v41 = vld [vmem:[#allocation8 + $0x288] sm:$0xff] }
 0x265   :  { %3741 = vmatpush1.bf16.msra.mxu0 %v8354_v37  ;;  %3913 = vmatpush1.bf16.msra.mxu1 %v8356_v55  ;;  %v3998_v37 = vld [vmem:[#allocation8 + $0x168] sm:$0xff]  ;;  %v8406_v55 = vcombine.low %v3985_v27, %v3989_v25  ;;  %v4041_v25 = vld [vmem:[#allocation8 + $0x2c0] sm:$0xff] }
 0x266   :  { %3742 = vmatprep.subr.bf16.mxu0 %v8363_v56  ;;  %3914 = vmatprep.subr.bf16.mxu1 %v8365_v59  ;;  %v8408_v56 = vcombine.low %v3986_v46, %v3990_v47  ;;  %v8415_v59 = vcombine.high %v3993_v51, %v3997_v52  ;;  %v8417_v60 = vcombine.high %v3994_v54, %v3998_v37  ;;  %v4045_v46 = vld [vmem:[#allocation8 + $0x2e0] sm:$0xff]  ;;  %v4042_v47 = vld [vmem:[#allocation8 + $0x2c8] sm:$0xff] }
 0x269   :  { %3743 = vmatpush1.bf16.msra.mxu0 %v8362_v2  ;;  %3915 = vmatpush1.bf16.msra.mxu1 %v8364_v5  ;;  %v4006_v2 = vld [vmem:[#allocation8 + $0x1a8] sm:$0xff]  ;;  %v8414_v5 = vcombine.low %v3993_v51, %v3997_v52  ;;  %v4049_v52 = vld [vmem:[#allocation8 + $0x300] sm:$0xff] }
 0x26a   :  { %3744 = vmatprep.subr.bf16.mxu0 %v8371_v8  ;;  %3916 = vmatprep.subr.bf16.mxu1 %v8373_v10  ;;  %v8416_v8 = vcombine.low %v3994_v54, %v3998_v37  ;;  %v8423_v10 = vcombine.high %v4001_v53, %v4005_v61  ;;  %v8425_v12 = vcombine.high %v4002_v0, %v4006_v2  ;;  %v4053_v54 = vld [vmem:[#allocation8 + $0x320] sm:$0xff]  ;;  %v4050_v37 = vld [vmem:[#allocation8 + $0x308] sm:$0xff] }
 0x26d   :  { %3745 = vmatpush1.bf16.msra.mxu0 %v8370_v17  ;;  %3917 = vmatpush1.bf16.msra.mxu1 %v8372_v18  ;;  %v4014_v17 = vld [vmem:[#allocation8 + $0x1e8] sm:$0xff]  ;;  %v8422_v18 = vcombine.low %v4001_v53, %v4005_v61  ;;  %v4057_v61 = vld [vmem:[#allocation8 + $0x340] sm:$0xff] }
 0x26e   :  { %7067 = vmatprep.subr.bf16.mxu0 %v8375_v19  ;;  %7239 = vmatprep.subr.bf16.mxu1 %v8377_v20  ;;  %v8424_v19 = vcombine.low %v4002_v0, %v4006_v2  ;;  %v8431_v20 = vcombine.high %v4009_v13, %v4013_v14  ;;  %v8433_v21 = vcombine.high %v4010_v16, %v4014_v17  ;;  %v4061_v0 = vld [vmem:[#allocation8 + $0x360] sm:$0xff]  ;;  %v4058_v2 = vld [vmem:[#allocation8 + $0x348] sm:$0xff] }
 0x270   :  { %3747 = vmatmul.mubr.bf16.vlgmr.msra.gmra.mrb[4].mxu0 %v9315_v63  ;;  %3919 = vmatmul.mubr.bf16.vlgmr.msra.gmra.mrb[4].mxu1 %v9315_v63  ;;  %v8392_v63 = vcombine.low %v3970_v32, %v3974_v33  ;;  %v4029_v32 = vld [vmem:[#allocation8 + $0x260] sm:$0xff]  ;;  %v4026_v33 = vld [vmem:[#allocation8 + $0x248] sm:$0xff] }
 0x271   :  { %7068 = vmatpush1.bf16.msra.mxu0 %v8374_v23  ;;  %7099 = vmatprep.mubr.bf16.mxu0 %v9355_v4  ;;  %v4021_v23 = vld [vmem:[#allocation8 + $0x220] sm:$0xff] }
 0x272   :  { %7240 = vmatpush1.bf16.msra.mxu1 %v8376_v28  ;;  %7271 = vmatprep.mubr.bf16.mxu1 %v9355_v4  ;;  %v8430_v28 = vcombine.low %v4009_v13, %v4013_v14  ;;  %v8439_v30 = vcombine.high %v4017_v22, %v4021_v23  ;;  %v4065_v14 = vld [vmem:[#allocation8 + $0x380] sm:$0xff] }
 0x273   :  { %7069 = vmatprep.subr.bf16.mxu0 %v8383_v29  ;;  %7241 = vmatprep.subr.bf16.mxu1 %v8385_v58  ;;  %v8432_v29 = vcombine.low %v4010_v16, %v4014_v17  ;;  %v4025_v58 = vld [vmem:[#allocation8 + $0x240] sm:$0xff]  ;;  %v4066_v17 = vld [vmem:[#allocation8 + $0x388] sm:$0xff] }
 0x274   :  { %v4069_v16 = vld [vmem:[#allocation8 + $0x3a0] sm:$0xff] }
 0x275   :  { %7070 = vmatpush1.bf16.msra.mxu0 %v8382_v34  ;;  %v4030_v34 = vld [vmem:[#allocation8 + $0x268] sm:$0xff] }
 0x276   :  { %7242 = vmatpush1.bf16.msra.mxu1 %v8384_v15  ;;  %7071 = vmatprep.subr.bf16.mxu0 %v8391_v35  ;;  %v8438_v15 = vcombine.low %v4017_v22, %v4021_v23  ;;  %v8440_v35 = vcombine.low %v4018_v24, %v4022_v26  ;;  %v8449_v38 = vcombine.high %v4026_v33, %v4030_v34  ;;  %v4073_v23 = vld [vmem:[#allocation8 + $0x3c0] sm:$0xff]  ;;  %v4074_v26 = vld [vmem:[#allocation8 + $0x3c8] sm:$0xff] }
 0x277   :  { %7243 = vmatprep.subr.bf16.mxu1 %v8393_v36  ;;  %v8447_v36 = vcombine.high %v4025_v58, %v4029_v32  ;;  %v4077_v24 = vld [vmem:[#allocation8 + $0x3e0] sm:$0xff] }
 0x279   :  { %7072 = vmatpush1.bf16.msra.mxu0 %v8390_v42  ;;  %v4038_v42 = vld [vmem:[#allocation8 + $0x2a8] sm:$0xff] }
 0x27a   :  { %7244 = vmatpush1.bf16.msra.mxu1 %v8392_v63  ;;  %7073 = vmatprep.subr.bf16.mxu0 %v8399_v44  ;;  %v8446_v63 = vcombine.low %v4025_v58, %v4029_v32  ;;  %v8448_v44 = vcombine.low %v4026_v33, %v4030_v34  ;;  %v8457_v27 = vcombine.high %v4034_v41, %v4038_v42  ;;  %v4081_v32 = vld [vmem:[#allocation8 + $0x400] sm:$0xff]  ;;  %v4082_v34 = vld [vmem:[#allocation8 + $0x408] sm:$0xff] }
 0x27b   :  { %7245 = vmatprep.subr.bf16.mxu1 %v8401_v45  ;;  %v8455_v45 = vcombine.high %v4033_v39, %v4037_v40  ;;  %v4085_v33 = vld [vmem:[#allocation8 + $0x420] sm:$0xff] }
 0x27d   :  { %7074 = vmatpush1.bf16.msra.mxu0 %v8398_v48  ;;  %v4046_v48 = vld [vmem:[#allocation8 + $0x2e8] sm:$0xff] }
 0x27e   :  { %7246 = vmatpush1.bf16.msra.mxu1 %v8400_v49  ;;  %7075 = vmatprep.subr.bf16.mxu0 %v8407_v50  ;;  %v8454_v49 = vcombine.low %v4033_v39, %v4037_v40  ;;  %v8456_v50 = vcombine.low %v4034_v41, %v4038_v42  ;;  %v8465_v51 = vcombine.high %v4042_v47, %v4046_v48  ;;  %v4089_v40 = vld [vmem:[#allocation8 + $0x440] sm:$0xff] }
 0x27f   :  { %7247 = vmatprep.subr.bf16.mxu1 %v8409_v43  ;;  %v8463_v43 = vcombine.high %v4041_v25, %v4045_v46  ;;  %v4093_v41 = vld [vmem:[#allocation8 + $0x460] sm:$0xff]  ;;  %v8502_v42 = vcombine.low %v4081_v32, %v4085_v33 }
 0x281   :  { %7076 = vmatpush1.bf16.msra.mxu0 %v8406_v55  ;;  %v4054_v55 = vld [vmem:[#allocation8 + $0x328] sm:$0xff] }
 0x282   :  { %7248 = vmatpush1.bf16.msra.mxu1 %v8408_v56  ;;  %7077 = vmatprep.subr.bf16.mxu0 %v8415_v59  ;;  %v8462_v56 = vcombine.low %v4041_v25, %v4045_v46  ;;  %v8464_v59 = vcombine.low %v4042_v47, %v4046_v48  ;;  %v8473_v53 = vcombine.high %v4050_v37, %v4054_v55  ;;  %v4097_v25 = vld [vmem:[#allocation8 + $0x480] sm:$0xff]  ;;  %v4098_v48 = vld [vmem:[#allocation8 + $0x488] sm:$0xff] }
 0x283   :  { %7249 = vmatprep.subr.bf16.mxu1 %v8417_v60  ;;  %v8471_v60 = vcombine.high %v4049_v52, %v4053_v54  ;;  %v4101_v46 = vld [vmem:[#allocation8 + $0x4a0] sm:$0xff] }
 0x285   :  { %7078 = vmatpush1.bf16.msra.mxu0 %v8414_v5  ;;  %v4062_v5 = vld [vmem:[#allocation8 + $0x368] sm:$0xff] }
 0x286   :  { %7250 = vmatpush1.bf16.msra.mxu1 %v8416_v8  ;;  %7079 = vmatprep.subr.bf16.mxu0 %v8423_v10  ;;  %v8470_v8 = vcombine.low %v4049_v52, %v4053_v54  ;;  %v8472_v10 = vcombine.low %v4050_v37, %v4054_v55  ;;  %v8481_v13 = vcombine.high %v4058_v2, %v4062_v5  ;;  %v4105_v54 = vld [vmem:[#allocation8 + $0x4c0] sm:$0xff]  ;;  %v4106_v55 = vld [vmem:[#allocation8 + $0x4c8] sm:$0xff] }
 0x287   :  { %7251 = vmatprep.subr.bf16.mxu1 %v8425_v12  ;;  %v8479_v12 = vcombine.high %v4057_v61, %v4061_v0  ;;  %v4109_v37 = vld [vmem:[#allocation8 + $0x4e0] sm:$0xff] }
 0x289   :  { %7080 = vmatpush1.bf16.msra.mxu0 %v8422_v18  ;;  %v4070_v18 = vld [vmem:[#allocation8 + $0x3a8] sm:$0xff] }
 0x28a   :  { %7252 = vmatpush1.bf16.msra.mxu1 %v8424_v19  ;;  %7081 = vmatprep.subr.bf16.mxu0 %v8431_v20  ;;  %v8478_v19 = vcombine.low %v4057_v61, %v4061_v0  ;;  %v8480_v20 = vcombine.low %v4058_v2, %v4062_v5  ;;  %v8489_v22 = vcombine.high %v4066_v17, %v4070_v18  ;;  %v4113_v0 = vld [vmem:[#allocation8 + $0x500] sm:$0xff]  ;;  %v4114_v5 = vld [vmem:[#allocation8 + $0x508] sm:$0xff] }
 0x28b   :  { %7253 = vmatprep.subr.bf16.mxu1 %v8433_v21  ;;  %v8487_v21 = vcombine.high %v4065_v14, %v4069_v16  ;;  %v4117_v2 = vld [vmem:[#allocation8 + $0x520] sm:$0xff] }
 0x28d   :  { %7082 = vmatpush1.bf16.msra.mxu0 %v8430_v28  ;;  %v4078_v28 = vld [vmem:[#allocation8 + $0x3e8] sm:$0xff] }
 0x28e   :  { %7254 = vmatpush1.bf16.msra.mxu1 %v8432_v29  ;;  %7083 = vmatprep.subr.bf16.mxu0 %v8439_v30  ;;  %v8486_v29 = vcombine.low %v4065_v14, %v4069_v16  ;;  %v8488_v30 = vcombine.low %v4066_v17, %v4070_v18  ;;  %v8497_v58 = vcombine.high %v4074_v26, %v4078_v28  ;;  %v4121_v16 = vld [vmem:[#allocation8 + $0x540] sm:$0xff]  ;;  %v4122_v18 = vld [vmem:[#allocation8 + $0x548] sm:$0xff] }
 0x28f   :  { %7255 = vmatprep.subr.bf16.mxu1 %v8441_v31  ;;  %v8495_v31 = vcombine.high %v4073_v23, %v4077_v24  ;;  %v4125_v17 = vld [vmem:[#allocation8 + $0x560] sm:$0xff] }
 0x291   :  { %7084 = vmatpush1.bf16.msra.mxu0 %v8438_v15  ;;  %v4086_v15 = vld [vmem:[#allocation8 + $0x428] sm:$0xff] }
 0x292   :  { %7256 = vmatpush1.bf16.msra.mxu1 %v8440_v35  ;;  %7085 = vmatprep.subr.bf16.mxu0 %v8447_v36  ;;  %v8494_v35 = vcombine.low %v4073_v23, %v4077_v24  ;;  %v8496_v36 = vcombine.low %v4074_v26, %v4078_v28  ;;  %v8505_v39 = vcombine.high %v4082_v34, %v4086_v15  ;;  %v4129_v24 = vld [vmem:[#allocation8 + $0x580] sm:$0xff]  ;;  %v4130_v28 = vld [vmem:[#allocation8 + $0x588] sm:$0xff] }
 0x293   :  { %7257 = vmatprep.subr.bf16.mxu1 %v8449_v38  ;;  %v8503_v38 = vcombine.high %v4081_v32, %v4085_v33  ;;  %v4133_v26 = vld [vmem:[#allocation8 + $0x5a0] sm:$0xff] }
 0x294   :  { %v4137_v33 = vld [vmem:[#allocation8 + $0x5c0] sm:$0xff] }
 0x295   :  { %7086 = vmatpush1.bf16.msra.mxu0 %v8446_v63  ;;  %v4090_v63 = vld [vmem:[#allocation8 + $0x448] sm:$0xff] }
 0x296   :  { %7258 = vmatpush1.bf16.msra.mxu1 %v8448_v44  ;;  %7087 = vmatprep.subr.bf16.mxu0 %v8455_v45  ;;  %v4094_v44 = vld [vmem:[#allocation8 + $0x468] sm:$0xff]  ;;  %v8504_v45 = vcombine.low %v4082_v34, %v4086_v15  ;;  %v4141_v34 = vld [vmem:[#allocation8 + $0x5e0] sm:$0xff] }
 0x297   :  { %7259 = vmatprep.subr.bf16.mxu1 %v8457_v27  ;;  %v8511_v27 = vcombine.high %v4089_v40, %v4093_v41  ;;  %v8513_v47 = vcombine.high %v4090_v63, %v4094_v44  ;;  %v4138_v15 = vld [vmem:[#allocation8 + $0x5c8] sm:$0xff] }
 0x299   :  { %7088 = vmatpush1.bf16.msra.mxu0 %v8454_v49  ;;  %v4102_v49 = vld [vmem:[#allocation8 + $0x4a8] sm:$0xff] }
 0x29a   :  { %7260 = vmatpush1.bf16.msra.mxu1 %v8456_v50  ;;  %7089 = vmatprep.subr.bf16.mxu0 %v8463_v43  ;;  %v8510_v50 = vcombine.low %v4089_v40, %v4093_v41  ;;  %v8512_v43 = vcombine.low %v4090_v63, %v4094_v44  ;;  %v8521_v52 = vcombine.high %v4098_v48, %v4102_v49  ;;  %v4145_v41 = vld [vmem:[#allocation8 + $0x600] sm:$0xff]  ;;  %v4146_v63 = vld [vmem:[#allocation8 + $0x608] sm:$0xff] }
 0x29b   :  { %7261 = vmatprep.subr.bf16.mxu1 %v8465_v51  ;;  %v8519_v51 = vcombine.high %v4097_v25, %v4101_v46  ;;  %v4150_v44 = vld [vmem:[#allocation8 + $0x628] sm:$0xff] }
 0x29d   :  { %7090 = vmatpush1.bf16.msra.mxu0 %v8462_v56  ;;  %v4110_v56 = vld [vmem:[#allocation8 + $0x4e8] sm:$0xff] }
 0x29e   :  { %7262 = vmatpush1.bf16.msra.mxu1 %v8464_v59  ;;  %7091 = vmatprep.subr.bf16.mxu0 %v8471_v60  ;;  %v8518_v59 = vcombine.low %v4097_v25, %v4101_v46  ;;  %v8520_v60 = vcombine.low %v4098_v48, %v4102_v49  ;;  %v8529_v61 = vcombine.high %v4106_v55, %v4110_v56  ;;  %v4157_v48 = vld [vmem:[#allocation8 + $0x660] sm:$0xff]  ;;  %v4154_v49 = vld [vmem:[#allocation8 + $0x648] sm:$0xff] }
 0x29f   :  { %7263 = vmatprep.subr.bf16.mxu1 %v8473_v53  ;;  %v8527_v53 = vcombine.high %v4105_v54, %v4109_v37  ;;  %v8569_v46 = vcombine.high %v4146_v63, %v4150_v44 }
 0x2a1   :  { %7092 = vmatpush1.bf16.msra.mxu0 %v8470_v8  ;;  %v4118_v8 = vld [vmem:[#allocation8 + $0x528] sm:$0xff] }
 0x2a2   :  { %7264 = vmatpush1.bf16.msra.mxu1 %v8472_v10  ;;  %7093 = vmatprep.subr.bf16.mxu0 %v8479_v12  ;;  %v8526_v10 = vcombine.low %v4105_v54, %v4109_v37  ;;  %v8528_v12 = vcombine.low %v4106_v55, %v4110_v56  ;;  %v8537_v14 = vcombine.high %v4114_v5, %v4118_v8  ;;  %v4161_v37 = vld [vmem:[#allocation8 + $0x680] sm:$0xff]  ;;  %v4162_v56 = vld [vmem:[#allocation8 + $0x688] sm:$0xff] }
 0x2a3   :  { %7265 = vmatprep.subr.bf16.mxu1 %v8481_v13  ;;  %v8535_v13 = vcombine.high %v4113_v0, %v4117_v2  ;;  %v4165_v55 = vld [vmem:[#allocation8 + $0x6a0] sm:$0xff] }
 0x2a5   :  { %7094 = vmatpush1.bf16.msra.mxu0 %v8478_v19  ;;  %v4126_v19 = vld [vmem:[#allocation8 + $0x568] sm:$0xff] }
 0x2a6   :  { %7266 = vmatpush1.bf16.msra.mxu1 %v8480_v20  ;;  %7095 = vmatprep.subr.bf16.mxu0 %v8487_v21  ;;  %v8534_v20 = vcombine.low %v4113_v0, %v4117_v2  ;;  %v8536_v21 = vcombine.low %v4114_v5, %v4118_v8  ;;  %v8545_v23 = vcombine.high %v4122_v18, %v4126_v19  ;;  %v4169_v2 = vld [vmem:[#allocation8 + $0x6c0] sm:$0xff]  ;;  %v4170_v8 = vld [vmem:[#allocation8 + $0x6c8] sm:$0xff] }
 0x2a7   :  { %7267 = vmatprep.subr.bf16.mxu1 %v8489_v22  ;;  %v8543_v22 = vcombine.high %v4121_v16, %v4125_v17  ;;  %v4173_v5 = vld [vmem:[#allocation8 + $0x6e0] sm:$0xff] }
 0x2a9   :  { %7096 = vmatpush1.bf16.msra.mxu0 %v8486_v29  ;;  %v4134_v29 = vld [vmem:[#allocation8 + $0x5a8] sm:$0xff] }
 0x2aa   :  { %7268 = vmatpush1.bf16.msra.mxu1 %v8488_v30  ;;  %7097 = vmatprep.subr.bf16.mxu0 %v8495_v31  ;;  %v8542_v30 = vcombine.low %v4121_v16, %v4125_v17  ;;  %v8544_v31 = vcombine.low %v4122_v18, %v4126_v19  ;;  %v8553_v32 = vcombine.high %v4130_v28, %v4134_v29  ;;  %v4177_v17 = vld [vmem:[#allocation8 + $0x700] sm:$0xff]  ;;  %v4178_v19 = vld [vmem:[#allocation8 + $0x708] sm:$0xff] }
 0x2ab   :  { %7269 = vmatprep.subr.bf16.mxu1 %v8497_v58  ;;  %v8551_v58 = vcombine.high %v4129_v24, %v4133_v26  ;;  %v4181_v18 = vld [vmem:[#allocation8 + $0x720] sm:$0xff] }
 0x2ad   :  { %7098 = vmatpush1.bf16.msra.mxu0 %v8494_v35  ;;  %v4142_v35 = vld [vmem:[#allocation8 + $0x5e8] sm:$0xff] }
 0x2ae   :  { %7270 = vmatpush1.bf16.msra.mxu1 %v8496_v36  ;;  %7110 = vmatprep.subr.bf16.mxu0 %v8503_v38  ;;  %v8550_v36 = vcombine.low %v4129_v24, %v4133_v26  ;;  %v8552_v38 = vcombine.low %v4130_v28, %v4134_v29  ;;  %v8561_v40 = vcombine.high %v4138_v15, %v4142_v35  ;;  %v4185_v26 = vld [vmem:[#allocation8 + $0x740] sm:$0xff]  ;;  %v4186_v29 = vld [vmem:[#allocation8 + $0x748] sm:$0xff] }
 0x2af   :  { %7282 = vmatprep.subr.bf16.mxu1 %v8505_v39  ;;  %v8559_v39 = vcombine.high %v4137_v33, %v4141_v34  ;;  %v4189_v28 = vld [vmem:[#allocation8 + $0x760] sm:$0xff] }
 0x2b0   :  { %7100 = vmatmul.mubr.bf16.vlgmr.msra.gmra.mrb[8].mxu0 %v9351_v62 }
 0x2b1   :  { %7272 = vmatmul.mubr.bf16.vlgmr.msra.gmra.mrb[8].mxu1 %v9351_v62  ;;  %7111 = vmatpush1.bf16.msra.mxu0 %v8502_v42  ;;  %v4149_v42 = vld [vmem:[#allocation8 + $0x620] sm:$0xff] }
 0x2b2   :  { %7142 = vmatprep.mubr.bf16.mxu0 %v9357_v11  ;;  %7283 = vmatpush1.bf16.msra.mxu1 %v8504_v45  ;;  %v8558_v45 = vcombine.low %v4137_v33, %v4141_v34  ;;  %v8567_v25 = vcombine.high %v4145_v41, %v4149_v42  ;;  %v4193_v34 = vld [vmem:[#allocation8 + $0x780] sm:$0xff] }
 0x2b3   :  { %7314 = vmatprep.mubr.bf16.mxu1 %v9357_v11  ;;  %7112 = vmatprep.subr.bf16.mxu0 %v8511_v27  ;;  %v8560_v27 = vcombine.low %v4138_v15, %v4142_v35  ;;  %v4197_v15 = vld [vmem:[#allocation8 + $0x7a0] sm:$0xff]  ;;  %v4194_v35 = vld [vmem:[#allocation8 + $0x788] sm:$0xff] }
 0x2b4   :  { %7284 = vmatprep.subr.bf16.mxu1 %v8513_v47  ;;  %v4153_v47 = vld [vmem:[#allocation8 + $0x640] sm:$0xff] }
 0x2b5   :  { %7113 = vmatpush1.bf16.msra.mxu0 %v8510_v50  ;;  %v4158_v50 = vld [vmem:[#allocation8 + $0x668] sm:$0xff] }
 0x2b6   :  { %7285 = vmatpush1.bf16.msra.mxu1 %v8512_v43  ;;  %7114 = vmatprep.subr.bf16.mxu0 %v8519_v51  ;;  %v8566_v43 = vcombine.low %v4145_v41, %v4149_v42  ;;  %v8568_v51 = vcombine.low %v4146_v63, %v4150_v44  ;;  %v8577_v54 = vcombine.high %v4154_v49, %v4158_v50  ;;  %v4201_v42 = vld [vmem:[#allocation8 + $0x7c0] sm:$0xff]  ;;  %v4202_v44 = vld [vmem:[#allocation8 + $0x7c8] sm:$0xff] }
 0x2b7   :  { %7286 = vmatprep.subr.bf16.mxu1 %v8521_v52  ;;  %v8575_v52 = vcombine.high %v4153_v47, %v4157_v48  ;;  %v4205_v63 = vld [vmem:[#allocation8 + $0x7e0] sm:$0xff] }
 0x2b9   :  { %7115 = vmatpush1.bf16.msra.mxu0 %v8518_v59  ;;  %v4166_v59 = vld [vmem:[#allocation8 + $0x6a8] sm:$0xff] }
 0x2ba   :  { %7287 = vmatpush1.bf16.msra.mxu1 %v8520_v60  ;;  %7116 = vmatprep.subr.bf16.mxu0 %v8527_v53  ;;  %v8574_v60 = vcombine.low %v4153_v47, %v4157_v48  ;;  %v8576_v53 = vcombine.low %v4154_v49, %v4158_v50  ;;  %v8585_v0 = vcombine.high %v4162_v56, %v4166_v59  ;;  %v4209_v48 = vld [vmem:[#allocation8 + $0x800] sm:$0xff]  ;;  %v4210_v50 = vld [vmem:[#allocation8 + $0x808] sm:$0xff] }
 0x2bb   :  { %7288 = vmatprep.subr.bf16.mxu1 %v8529_v61  ;;  %v8583_v61 = vcombine.high %v4161_v37, %v4165_v55  ;;  %v4213_v49 = vld [vmem:[#allocation8 + $0x820] sm:$0xff] }
 0x2bd   :  { %7117 = vmatpush1.bf16.msra.mxu0 %v8526_v10  ;;  %v4174_v10 = vld [vmem:[#allocation8 + $0x6e8] sm:$0xff] }
 0x2be   :  { %7289 = vmatpush1.bf16.msra.mxu1 %v8528_v12  ;;  %7118 = vmatprep.subr.bf16.mxu0 %v8535_v13  ;;  %v8582_v12 = vcombine.low %v4161_v37, %v4165_v55  ;;  %v8584_v13 = vcombine.low %v4162_v56, %v4166_v59  ;;  %v8593_v16 = vcombine.high %v4170_v8, %v4174_v10  ;;  %v4217_v55 = vld [vmem:[#allocation8 + $0x840] sm:$0xff]  ;;  %v4218_v59 = vld [vmem:[#allocation8 + $0x848] sm:$0xff] }
 0x2bf   :  { %7290 = vmatprep.subr.bf16.mxu1 %v8537_v14  ;;  %v8591_v14 = vcombine.high %v4169_v2, %v4173_v5  ;;  %v4221_v56 = vld [vmem:[#allocation8 + $0x860] sm:$0xff] }
 0x2c1   :  { %7119 = vmatpush1.bf16.msra.mxu0 %v8534_v20  ;;  %v4182_v20 = vld [vmem:[#allocation8 + $0x728] sm:$0xff] }
 0x2c2   :  { %7291 = vmatpush1.bf16.msra.mxu1 %v8536_v21  ;;  %7120 = vmatprep.subr.bf16.mxu0 %v8543_v22  ;;  %v8590_v21 = vcombine.low %v4169_v2, %v4173_v5  ;;  %v8592_v22 = vcombine.low %v4170_v8, %v4174_v10  ;;  %v8601_v24 = vcombine.high %v4178_v19, %v4182_v20  ;;  %v4225_v5 = vld [vmem:[#allocation8 + $0x880] sm:$0xff]  ;;  %v4226_v10 = vld [vmem:[#allocation8 + $0x888] sm:$0xff] }
 0x2c3   :  { %7292 = vmatprep.subr.bf16.mxu1 %v8545_v23  ;;  %v8599_v23 = vcombine.high %v4177_v17, %v4181_v18  ;;  %v4229_v8 = vld [vmem:[#allocation8 + $0x8a0] sm:$0xff] }
 0x2c5   :  { %7121 = vmatpush1.bf16.msra.mxu0 %v8542_v30  ;;  %v4190_v30 = vld [vmem:[#allocation8 + $0x768] sm:$0xff] }
 0x2c6   :  { %7293 = vmatpush1.bf16.msra.mxu1 %v8544_v31  ;;  %7122 = vmatprep.subr.bf16.mxu0 %v8551_v58  ;;  %v8598_v31 = vcombine.low %v4177_v17, %v4181_v18  ;;  %v8600_v58 = vcombine.low %v4178_v19, %v4182_v20  ;;  %v8609_v33 = vcombine.high %v4186_v29, %v4190_v30  ;;  %v4233_v18 = vld [vmem:[#allocation8 + $0x8c0] sm:$0xff]  ;;  %v4234_v20 = vld [vmem:[#allocation8 + $0x8c8] sm:$0xff] }
 0x2c7   :  { %7294 = vmatprep.subr.bf16.mxu1 %v8553_v32  ;;  %v8607_v32 = vcombine.high %v4185_v26, %v4189_v28  ;;  %v4237_v19 = vld [vmem:[#allocation8 + $0x8e0] sm:$0xff] }
 0x2c9   :  { %7123 = vmatpush1.bf16.msra.mxu0 %v8550_v36  ;;  %v4198_v36 = vld [vmem:[#allocation8 + $0x7a8] sm:$0xff] }
 0x2ca   :  { %7295 = vmatpush1.bf16.msra.mxu1 %v8552_v38  ;;  %7124 = vmatprep.subr.bf16.mxu0 %v8559_v39  ;;  %v8606_v38 = vcombine.low %v4185_v26, %v4189_v28  ;;  %v8608_v39 = vcombine.low %v4186_v29, %v4190_v30  ;;  %v8617_v41 = vcombine.high %v4194_v35, %v4198_v36  ;;  %v4241_v28 = vld [vmem:[#allocation8 + $0x900] sm:$0xff]  ;;  %v4242_v30 = vld [vmem:[#allocation8 + $0x908] sm:$0xff] }
 0x2cb   :  { %7296 = vmatprep.subr.bf16.mxu1 %v8561_v40  ;;  %v8615_v40 = vcombine.high %v4193_v34, %v4197_v15  ;;  %v4245_v29 = vld [vmem:[#allocation8 + $0x920] sm:$0xff] }
 0x2cd   :  { %7125 = vmatpush1.bf16.msra.mxu0 %v8558_v45  ;;  %v4206_v45 = vld [vmem:[#allocation8 + $0x7e8] sm:$0xff] }
 0x2ce   :  { %7297 = vmatpush1.bf16.msra.mxu1 %v8560_v27  ;;  %7126 = vmatprep.subr.bf16.mxu0 %v8567_v25  ;;  %v8614_v27 = vcombine.low %v4193_v34, %v4197_v15  ;;  %v8616_v25 = vcombine.low %v4194_v35, %v4198_v36  ;;  %v8625_v47 = vcombine.high %v4202_v44, %v4206_v45  ;;  %v4249_v15 = vld [vmem:[#allocation8 + $0x940] sm:$0xff]  ;;  %v4250_v36 = vld [vmem:[#allocation8 + $0x948] sm:$0xff] }
 0x2cf   :  { %7298 = vmatprep.subr.bf16.mxu1 %v8569_v46  ;;  %v8623_v46 = vcombine.high %v4201_v42, %v4205_v63  ;;  %v4253_v35 = vld [vmem:[#allocation8 + $0x960] sm:$0xff] }
 0x2d1   :  { %7127 = vmatpush1.bf16.msra.mxu0 %v8566_v43  ;;  %v4214_v43 = vld [vmem:[#allocation8 + $0x828] sm:$0xff] }
 0x2d2   :  { %7299 = vmatpush1.bf16.msra.mxu1 %v8568_v51  ;;  %7128 = vmatprep.subr.bf16.mxu0 %v8575_v52  ;;  %v8622_v51 = vcombine.low %v4201_v42, %v4205_v63  ;;  %v8624_v52 = vcombine.low %v4202_v44, %v4206_v45  ;;  %v8633_v37 = vcombine.high %v4210_v50, %v4214_v43  ;;  %v4257_v63 = vld [vmem:[#allocation8 + $0x980] sm:$0xff]  ;;  %v4258_v45 = vld [vmem:[#allocation8 + $0x988] sm:$0xff] }
 0x2d3   :  { %7300 = vmatprep.subr.bf16.mxu1 %v8577_v54  ;;  %v8631_v54 = vcombine.high %v4209_v48, %v4213_v49  ;;  %v4261_v44 = vld [vmem:[#allocation8 + $0x9a0] sm:$0xff] }
 0x2d5   :  { %7129 = vmatpush1.bf16.msra.mxu0 %v8574_v60  ;;  %v4222_v60 = vld [vmem:[#allocation8 + $0x868] sm:$0xff] }
 0x2d6   :  { %7301 = vmatpush1.bf16.msra.mxu1 %v8576_v53  ;;  %7130 = vmatprep.subr.bf16.mxu0 %v8583_v61  ;;  %v8630_v53 = vcombine.low %v4209_v48, %v4213_v49  ;;  %v8632_v61 = vcombine.low %v4210_v50, %v4214_v43  ;;  %v8641_v2 = vcombine.high %v4218_v59, %v4222_v60  ;;  %v4265_v49 = vld [vmem:[#allocation8 + $0x9c0] sm:$0xff]  ;;  %v4266_v43 = vld [vmem:[#allocation8 + $0x9c8] sm:$0xff] }
 0x2d7   :  { %7302 = vmatprep.subr.bf16.mxu1 %v8585_v0  ;;  %v8639_v0 = vcombine.high %v4217_v55, %v4221_v56  ;;  %v4269_v50 = vld [vmem:[#allocation8 + $0x9e0] sm:$0xff] }
 0x2d9   :  { %7131 = vmatpush1.bf16.msra.mxu0 %v8582_v12  ;;  %v4230_v12 = vld [vmem:[#allocation8 + $0x8a8] sm:$0xff] }
 0x2da   :  { %7303 = vmatpush1.bf16.msra.mxu1 %v8584_v13  ;;  %7132 = vmatprep.subr.bf16.mxu0 %v8591_v14  ;;  %v8638_v13 = vcombine.low %v4217_v55, %v4221_v56  ;;  %v8640_v14 = vcombine.low %v4218_v59, %v4222_v60  ;;  %v8649_v17 = vcombine.high %v4226_v10, %v4230_v12  ;;  %v4273_v56 = vld [vmem:[#allocation8 + $0xa00] sm:$0xff]  ;;  %v4274_v60 = vld [vmem:[#allocation8 + $0xa08] sm:$0xff] }
 0x2db   :  { %7304 = vmatprep.subr.bf16.mxu1 %v8593_v16  ;;  %v8647_v16 = vcombine.high %v4225_v5, %v4229_v8  ;;  %v4277_v59 = vld [vmem:[#allocation8 + $0xa20] sm:$0xff] }
 0x2dd   :  { %7133 = vmatpush1.bf16.msra.mxu0 %v8590_v21  ;;  %v4238_v21 = vld [vmem:[#allocation8 + $0x8e8] sm:$0xff] }
 0x2de   :  { %7305 = vmatpush1.bf16.msra.mxu1 %v8592_v22  ;;  %7134 = vmatprep.subr.bf16.mxu0 %v8599_v23  ;;  %v8646_v22 = vcombine.low %v4225_v5, %v4229_v8  ;;  %v8648_v23 = vcombine.low %v4226_v10, %v4230_v12  ;;  %v8657_v26 = vcombine.high %v4234_v20, %v4238_v21  ;;  %v4281_v8 = vld [vmem:[#allocation8 + $0xa40] sm:$0xff]  ;;  %v4282_v12 = vld [vmem:[#allocation8 + $0xa48] sm:$0xff] }
 0x2df   :  { %7306 = vmatprep.subr.bf16.mxu1 %v8601_v24  ;;  %v8655_v24 = vcombine.high %v4233_v18, %v4237_v19  ;;  %v4285_v10 = vld [vmem:[#allocation8 + $0xa60] sm:$0xff] }
 0x2e1   :  { %7135 = vmatpush1.bf16.msra.mxu0 %v8598_v31  ;;  %v4246_v31 = vld [vmem:[#allocation8 + $0x928] sm:$0xff] }
 0x2e2   :  { %7307 = vmatpush1.bf16.msra.mxu1 %v8600_v58  ;;  %7136 = vmatprep.subr.bf16.mxu0 %v8607_v32  ;;  %v8654_v58 = vcombine.low %v4233_v18, %v4237_v19  ;;  %v8656_v32 = vcombine.low %v4234_v20, %v4238_v21  ;;  %v8665_v34 = vcombine.high %v4242_v30, %v4246_v31  ;;  %v4289_v19 = vld [vmem:[#allocation8 + $0xa80] sm:$0xff]  ;;  %v4290_v21 = vld [vmem:[#allocation8 + $0xa88] sm:$0xff] }
 0x2e3   :  { %7308 = vmatprep.subr.bf16.mxu1 %v8609_v33  ;;  %v8663_v33 = vcombine.high %v4241_v28, %v4245_v29  ;;  %v4293_v20 = vld [vmem:[#allocation8 + $0xaa0] sm:$0xff] }
 0x2e5   :  { %7137 = vmatpush1.bf16.msra.mxu0 %v8606_v38  ;;  %v4254_v38 = vld [vmem:[#allocation8 + $0x968] sm:$0xff] }
 0x2e6   :  { %7309 = vmatpush1.bf16.msra.mxu1 %v8608_v39  ;;  %7138 = vmatprep.subr.bf16.mxu0 %v8615_v40  ;;  %v8662_v39 = vcombine.low %v4241_v28, %v4245_v29  ;;  %v8664_v40 = vcombine.low %v4242_v30, %v4246_v31  ;;  %v8673_v42 = vcombine.high %v4250_v36, %v4254_v38  ;;  %v4297_v29 = vld [vmem:[#allocation8 + $0xac0] sm:$0xff]  ;;  %v4298_v31 = vld [vmem:[#allocation8 + $0xac8] sm:$0xff] }
 0x2e7   :  { %7310 = vmatprep.subr.bf16.mxu1 %v8617_v41  ;;  %v8671_v41 = vcombine.high %v4249_v15, %v4253_v35  ;;  %v4301_v30 = vld [vmem:[#allocation8 + $0xae0] sm:$0xff] }
 0x2e9   :  { %7139 = vmatpush1.bf16.msra.mxu0 %v8614_v27  ;;  %v4262_v27 = vld [vmem:[#allocation8 + $0x9a8] sm:$0xff] }
 0x2ea   :  { %7311 = vmatpush1.bf16.msra.mxu1 %v8616_v25  ;;  %7140 = vmatprep.subr.bf16.mxu0 %v8623_v46  ;;  %v8670_v25 = vcombine.low %v4249_v15, %v4253_v35  ;;  %v8672_v46 = vcombine.low %v4250_v36, %v4254_v38  ;;  %v8681_v48 = vcombine.high %v4258_v45, %v4262_v27  ;;  %v4305_v35 = vld [vmem:[#allocation8 + $0xb00] sm:$0xff]  ;;  %v4306_v38 = vld [vmem:[#allocation8 + $0xb08] sm:$0xff] }
 0x2eb   :  { %7312 = vmatprep.subr.bf16.mxu1 %v8625_v47  ;;  %v8679_v47 = vcombine.high %v4257_v63, %v4261_v44  ;;  %v4309_v36 = vld [vmem:[#allocation8 + $0xb20] sm:$0xff] }
 0x2ed   :  { %7141 = vmatpush1.bf16.msra.mxu0 %v8622_v51  ;;  %v4270_v51 = vld [vmem:[#allocation8 + $0x9e8] sm:$0xff] }
 0x2ee   :  { %7313 = vmatpush1.bf16.msra.mxu1 %v8624_v52  ;;  %7153 = vmatprep.subr.bf16.mxu0 %v8631_v54  ;;  %v8678_v52 = vcombine.low %v4257_v63, %v4261_v44  ;;  %v8680_v54 = vcombine.low %v4258_v45, %v4262_v27  ;;  %v8689_v55 = vcombine.high %v4266_v43, %v4270_v51  ;;  %v4313_v44 = vld [vmem:[#allocation8 + $0xb40] sm:$0xff]  ;;  %v4314_v27 = vld [vmem:[#allocation8 + $0xb48] sm:$0xff] }
 0x2ef   :  { %7325 = vmatprep.subr.bf16.mxu1 %v8633_v37  ;;  %v8687_v37 = vcombine.high %v4265_v49, %v4269_v50  ;;  %v4317_v45 = vld [vmem:[#allocation8 + $0xb60] sm:$0xff] }
 0x2f0   :  { %7143 = vmatmul.mubr.bf16.vlgmr.msra.gmra.mrb[8].mxu0 %v9353_v3 }
 0x2f1   :  { %7315 = vmatmul.mubr.bf16.vlgmr.msra.gmra.mrb[8].mxu1 %v9353_v3  ;;  %7154 = vmatpush1.bf16.msra.mxu0 %v8630_v53  ;;  %v4278_v53 = vld [vmem:[#allocation8 + $0xa28] sm:$0xff] }
 0x2f2   :  { %7326 = vmatpush1.bf16.msra.mxu1 %v8632_v61  ;;  %7155 = vmatprep.subr.bf16.mxu0 %v8639_v0  ;;  %v8686_v61 = vcombine.low %v4265_v49, %v4269_v50  ;;  %v8688_v0 = vcombine.low %v4266_v43, %v4270_v51  ;;  %v8697_v5 = vcombine.high %v4274_v60, %v4278_v53  ;;  %v4321_v50 = vld [vmem:[#allocation8 + $0xb80] sm:$0xff]  ;;  %v4322_v51 = vld [vmem:[#allocation8 + $0xb88] sm:$0xff] }
 0x2f3   :  { %7327 = vmatprep.subr.bf16.mxu1 %v8641_v2  ;;  %v8695_v2 = vcombine.high %v4273_v56, %v4277_v59  ;;  %v4325_v43 = vld [vmem:[#allocation8 + $0xba0] sm:$0xff] }
 0x2f5   :  { %7156 = vmatpush1.bf16.msra.mxu0 %v8638_v13  ;;  %v4286_v13 = vld [vmem:[#allocation8 + $0xa68] sm:$0xff] }
 0x2f6   :  { %7328 = vmatpush1.bf16.msra.mxu1 %v8640_v14  ;;  %7157 = vmatprep.subr.bf16.mxu0 %v8647_v16  ;;  %v8694_v14 = vcombine.low %v4273_v56, %v4277_v59  ;;  %v8696_v16 = vcombine.low %v4274_v60, %v4278_v53  ;;  %v8705_v18 = vcombine.high %v4282_v12, %v4286_v13  ;;  %v4329_v59 = vld [vmem:[#allocation8 + $0xbc0] sm:$0xff]  ;;  %v4330_v53 = vld [vmem:[#allocation8 + $0xbc8] sm:$0xff] }
 0x2f7   :  { %7329 = vmatprep.subr.bf16.mxu1 %v8649_v17  ;;  %v8703_v17 = vcombine.high %v4281_v8, %v4285_v10  ;;  %v4333_v60 = vld [vmem:[#allocation8 + $0xbe0] sm:$0xff] }
 0x2f9   :  { %7158 = vmatpush1.bf16.msra.mxu0 %v8646_v22  ;;  %v4294_v22 = vld [vmem:[#allocation8 + $0xaa8] sm:$0xff] }
 0x2fa   :  { %7330 = vmatpush1.bf16.msra.mxu1 %v8648_v23  ;;  %7159 = vmatprep.subr.bf16.mxu0 %v8655_v24  ;;  %v8702_v23 = vcombine.low %v4281_v8, %v4285_v10  ;;  %v8704_v24 = vcombine.low %v4282_v12, %v4286_v13  ;;  %v8713_v28 = vcombine.high %v4290_v21, %v4294_v22  ;;  %v9369_v10 = vld [vmem:[#allocation8 + $0xc00] sm:$0xff]  ;;  %v9373_v13 = vld [vmem:[#allocation8 + $0xc08] sm:$0xff] }
 0x2fb   :  { %7331 = vmatprep.subr.bf16.mxu1 %v8657_v26  ;;  %v8711_v26 = vcombine.high %v4289_v19, %v4293_v20  ;;  %v9371_v12 = vld [vmem:[#allocation8 + $0xc20] sm:$0xff] }
 0x2fd   :  { %7160 = vmatpush1.bf16.msra.mxu0 %v8654_v58  ;;  %v4302_v58 = vld [vmem:[#allocation8 + $0xae8] sm:$0xff] }
 0x2fe   :  { %7332 = vmatpush1.bf16.msra.mxu1 %v8656_v32  ;;  %7161 = vmatprep.subr.bf16.mxu0 %v8663_v33  ;;  %v8710_v32 = vcombine.low %v4289_v19, %v4293_v20  ;;  %v8712_v33 = vcombine.low %v4290_v21, %v4294_v22  ;;  %v8721_v15 = vcombine.high %v4298_v31, %v4302_v58  ;;  %v9382_v20 = vsub.s32 4, %v9333_v57 }
 0x2ff   :  { %7333 = vmatprep.subr.bf16.mxu1 %v8665_v34  ;;  %v8719_v34 = vcombine.high %v4297_v29, %v4301_v30  ;;  %v9385_v21 = vsub.s32 6, %v9333_v57  ;;  %v9388_v22 = vsub.s32 5, %v9333_v57 }
 0x301   :  { %7162 = vmatpush1.bf16.msra.mxu0 %v8662_v39  ;;  %v4310_v39 = vld [vmem:[#allocation8 + $0xb28] sm:$0xff] }
 0x302   :  { %7334 = vmatpush1.bf16.msra.mxu1 %v8664_v40  ;;  %7163 = vmatprep.subr.bf16.mxu0 %v8671_v41  ;;  %v8718_v40 = vcombine.low %v4297_v29, %v4301_v30  ;;  %v8720_v41 = vcombine.low %v4298_v31, %v4302_v58  ;;  %v8729_v63 = vcombine.high %v4306_v38, %v4310_v39 }
 0x303   :  { %7335 = vmatprep.subr.bf16.mxu1 %v8673_v42  ;;  %v8727_v42 = vcombine.high %v4305_v35, %v4309_v36 }
 0x305   :  { %7164 = vmatpush1.bf16.msra.mxu0 %v8670_v25  ;;  %v4318_v25 = vld [vmem:[#allocation8 + $0xb68] sm:$0xff] }
 0x306   :  { %7336 = vmatpush1.bf16.msra.mxu1 %v8672_v46  ;;  %7165 = vmatprep.subr.bf16.mxu0 %v8679_v47  ;;  %v8726_v46 = vcombine.low %v4305_v35, %v4309_v36  ;;  %v8728_v47 = vcombine.low %v4306_v38, %v4310_v39  ;;  %v8737_v49 = vcombine.high %v4314_v27, %v4318_v25 }
 0x307   :  { %7337 = vmatprep.subr.bf16.mxu1 %v8681_v48  ;;  %v8735_v48 = vcombine.high %v4313_v44, %v4317_v45 }
 0x309   :  { %7166 = vmatpush1.bf16.msra.mxu0 %v8678_v52  ;;  %v4326_v52 = vld [vmem:[#allocation8 + $0xba8] sm:$0xff] }
 0x30a   :  { %7338 = vmatpush1.bf16.msra.mxu1 %v8680_v54  ;;  %7167 = vmatprep.subr.bf16.mxu0 %v8687_v37  ;;  %v8734_v54 = vcombine.low %v4313_v44, %v4317_v45  ;;  %v8736_v37 = vcombine.low %v4314_v27, %v4318_v25  ;;  %v8745_v56 = vcombine.high %v4322_v51, %v4326_v52 }
 0x30b   :  { %7339 = vmatprep.subr.bf16.mxu1 %v8689_v55  ;;  %v8743_v55 = vcombine.high %v4321_v50, %v4325_v43 }
 0x30d   :  { %7168 = vmatpush1.bf16.msra.mxu0 %v8686_v61  ;;  %v4334_v61 = vld [vmem:[#allocation8 + $0xbe8] sm:$0xff] }
 0x30e   :  { %7340 = vmatpush1.bf16.msra.mxu1 %v8688_v0  ;;  %7169 = vmatprep.subr.bf16.mxu0 %v8695_v2  ;;  %v8742_v0 = vcombine.low %v4321_v50, %v4325_v43  ;;  %v8744_v2 = vcombine.low %v4322_v51, %v4326_v52  ;;  %v8753_v8 = vcombine.high %v4330_v53, %v4334_v61  ;;  %v4349_v52 = vld [vmem:[#allocation8 + $0xc60] sm:$0xff] }
 0x30f   :  { %7341 = vmatprep.subr.bf16.mxu1 %v8697_v5  ;;  %v8751_v5 = vcombine.high %v4329_v59, %v4333_v60 }
 0x311   :  { %7170 = vmatpush1.bf16.msra.mxu0 %v8694_v14  ;;  %v9375_v14 = vld [vmem:[#allocation8 + $0xc28] sm:$0xff] }
 0x312   :  { %7342 = vmatpush1.bf16.msra.mxu1 %v8696_v16  ;;  %7171 = vmatprep.subr.bf16.mxu0 %v8703_v17  ;;  %v8750_v16 = vcombine.low %v4329_v59, %v4333_v60  ;;  %v8752_v17 = vcombine.low %v4330_v53, %v4334_v61  ;;  %v8761_v19 = vcombine.high %v9373_v13, %v9375_v14  ;;  %v4353_v61 = vld [vmem:[#allocation8 + $0xc80] sm:$0xff] }
 0x313   :  { %7343 = vmatprep.subr.bf16.mxu1 %v8705_v18  ;;  %v8759_v18 = vcombine.high %v9369_v10, %v9371_v12  ;;  %v8758_v59 = vcombine.low %v9369_v10, %v9371_v12  ;;  %v8760_v60 = vcombine.low %v9373_v13, %v9375_v14 }
 0x315   :  { %7172 = vmatpush1.bf16.msra.mxu0 %v8702_v23  ;;  %v9391_v23 = vsub.s32 7, %v9333_v57 }
 0x316   :  { %7344 = vmatpush1.bf16.msra.mxu1 %v8704_v24  ;;  %7173 = vmatprep.subr.bf16.mxu0 %v8711_v26  ;;  %v9024_v24 = vld [vmem:[#allocation7] sm:$0xff] }
 0x317   :  { %7345 = vmatprep.subr.bf16.mxu1 %v8713_v28  ;;  %v660_v26 = vrot.slane %v9024_v24, %v9382_v20  ;;  %v668_v28 = vrot.slane %v9024_v24, %v9385_v21  ;;  %v664_v29 = vrot.slane %v9024_v24, %v9388_v22  ;;  %v672_v30 = vrot.slane %v9024_v24, %v9391_v23  ;;  %v4366_v24 = vld [vmem:[#allocation8 + $0xce8] sm:$0xff] }
 0x319   :  { %7174 = vmatpush1.bf16.msra.mxu0 %v8710_v32 }
 0x31a   :  { %7346 = vmatpush1.bf16.msra.mxu1 %v8712_v33  ;;  %7175 = vmatprep.subr.bf16.mxu0 %v8719_v34 }
 0x31b   :  { %7347 = vmatprep.subr.bf16.mxu1 %v8721_v15 }
 0x31d   :  { %7176 = vmatpush1.bf16.msra.mxu0 %v8718_v40 }
 0x31e   :  { %7348 = vmatpush1.bf16.msra.mxu1 %v8720_v41  ;;  %7177 = vmatprep.subr.bf16.mxu0 %v8727_v42 }
 0x31f   :  { %7349 = vmatprep.subr.bf16.mxu1 %v8729_v63 }
 0x321   :  { %7178 = vmatpush1.bf16.msra.mxu0 %v8726_v46 }
 0x322   :  { %7350 = vmatpush1.bf16.msra.mxu1 %v8728_v47  ;;  %7179 = vmatprep.subr.bf16.mxu0 %v8735_v48 }
 0x323   :  { %7351 = vmatprep.subr.bf16.mxu1 %v8737_v49  ;;  %v4345_v49 = vld [vmem:[#allocation8 + $0xc40] sm:$0xff] }
 0x324   :  { %v8766_v10 = vcombine.low %v4345_v49, %v4349_v52 }
 0x325   :  { %7180 = vmatpush1.bf16.msra.mxu0 %v8734_v54  ;;  %v4346_v54 = vld [vmem:[#allocation8 + $0xc48] sm:$0xff] }
 0x326   :  { %7352 = vmatpush1.bf16.msra.mxu1 %v8736_v37  ;;  %7181 = vmatprep.subr.bf16.mxu0 %v8743_v55  ;;  %v4350_v37 = vld [vmem:[#allocation8 + $0xc68] sm:$0xff] }
 0x327   :  { %7353 = vmatprep.subr.bf16.mxu1 %v8745_v56  ;;  %v8768_v12 = vcombine.low %v4346_v54, %v4350_v37 }
 0x329   :  { %7182 = vmatpush1.bf16.msra.mxu0 %v8742_v0  ;;  %v8767_v0 = vcombine.high %v4345_v49, %v4349_v52  ;;  %v4397_v52 = vld [vmem:[#allocation8 + $0xde0] sm:$0xff] }
 0x32a   :  { %7354 = vmatpush1.bf16.msra.mxu1 %v8744_v2  ;;  %7183 = vmatprep.subr.bf16.mxu0 %v8751_v5  ;;  %v8769_v2 = vcombine.high %v4346_v54, %v4350_v37  ;;  %v4357_v5 = vld [vmem:[#allocation8 + $0xca0] sm:$0xff]  ;;  %v4394_v54 = vld [vmem:[#allocation8 + $0xdc8] sm:$0xff] }
 0x32b   :  { %7355 = vmatprep.subr.bf16.mxu1 %v8753_v8  ;;  %v4354_v8 = vld [vmem:[#allocation8 + $0xc88] sm:$0xff]  ;;  %v8775_v13 = vcombine.high %v4353_v61, %v4357_v5 }
 0x32c   :  { %v4398_v37 = vld [vmem:[#allocation8 + $0xde8] sm:$0xff] }
 0x32d   :  { %7184 = vmatpush1.bf16.msra.mxu0 %v8750_v16  ;;  %v4358_v16 = vld [vmem:[#allocation8 + $0xca8] sm:$0xff] }
 0x32e   :  { %7356 = vmatpush1.bf16.msra.mxu1 %v8752_v17  ;;  %7196 = vmatprep.subr.bf16.mxu0 %v8759_v18  ;;  %v8777_v14 = vcombine.high %v4354_v8, %v4358_v16  ;;  %v4361_v17 = vld [vmem:[#allocation8 + $0xcc0] sm:$0xff] }
 0x32f   :  { %7368 = vmatprep.subr.bf16.mxu1 %v8761_v19  ;;  %v4365_v18 = vld [vmem:[#allocation8 + $0xce0] sm:$0xff]  ;;  %v4362_v19 = vld [vmem:[#allocation8 + $0xcc8] sm:$0xff] }
 0x343   :  { %v3748_v31 = vpop.f32.mrb[4].mxu0  ;;  %v3920_v32 = vpop.f32.mrb[4].mxu1 }
 0x344   :  { %v8894_v58 = vadd.f32 %v3748_v31, %v660_v26  ;;  %v3750_v33 = vpop.f32.mrb[5].mxu0  ;;  %v8898_v34 = vadd.f32 %v3920_v32, %v668_v28  ;;  %v3922_v35 = vpop.f32.mrb[5].mxu1  ;;  %v4369_v31 = vld [vmem:[#allocation8 + $0xd00] sm:$0xff]  ;;  %v4370_v32 = vld [vmem:[#allocation8 + $0xd08] sm:$0xff] }
 0x345   :  { %v8895_v15 = vadd.f32 %v3750_v33, %v664_v29  ;;  %v3752_v36 = vpop.f32.mrb[6].mxu0  ;;  %v8899_v38 = vadd.f32 %v3922_v35, %v672_v30  ;;  %v3924_v39 = vpop.f32.mrb[6].mxu1  ;;  %v4374_v33 = vld [vmem:[#allocation8 + $0xd28] sm:$0xff] }
 0x346   :  { %v8896_v57 = vadd.f32 %v3752_v36, %v660_v26  ;;  %v3754_v40 = vpop.f32.mrb[7].mxu0  ;;  %v8900_v41 = vadd.f32 %v3924_v39, %v668_v28  ;;  %v3926_v63 = vpop.f32.mrb[7].mxu1  ;;  %v3933_v44 = vmax.f32 %v8894_v58, 0.0  ;;  %v3935_v25 = vmax.f32 %v8898_v34, 0.0  ;;  %v4373_v58 = vld [vmem:[#allocation8 + $0xd20] sm:$0xff]  ;;  %v4378_v39 = vld [vmem:[#allocation8 + $0xd48] sm:$0xff] }
 0x347   :  { %v8897_v42 = vadd.f32 %v3754_v40, %v664_v29  ;;  %v8901_v27 = vadd.f32 %v3926_v63, %v672_v30  ;;  %v3934_v46 = vmax.f32 %v8895_v15, 0.0  ;;  %v3936_v50 = vmax.f32 %v8899_v38, 0.0  ;;  %v4377_v38 = vld [vmem:[#allocation8 + $0xd40] sm:$0xff]  ;;  %v4382_v40 = vld [vmem:[#allocation8 + $0xd68] sm:$0xff] }
 0x348   :  { %v3941_v45 = vmax.f32 %v8896_v57, 0.0  ;;  %v3943_v47 = vmax.f32 %v8900_v41, 0.0  ;;  %v8774_v26 = vcombine.low %v4353_v61, %v4357_v5  ;;  %v8776_v28 = vcombine.low %v4354_v8, %v4358_v16  ;;  %v4381_v57 = vld [vmem:[#allocation8 + $0xd60] sm:$0xff]  ;;  %v4402_v8 = vld [vmem:[#allocation8 + $0xe08] sm:$0xff] }
 0x349   :  { %v3942_v48 = vmax.f32 %v8897_v42, 0.0  ;;  %v3944_v51 = vmax.f32 %v8901_v27, 0.0  ;;  %v8783_v29 = vcombine.high %v4361_v17, %v4365_v18  ;;  %v8785_v30 = vcombine.high %v4362_v19, %v4366_v24  ;;  %v4389_v27 = vld [vmem:[#allocation8 + $0xda0] sm:$0xff]  ;;  %v4406_v16 = vld [vmem:[#allocation8 + $0xe28] sm:$0xff] }
 0x34a   :  { %v9397_v43 = vpack.c.bf16 %v3941_v45, %v3933_v44  ;;  %v9399_v55 = vpack.c.bf16 %v3943_v47, %v3935_v25  ;;  %v8782_v34 = vcombine.low %v4361_v17, %v4365_v18  ;;  %v8784_v15 = vcombine.low %v4362_v19, %v4366_v24  ;;  %v4385_v45 = vld [vmem:[#allocation8 + $0xd80] sm:$0xff]  ;;  %v4386_v25 = vld [vmem:[#allocation8 + $0xd88] sm:$0xff] }
 0x34b   :  { %v9401_v56 = vpack.c.bf16 %v3942_v48, %v3934_v46  ;;  %v9407_v53 = vpack.c.bf16 %v3944_v51, %v3936_v50  ;;  %v8791_v35 = vcombine.high %v4369_v31, %v4373_v58  ;;  %v8793_v36 = vcombine.high %v4370_v32, %v4374_v33  ;;  %v4390_v46 = vld [vmem:[#allocation8 + $0xda8] sm:$0xff]  ;;  %v4393_v51 = vld [vmem:[#allocation8 + $0xdc0] sm:$0xff] }
 0x34c   :  { %v8790_v41 = vcombine.low %v4369_v31, %v4373_v58  ;;  %v8792_v42 = vcombine.low %v4370_v32, %v4374_v33  ;;  %v8799_v63 = vcombine.high %v4377_v38, %v4381_v57  ;;  %v8801_v44 = vcombine.high %v4378_v39, %v4382_v40  ;;  %v4405_v5 = vld [vmem:[#allocation8 + $0xe20] sm:$0xff]  ;;  %v4410_v19 = vld [vmem:[#allocation8 + $0xe48] sm:$0xff] }
 0x34d   :  { %7185 = vmatprep.mubr.bf16.mxu0 %v9401_v56  ;;  %7357 = vmatprep.mubr.bf16.mxu1 %v9401_v56  ;;  %v8798_v47 = vcombine.low %v4377_v38, %v4381_v57  ;;  %v8800_v48 = vcombine.low %v4378_v39, %v4382_v40  ;;  %v8807_v49 = vcombine.high %v4385_v45, %v4389_v27  ;;  %v4409_v17 = vld [vmem:[#allocation8 + $0xe40] sm:$0xff]  ;;  %v4414_v24 = vld [vmem:[#allocation8 + $0xe68] sm:$0xff] }
 0x34e   :  { %7186 = vmatmul.mubr.bf16.vlgmr.msra.gmra.mrb[8].mxu0 %v9397_v43  ;;  %7358 = vmatmul.mubr.bf16.vlgmr.msra.gmra.mrb[8].mxu1 %v9397_v43  ;;  %v8809_v50 = vcombine.high %v4386_v25, %v4390_v46  ;;  %v8815_v61 = vcombine.high %v4393_v51, %v4397_v52  ;;  %v4413_v18 = vld [vmem:[#allocation8 + $0xe60] sm:$0xff]  ;;  %v4418_v32 = vld [vmem:[#allocation8 + $0xe88] sm:$0xff] }
 0x34f   :  { %7197 = vmatpush1.bf16.msra.mxu0 %v8758_v59  ;;  %7369 = vmatpush1.bf16.msra.mxu1 %v8760_v60  ;;  %v8806_v59 = vcombine.low %v4385_v45, %v4389_v27  ;;  %v8808_v60 = vcombine.low %v4386_v25, %v4390_v46  ;;  %v4417_v31 = vld [vmem:[#allocation8 + $0xe80] sm:$0xff]  ;;  %v4422_v33 = vld [vmem:[#allocation8 + $0xea8] sm:$0xff] }
 0x350   :  { %7228 = vmatprep.mubr.bf16.mxu0 %v9407_v53  ;;  %7400 = vmatprep.mubr.bf16.mxu1 %v9407_v53  ;;  %v4421_v58 = vld [vmem:[#allocation8 + $0xea0] sm:$0xff]  ;;  %v4426_v39 = vld [vmem:[#allocation8 + $0xec8] sm:$0xff] }
 0x351   :  { %7198 = vmatprep.subr.bf16.mxu0 %v8767_v0  ;;  %7370 = vmatprep.subr.bf16.mxu1 %v8769_v2  ;;  %v8817_v0 = vcombine.high %v4394_v54, %v4398_v37  ;;  %v4401_v2 = vld [vmem:[#allocation8 + $0xe00] sm:$0xff]  ;;  %v4430_v40 = vld [vmem:[#allocation8 + $0xee8] sm:$0xff] }
 0x352   :  { %v4425_v38 = vld [vmem:[#allocation8 + $0xec0] sm:$0xff]  ;;  %v4434_v25 = vld [vmem:[#allocation8 + $0xf08] sm:$0xff] }
 0x353   :  { %7199 = vmatpush1.bf16.msra.mxu0 %v8766_v10  ;;  %7371 = vmatpush1.bf16.msra.mxu1 %v8768_v12  ;;  %v8814_v10 = vcombine.low %v4393_v51, %v4397_v52  ;;  %v8816_v12 = vcombine.low %v4394_v54, %v4398_v37  ;;  %v4429_v57 = vld [vmem:[#allocation8 + $0xee0] sm:$0xff]  ;;  %v4438_v46 = vld [vmem:[#allocation8 + $0xf28] sm:$0xff] }
 0x354   :  { %7200 = vmatprep.subr.bf16.mxu0 %v8775_v13  ;;  %7372 = vmatprep.subr.bf16.mxu1 %v8777_v14  ;;  %v8823_v13 = vcombine.high %v4401_v2, %v4405_v5  ;;  %v8825_v14 = vcombine.high %v4402_v8, %v4406_v16  ;;  %v4433_v45 = vld [vmem:[#allocation8 + $0xf00] sm:$0xff]  ;;  %v4442_v54 = vld [vmem:[#allocation8 + $0xf48] sm:$0xff] }
 0x355   :  { %v4437_v27 = vld [vmem:[#allocation8 + $0xf20] sm:$0xff]  ;;  %v4446_v37 = vld [vmem:[#allocation8 + $0xf68] sm:$0xff] }
 0x356   :  { %v4441_v51 = vld [vmem:[#allocation8 + $0xf40] sm:$0xff] }
 0x357   :  { %7201 = vmatpush1.bf16.msra.mxu0 %v8774_v26  ;;  %7373 = vmatpush1.bf16.msra.mxu1 %v8776_v28  ;;  %v8822_v26 = vcombine.low %v4401_v2, %v4405_v5  ;;  %v8824_v28 = vcombine.low %v4402_v8, %v4406_v16  ;;  %v4445_v52 = vld [vmem:[#allocation8 + $0xf60] sm:$0xff]  ;;  %v4450_v8 = vld [vmem:[#allocation8 + $0xf88] sm:$0xff] }
 0x358   :  { %7202 = vmatprep.subr.bf16.mxu0 %v8783_v29  ;;  %7374 = vmatprep.subr.bf16.mxu1 %v8785_v30  ;;  %v8831_v29 = vcombine.high %v4409_v17, %v4413_v18  ;;  %v8833_v30 = vcombine.high %v4410_v19, %v4414_v24  ;;  %v4449_v2 = vld [vmem:[#allocation8 + $0xf80] sm:$0xff]  ;;  %v4454_v16 = vld [vmem:[#allocation8 + $0xfa8] sm:$0xff] }
 0x359   :  { %v4453_v5 = vld [vmem:[#allocation8 + $0xfa0] sm:$0xff] }
 0x35b   :  { %7203 = vmatpush1.bf16.msra.mxu0 %v8782_v34  ;;  %7375 = vmatpush1.bf16.msra.mxu1 %v8784_v15  ;;  %v8830_v34 = vcombine.low %v4409_v17, %v4413_v18  ;;  %v8832_v15 = vcombine.low %v4410_v19, %v4414_v24  ;;  %v4457_v17 = vld [vmem:[#allocation8 + $0xfc0] sm:$0xff]  ;;  %v4458_v19 = vld [vmem:[#allocation8 + $0xfc8] sm:$0xff] }
 0x35c   :  { %7204 = vmatprep.subr.bf16.mxu0 %v8791_v35  ;;  %7376 = vmatprep.subr.bf16.mxu1 %v8793_v36  ;;  %v8839_v35 = vcombine.high %v4417_v31, %v4421_v58  ;;  %v8841_v36 = vcombine.high %v4418_v32, %v4422_v33  ;;  %v4461_v18 = vld [vmem:[#allocation8 + $0xfe0] sm:$0xff]  ;;  %v4462_v24 = vld [vmem:[#allocation8 + $0xfe8] sm:$0xff] }
 0x35f   :  { %7205 = vmatpush1.bf16.msra.mxu0 %v8790_v41  ;;  %7377 = vmatpush1.bf16.msra.mxu1 %v8792_v42  ;;  %v8838_v41 = vcombine.low %v4417_v31, %v4421_v58  ;;  %v8840_v42 = vcombine.low %v4418_v32, %v4422_v33  ;;  %v3955_v31 = vld [vmem:[#allocation8 + $0x10] sm:$0xff]  ;;  %v3956_v32 = vld [vmem:[#allocation8 + $0x18] sm:$0xff] }
 0x360   :  { %7206 = vmatprep.subr.bf16.mxu0 %v8799_v63  ;;  %7378 = vmatprep.subr.bf16.mxu1 %v8801_v44  ;;  %v8847_v63 = vcombine.high %v4425_v38, %v4429_v57  ;;  %v8849_v44 = vcombine.high %v4426_v39, %v4430_v40  ;;  %v3959_v58 = vld [vmem:[#allocation8 + $0x30] sm:$0xff]  ;;  %v3960_v33 = vld [vmem:[#allocation8 + $0x38] sm:$0xff] }
 0x363   :  { %7207 = vmatpush1.bf16.msra.mxu0 %v8798_v47  ;;  %7379 = vmatpush1.bf16.msra.mxu1 %v8800_v48  ;;  %v8846_v47 = vcombine.low %v4425_v38, %v4429_v57  ;;  %v8848_v48 = vcombine.low %v4426_v39, %v4430_v40  ;;  %v3963_v38 = vld [vmem:[#allocation8 + $0x50] sm:$0xff]  ;;  %v3964_v39 = vld [vmem:[#allocation8 + $0x58] sm:$0xff] }
 0x364   :  { %7208 = vmatprep.subr.bf16.mxu0 %v8807_v49  ;;  %7380 = vmatprep.subr.bf16.mxu1 %v8809_v50  ;;  %v8855_v49 = vcombine.high %v4433_v45, %v4437_v27  ;;  %v8857_v50 = vcombine.high %v4434_v25, %v4438_v46  ;;  %v3967_v57 = vld [vmem:[#allocation8 + $0x70] sm:$0xff]  ;;  %v3968_v40 = vld [vmem:[#allocation8 + $0x78] sm:$0xff] }
 0x367   :  { %7209 = vmatpush1.bf16.msra.mxu0 %v8806_v59  ;;  %7381 = vmatpush1.bf16.msra.mxu1 %v8808_v60  ;;  %v8854_v59 = vcombine.low %v4433_v45, %v4437_v27  ;;  %v8856_v60 = vcombine.low %v4434_v25, %v4438_v46  ;;  %v3971_v45 = vld [vmem:[#allocation8 + $0x90] sm:$0xff]  ;;  %v3972_v25 = vld [vmem:[#allocation8 + $0x98] sm:$0xff] }
 0x368   :  { %7210 = vmatprep.subr.bf16.mxu0 %v8815_v61  ;;  %7382 = vmatprep.subr.bf16.mxu1 %v8817_v0  ;;  %v8863_v61 = vcombine.high %v4441_v51, %v4445_v52  ;;  %v8865_v0 = vcombine.high %v4442_v54, %v4446_v37  ;;  %v3975_v27 = vld [vmem:[#allocation8 + $0xb0] sm:$0xff]  ;;  %v3976_v46 = vld [vmem:[#allocation8 + $0xb8] sm:$0xff] }
 0x36b   :  { %7211 = vmatpush1.bf16.msra.mxu0 %v8814_v10  ;;  %7383 = vmatpush1.bf16.msra.mxu1 %v8816_v12  ;;  %v8862_v10 = vcombine.low %v4441_v51, %v4445_v52  ;;  %v8864_v12 = vcombine.low %v4442_v54, %v4446_v37  ;;  %v3979_v51 = vld [vmem:[#allocation8 + $0xd0] sm:$0xff]  ;;  %v3980_v54 = vld [vmem:[#allocation8 + $0xd8] sm:$0xff] }
 0x36c   :  { %7212 = vmatprep.subr.bf16.mxu0 %v8823_v13  ;;  %7384 = vmatprep.subr.bf16.mxu1 %v8825_v14  ;;  %v8871_v13 = vcombine.high %v4449_v2, %v4453_v5  ;;  %v8873_v14 = vcombine.high %v4450_v8, %v4454_v16  ;;  %v3983_v52 = vld [vmem:[#allocation8 + $0xf0] sm:$0xff]  ;;  %v3984_v37 = vld [vmem:[#allocation8 + $0xf8] sm:$0xff] }
 0x36f   :  { %7213 = vmatpush1.bf16.msra.mxu0 %v8822_v26  ;;  %7385 = vmatpush1.bf16.msra.mxu1 %v8824_v28  ;;  %v8870_v26 = vcombine.low %v4449_v2, %v4453_v5  ;;  %v8872_v28 = vcombine.low %v4450_v8, %v4454_v16  ;;  %v3987_v2 = vld [vmem:[#allocation8 + $0x110] sm:$0xff]  ;;  %v3992_v8 = vld [vmem:[#allocation8 + $0x138] sm:$0xff]  ;;  %v8402_v16 = vcombine.low %v3979_v51, %v3983_v52 }
 0x370   :  { %7214 = vmatprep.subr.bf16.mxu0 %v8831_v29  ;;  %7386 = vmatprep.subr.bf16.mxu1 %v8833_v30  ;;  %v8879_v29 = vcombine.high %v4457_v17, %v4461_v18  ;;  %v8881_v30 = vcombine.high %v4458_v19, %v4462_v24  ;;  %v3991_v5 = vld [vmem:[#allocation8 + $0x130] sm:$0xff] }
 0x373   :  { %7215 = vmatpush1.bf16.msra.mxu0 %v8830_v34  ;;  %7387 = vmatpush1.bf16.msra.mxu1 %v8832_v15  ;;  %v8878_v34 = vcombine.low %v4457_v17, %v4461_v18  ;;  %v8880_v15 = vcombine.low %v4458_v19, %v4462_v24  ;;  %v3999_v17 = vld [vmem:[#allocation8 + $0x170] sm:$0xff]  ;;  %v3996_v18 = vld [vmem:[#allocation8 + $0x158] sm:$0xff]  ;;  %v8410_v24 = vcombine.low %v3987_v2, %v3991_v5 }
 0x374   :  { %7216 = vmatprep.subr.bf16.mxu0 %v8839_v35  ;;  %7388 = vmatprep.subr.bf16.mxu1 %v8841_v36  ;;  %v8379_v35 = vcombine.high %v3955_v31, %v3959_v58  ;;  %v8381_v36 = vcombine.high %v3956_v32, %v3960_v33  ;;  %v4000_v19 = vld [vmem:[#allocation8 + $0x178] sm:$0xff] }
 0x377   :  { %7217 = vmatpush1.bf16.msra.mxu0 %v8838_v41  ;;  %7389 = vmatpush1.bf16.msra.mxu1 %v8840_v42  ;;  %v8378_v41 = vcombine.low %v3955_v31, %v3959_v58  ;;  %v8380_v42 = vcombine.low %v3956_v32, %v3960_v33  ;;  %v4007_v31 = vld [vmem:[#allocation8 + $0x1b0] sm:$0xff]  ;;  %v4004_v58 = vld [vmem:[#allocation8 + $0x198] sm:$0xff] }
 0x378   :  { %7218 = vmatprep.subr.bf16.mxu0 %v8847_v63  ;;  %7390 = vmatprep.subr.bf16.mxu1 %v8849_v44  ;;  %v8387_v63 = vcombine.high %v3963_v38, %v3967_v57  ;;  %v8389_v44 = vcombine.high %v3964_v39, %v3968_v40  ;;  %v4008_v32 = vld [vmem:[#allocation8 + $0x1b8] sm:$0xff] }
 0x37b   :  { %7219 = vmatpush1.bf16.msra.mxu0 %v8846_v47  ;;  %7391 = vmatpush1.bf16.msra.mxu1 %v8848_v48  ;;  %v8386_v47 = vcombine.low %v3963_v38, %v3967_v57  ;;  %v8388_v48 = vcombine.low %v3964_v39, %v3968_v40  ;;  %v4015_v38 = vld [vmem:[#allocation8 + $0x1f0] sm:$0xff]  ;;  %v4012_v57 = vld [vmem:[#allocation8 + $0x1d8] sm:$0xff] }
 0x37c   :  { %7220 = vmatprep.subr.bf16.mxu0 %v8855_v49  ;;  %7392 = vmatprep.subr.bf16.mxu1 %v8857_v50  ;;  %v8395_v49 = vcombine.high %v3971_v45, %v3975_v27  ;;  %v8397_v50 = vcombine.high %v3972_v25, %v3976_v46  ;;  %v4016_v39 = vld [vmem:[#allocation8 + $0x1f8] sm:$0xff] }
 0x37f   :  { %7221 = vmatpush1.bf16.msra.mxu0 %v8854_v59  ;;  %7393 = vmatpush1.bf16.msra.mxu1 %v8856_v60  ;;  %v8394_v59 = vcombine.low %v3971_v45, %v3975_v27  ;;  %v8396_v60 = vcombine.low %v3972_v25, %v3976_v46  ;;  %v4023_v45 = vld [vmem:[#allocation8 + $0x230] sm:$0xff]  ;;  %v4020_v27 = vld [vmem:[#allocation8 + $0x218] sm:$0xff] }
 0x380   :  { %7222 = vmatprep.subr.bf16.mxu0 %v8863_v61  ;;  %7394 = vmatprep.subr.bf16.mxu1 %v8865_v0  ;;  %v8403_v61 = vcombine.high %v3979_v51, %v3983_v52  ;;  %v8405_v0 = vcombine.high %v3980_v54, %v3984_v37  ;;  %v4024_v25 = vld [vmem:[#allocation8 + $0x238] sm:$0xff]  ;;  %v4031_v51 = vld [vmem:[#allocation8 + $0x270] sm:$0xff] }
 0x381   :  { %v4028_v52 = vld [vmem:[#allocation8 + $0x258] sm:$0xff] }
 0x383   :  { %7223 = vmatpush1.bf16.msra.mxu0 %v8862_v10  ;;  %7395 = vmatpush1.bf16.msra.mxu1 %v8864_v12  ;;  %v8404_v10 = vcombine.low %v3980_v54, %v3984_v37  ;;  %v8411_v12 = vcombine.high %v3987_v2, %v3991_v5  ;;  %v4032_v54 = vld [vmem:[#allocation8 + $0x278] sm:$0xff]  ;;  %v4039_v2 = vld [vmem:[#allocation8 + $0x2b0] sm:$0xff] }
 0x384   :  { %7224 = vmatprep.subr.bf16.mxu0 %v8871_v13  ;;  %7396 = vmatprep.subr.bf16.mxu1 %v8873_v14  ;;  %v3995_v14 = vld [vmem:[#allocation8 + $0x150] sm:$0xff]  ;;  %v4036_v5 = vld [vmem:[#allocation8 + $0x298] sm:$0xff] }
 0x385   :  { %v8418_v33 = vcombine.low %v3995_v14, %v3999_v17 }
 0x387   :  { %7225 = vmatpush1.bf16.msra.mxu0 %v8870_v26  ;;  %7397 = vmatpush1.bf16.msra.mxu1 %v8872_v28  ;;  %v8419_v28 = vcombine.high %v3995_v14, %v3999_v17  ;;  %v4047_v14 = vld [vmem:[#allocation8 + $0x2f0] sm:$0xff]  ;;  %v4044_v17 = vld [vmem:[#allocation8 + $0x2d8] sm:$0xff] }
 0x388   :  { %7226 = vmatprep.subr.bf16.mxu0 %v8879_v29  ;;  %7398 = vmatprep.subr.bf16.mxu1 %v8881_v30  ;;  %v8421_v29 = vcombine.high %v3996_v18, %v4000_v19  ;;  %v4003_v30 = vld [vmem:[#allocation8 + $0x190] sm:$0xff] }
 0x389   :  { %v8426_v40 = vcombine.low %v4003_v30, %v4007_v31 }
 0x38b   :  { %7227 = vmatpush1.bf16.msra.mxu0 %v8878_v34  ;;  %7399 = vmatpush1.bf16.msra.mxu1 %v8880_v15  ;;  %v8420_v34 = vcombine.low %v3996_v18, %v4000_v19  ;;  %v8427_v15 = vcombine.high %v4003_v30, %v4007_v31  ;;  %v4048_v18 = vld [vmem:[#allocation8 + $0x2f8] sm:$0xff]  ;;  %v4055_v30 = vld [vmem:[#allocation8 + $0x330] sm:$0xff] }
 0x38c   :  { %7411 = vmatprep.subr.bf16.mxu0 %v8379_v35  ;;  %7583 = vmatprep.subr.bf16.mxu1 %v8381_v36  ;;  %v8429_v35 = vcombine.high %v4004_v58, %v4008_v32  ;;  %v4011_v36 = vld [vmem:[#allocation8 + $0x1d0] sm:$0xff]  ;;  %v4052_v31 = vld [vmem:[#allocation8 + $0x318] sm:$0xff] }
 0x38d   :  { %v8434_v46 = vcombine.low %v4011_v36, %v4015_v38 }
 0x38e   :  { %7229 = vmatmul.mubr.bf16.vlgmr.msra.gmra.mrb[8].mxu0 %v9399_v55  ;;  %7401 = vmatmul.mubr.bf16.vlgmr.msra.gmra.mrb[8].mxu1 %v9399_v55 }
 0x38f   :  { %7412 = vmatpush1.bf16.msra.mxu0 %v8378_v41  ;;  %7443 = vmatprep.mubr.bf16.mxu0 %v9355_v4  ;;  %v8428_v41 = vcombine.low %v4004_v58, %v4008_v32  ;;  %v4056_v58 = vld [vmem:[#allocation8 + $0x338] sm:$0xff] }
 0x390   :  { %7584 = vmatpush1.bf16.msra.mxu1 %v8380_v42  ;;  %7615 = vmatprep.mubr.bf16.mxu1 %v9355_v4  ;;  %v3988_v4 = vld [vmem:[#allocation8 + $0x118] sm:$0xff]  ;;  %v8435_v42 = vcombine.high %v4011_v36, %v4015_v38  ;;  %v4063_v36 = vld [vmem:[#allocation8 + $0x370] sm:$0xff] }
 0x391   :  { %7413 = vmatprep.subr.bf16.mxu0 %v8387_v63  ;;  %7585 = vmatprep.subr.bf16.mxu1 %v8389_v44  ;;  %v8413_v13 = vcombine.high %v3988_v4, %v3992_v8  ;;  %v8412_v26 = vcombine.low %v3988_v4, %v3992_v8  ;;  %v8437_v63 = vcombine.high %v4012_v57, %v4016_v39  ;;  %v4019_v44 = vld [vmem:[#allocation8 + $0x210] sm:$0xff]  ;;  %v4040_v4 = vld [vmem:[#allocation8 + $0x2b8] sm:$0xff] }
 0x392   :  { %v8442_v37 = vcombine.low %v4019_v44, %v4023_v45  ;;  %v4060_v38 = vld [vmem:[#allocation8 + $0x358] sm:$0xff] }
 0x393   :  { %7414 = vmatpush1.bf16.msra.mxu0 %v8386_v47  ;;  %v8436_v47 = vcombine.low %v4012_v57, %v4016_v39  ;;  %v4064_v57 = vld [vmem:[#allocation8 + $0x378] sm:$0xff] }
 0x394   :  { %7586 = vmatpush1.bf16.msra.mxu1 %v8388_v48  ;;  %7415 = vmatprep.subr.bf16.mxu0 %v8395_v49  ;;  %v8443_v48 = vcombine.high %v4019_v44, %v4023_v45  ;;  %v8445_v49 = vcombine.high %v4020_v27, %v4024_v25  ;;  %v4071_v44 = vld [vmem:[#allocation8 + $0x3b0] sm:$0xff]  ;;  %v4068_v45 = vld [vmem:[#allocation8 + $0x398] sm:$0xff] }
 0x395   :  { %7587 = vmatprep.subr.bf16.mxu1 %v8397_v50  ;;  %v4027_v50 = vld [vmem:[#allocation8 + $0x250] sm:$0xff] }
 0x396   :  { %v8450_v8 = vcombine.low %v4027_v50, %v4031_v51 }
 0x397   :  { %7416 = vmatpush1.bf16.msra.mxu0 %v8394_v59  ;;  %v8444_v59 = vcombine.low %v4020_v27, %v4024_v25  ;;  %v4072_v27 = vld [vmem:[#allocation8 + $0x3b8] sm:$0xff] }
 0x398   :  { %7588 = vmatpush1.bf16.msra.mxu1 %v8396_v60  ;;  %7417 = vmatprep.subr.bf16.mxu0 %v8403_v61  ;;  %v8451_v60 = vcombine.high %v4027_v50, %v4031_v51  ;;  %v8453_v61 = vcombine.high %v4028_v52, %v4032_v54  ;;  %v4079_v50 = vld [vmem:[#allocation8 + $0x3f0] sm:$0xff]  ;;  %v4076_v51 = vld [vmem:[#allocation8 + $0x3d8] sm:$0xff] }
 0x399   :  { %7589 = vmatprep.subr.bf16.mxu1 %v8405_v0  ;;  %v4035_v0 = vld [vmem:[#allocation8 + $0x290] sm:$0xff] }
 0x39a   :  { %v8458_v19 = vcombine.low %v4035_v0, %v4039_v2 }
 0x39b   :  { %7418 = vmatpush1.bf16.msra.mxu0 %v8402_v16  ;;  %v8452_v16 = vcombine.low %v4028_v52, %v4032_v54  ;;  %v4080_v52 = vld [vmem:[#allocation8 + $0x3f8] sm:$0xff] }
 0x39c   :  { %7590 = vmatpush1.bf16.msra.mxu1 %v8404_v10  ;;  %7419 = vmatprep.subr.bf16.mxu0 %v8411_v12  ;;  %v8459_v10 = vcombine.high %v4035_v0, %v4039_v2  ;;  %v8461_v12 = vcombine.high %v4036_v5, %v4040_v4  ;;  %v4087_v0 = vld [vmem:[#allocation8 + $0x430] sm:$0xff]  ;;  %v4084_v2 = vld [vmem:[#allocation8 + $0x418] sm:$0xff] }
 0x39d   :  { %7591 = vmatprep.subr.bf16.mxu1 %v8413_v13  ;;  %v4043_v13 = vld [vmem:[#allocation8 + $0x2d0] sm:$0xff] }
 0x39e   :  { %v8466_v32 = vcombine.low %v4043_v13, %v4047_v14 }
 0x39f   :  { %7420 = vmatpush1.bf16.msra.mxu0 %v8410_v24  ;;  %v8460_v24 = vcombine.low %v4036_v5, %v4040_v4  ;;  %v4088_v5 = vld [vmem:[#allocation8 + $0x438] sm:$0xff] }
 0x3a0   :  { %7592 = vmatpush1.bf16.msra.mxu1 %v8412_v26  ;;  %7421 = vmatprep.subr.bf16.mxu0 %v8419_v28  ;;  %v8467_v26 = vcombine.high %v4043_v13, %v4047_v14  ;;  %v8469_v28 = vcombine.high %v4044_v17, %v4048_v18  ;;  %v4095_v13 = vld [vmem:[#allocation8 + $0x470] sm:$0xff] }
 0x3a1   :  { %7593 = vmatprep.subr.bf16.mxu1 %v8421_v29  ;;  %v4051_v29 = vld [vmem:[#allocation8 + $0x310] sm:$0xff] }
 0x3a2   :  { %v8474_v39 = vcombine.low %v4051_v29, %v4055_v30 }
 0x3a3   :  { %7422 = vmatpush1.bf16.msra.mxu0 %v8418_v33  ;;  %v8468_v33 = vcombine.low %v4044_v17, %v4048_v18  ;;  %v4092_v17 = vld [vmem:[#allocation8 + $0x458] sm:$0xff] }
 0x3a4   :  { %7594 = vmatpush1.bf16.msra.mxu1 %v8420_v34  ;;  %7423 = vmatprep.subr.bf16.mxu0 %v8427_v15  ;;  %v8475_v34 = vcombine.high %v4051_v29, %v4055_v30  ;;  %v8477_v15 = vcombine.high %v4052_v31, %v4056_v58  ;;  %v4096_v18 = vld [vmem:[#allocation8 + $0x478] sm:$0xff] }
 0x3a5   :  { %7595 = vmatprep.subr.bf16.mxu1 %v8429_v35  ;;  %v4059_v35 = vld [vmem:[#allocation8 + $0x350] sm:$0xff]  ;;  %v8517_v29 = vcombine.high %v4092_v17, %v4096_v18  ;;  %v4100_v30 = vld [vmem:[#allocation8 + $0x498] sm:$0xff] }
 0x3a6   :  { %v8482_v25 = vcombine.low %v4059_v35, %v4063_v36 }
 0x3a7   :  { %7424 = vmatpush1.bf16.msra.mxu0 %v8426_v40  ;;  %v8476_v40 = vcombine.low %v4052_v31, %v4056_v58  ;;  %v4104_v31 = vld [vmem:[#allocation8 + $0x4b8] sm:$0xff] }
 0x3a8   :  { %7596 = vmatpush1.bf16.msra.mxu1 %v8428_v41  ;;  %7425 = vmatprep.subr.bf16.mxu0 %v8435_v42  ;;  %v8483_v41 = vcombine.high %v4059_v35, %v4063_v36  ;;  %v8485_v42 = vcombine.high %v4060_v38, %v4064_v57  ;;  %v4111_v35 = vld [vmem:[#allocation8 + $0x4f0] sm:$0xff]  ;;  %v4108_v36 = vld [vmem:[#allocation8 + $0x4d8] sm:$0xff] }
 0x3a9   :  { %7597 = vmatprep.subr.bf16.mxu1 %v8437_v63  ;;  %v4067_v63 = vld [vmem:[#allocation8 + $0x390] sm:$0xff] }
 0x3aa   :  { %v8490_v54 = vcombine.low %v4067_v63, %v4071_v44 }
 0x3ab   :  { %7426 = vmatpush1.bf16.msra.mxu0 %v8434_v46  ;;  %v8484_v46 = vcombine.low %v4060_v38, %v4064_v57  ;;  %v4112_v38 = vld [vmem:[#allocation8 + $0x4f8] sm:$0xff] }
 0x3ac   :  { %7598 = vmatpush1.bf16.msra.mxu1 %v8436_v47  ;;  %7427 = vmatprep.subr.bf16.mxu0 %v8443_v48  ;;  %v8491_v47 = vcombine.high %v4067_v63, %v4071_v44  ;;  %v8493_v48 = vcombine.high %v4068_v45, %v4072_v27  ;;  %v4116_v63 = vld [vmem:[#allocation8 + $0x518] sm:$0xff] }
 0x3ad   :  { %7599 = vmatprep.subr.bf16.mxu1 %v8445_v49  ;;  %v4075_v49 = vld [vmem:[#allocation8 + $0x3d0] sm:$0xff]  ;;  %v4120_v44 = vld [vmem:[#allocation8 + $0x538] sm:$0xff] }
 0x3ae   :  { %v8498_v4 = vcombine.low %v4075_v49, %v4079_v50 }
 0x3af   :  { %7428 = vmatpush1.bf16.msra.mxu0 %v8442_v37  ;;  %v8492_v37 = vcombine.low %v4068_v45, %v4072_v27  ;;  %v8532_v45 = vcombine.low %v4108_v36, %v4112_v38 }
 0x3b0   :  { %7600 = vmatpush1.bf16.msra.mxu1 %v8444_v59  ;;  %7429 = vmatprep.subr.bf16.mxu0 %v8451_v60  ;;  %v8499_v59 = vcombine.high %v4075_v49, %v4079_v50  ;;  %v8501_v60 = vcombine.high %v4076_v51, %v4080_v52  ;;  %v4128_v49 = vld [vmem:[#allocation8 + $0x578] sm:$0xff] }
 0x3b1   :  { %7601 = vmatprep.subr.bf16.mxu1 %v8453_v61  ;;  %v4083_v61 = vld [vmem:[#allocation8 + $0x410] sm:$0xff] }
 0x3b2   :  { %v8506_v14 = vcombine.low %v4083_v61, %v4087_v0 }
 0x3b3   :  { %7430 = vmatpush1.bf16.msra.mxu0 %v8450_v8  ;;  %v8500_v8 = vcombine.low %v4076_v51, %v4080_v52  ;;  %v8540_v51 = vcombine.low %v4116_v63, %v4120_v44 }
 0x3b4   :  { %7602 = vmatpush1.bf16.msra.mxu1 %v8452_v16  ;;  %7431 = vmatprep.subr.bf16.mxu0 %v8459_v10  ;;  %v8507_v16 = vcombine.high %v4083_v61, %v4087_v0  ;;  %v8509_v10 = vcombine.high %v4084_v2, %v4088_v5  ;;  %v4136_v61 = vld [vmem:[#allocation8 + $0x5b8] sm:$0xff] }
 0x3b5   :  { %7603 = vmatprep.subr.bf16.mxu1 %v8461_v12  ;;  %v4091_v12 = vld [vmem:[#allocation8 + $0x450] sm:$0xff] }
 0x3b6   :  { %v8514_v58 = vcombine.low %v4091_v12, %v4095_v13 }
 0x3b7   :  { %7432 = vmatpush1.bf16.msra.mxu0 %v8458_v19  ;;  %v8508_v19 = vcombine.low %v4084_v2, %v4088_v5 }
 0x3b8   :  { %7604 = vmatpush1.bf16.msra.mxu1 %v8460_v24  ;;  %7433 = vmatprep.subr.bf16.mxu0 %v8467_v26  ;;  %v8515_v24 = vcombine.high %v4091_v12, %v4095_v13  ;;  %v4099_v26 = vld [vmem:[#allocation8 + $0x490] sm:$0xff]  ;;  %v4144_v12 = vld [vmem:[#allocation8 + $0x5f8] sm:$0xff] }
 0x3b9   :  { %7605 = vmatprep.subr.bf16.mxu1 %v8469_v28  ;;  %v4103_v28 = vld [vmem:[#allocation8 + $0x4b0] sm:$0xff] }
 0x3ba   :  { %v8522_v57 = vcombine.low %v4099_v26, %v4103_v28 }
 0x3bb   :  { %7434 = vmatpush1.bf16.msra.mxu0 %v8466_v32  ;;  %v8516_v32 = vcombine.low %v4092_v17, %v4096_v18 }
 0x3bc   :  { %7606 = vmatpush1.bf16.msra.mxu1 %v8468_v33  ;;  %7435 = vmatprep.subr.bf16.mxu0 %v8475_v34  ;;  %v8523_v33 = vcombine.high %v4099_v26, %v4103_v28  ;;  %v8525_v34 = vcombine.high %v4100_v30, %v4104_v31  ;;  %v4148_v26 = vld [vmem:[#allocation8 + $0x618] sm:$0xff] }
 0x3bd   :  { %7607 = vmatprep.subr.bf16.mxu1 %v8477_v15  ;;  %v4107_v15 = vld [vmem:[#allocation8 + $0x4d0] sm:$0xff]  ;;  %v4152_v28 = vld [vmem:[#allocation8 + $0x638] sm:$0xff] }
 0x3bf   :  { %7436 = vmatpush1.bf16.msra.mxu0 %v8474_v39  ;;  %v8531_v39 = vcombine.high %v4107_v15, %v4111_v35 }
 0x3c0   :  { %7608 = vmatpush1.bf16.msra.mxu1 %v8476_v40  ;;  %7437 = vmatprep.subr.bf16.mxu0 %v8483_v41  ;;  %v8533_v40 = vcombine.high %v4108_v36, %v4112_v38  ;;  %v4115_v41 = vld [vmem:[#allocation8 + $0x510] sm:$0xff]  ;;  %v8572_v36 = vcombine.low %v4148_v26, %v4152_v28 }
 0x3c1   :  { %7609 = vmatprep.subr.bf16.mxu1 %v8485_v42  ;;  %v4119_v42 = vld [vmem:[#allocation8 + $0x530] sm:$0xff] }
 0x3c2   :  { %v8539_v27 = vcombine.high %v4115_v41, %v4119_v42  ;;  %v8538_v50 = vcombine.low %v4115_v41, %v4119_v42  ;;  %v4168_v41 = vld [vmem:[#allocation8 + $0x6b8] sm:$0xff] }
 0x3c3   :  { %7438 = vmatpush1.bf16.msra.mxu0 %v8482_v25  ;;  %v8541_v25 = vcombine.high %v4116_v63, %v4120_v44 }
 0x3c4   :  { %7610 = vmatpush1.bf16.msra.mxu1 %v8484_v46  ;;  %7439 = vmatprep.subr.bf16.mxu0 %v8491_v47  ;;  %v4123_v46 = vld [vmem:[#allocation8 + $0x550] sm:$0xff] }
 0x3c5   :  { %7611 = vmatprep.subr.bf16.mxu1 %v8493_v48  ;;  %v4127_v47 = vld [vmem:[#allocation8 + $0x570] sm:$0xff]  ;;  %v4124_v48 = vld [vmem:[#allocation8 + $0x558] sm:$0xff] }
 0x3c6   :  { %v8547_v52 = vcombine.high %v4123_v46, %v4127_v47  ;;  %v8546_v0 = vcombine.low %v4123_v46, %v4127_v47  ;;  %v8548_v2 = vcombine.low %v4124_v48, %v4128_v49  ;;  %v4176_v46 = vld [vmem:[#allocation8 + $0x6f8] sm:$0xff] }
 0x3c7   :  { %7440 = vmatpush1.bf16.msra.mxu0 %v8490_v54  ;;  %v8549_v54 = vcombine.high %v4124_v48, %v4128_v49 }
 0x3c8   :  { %7612 = vmatpush1.bf16.msra.mxu1 %v8492_v37  ;;  %7441 = vmatprep.subr.bf16.mxu0 %v8499_v59  ;;  %v4131_v37 = vld [vmem:[#allocation8 + $0x590] sm:$0xff] }
 0x3c9   :  { %7613 = vmatprep.subr.bf16.mxu1 %v8501_v60  ;;  %v4135_v59 = vld [vmem:[#allocation8 + $0x5b0] sm:$0xff]  ;;  %v4132_v60 = vld [vmem:[#allocation8 + $0x598] sm:$0xff] }
 0x3ca   :  { %v8555_v5 = vcombine.high %v4131_v37, %v4135_v59  ;;  %v8554_v13 = vcombine.low %v4131_v37, %v4135_v59  ;;  %v4184_v37 = vld [vmem:[#allocation8 + $0x738] sm:$0xff] }
 0x3cb   :  { %7442 = vmatpush1.bf16.msra.mxu0 %v8498_v4  ;;  %v8557_v4 = vcombine.high %v4132_v60, %v4136_v61 }
 0x3cc   :  { %7614 = vmatpush1.bf16.msra.mxu1 %v8500_v8  ;;  %7454 = vmatprep.subr.bf16.mxu0 %v8507_v16  ;;  %v4139_v8 = vld [vmem:[#allocation8 + $0x5d0] sm:$0xff] }
 0x3cd   :  { %7626 = vmatprep.subr.bf16.mxu1 %v8509_v10  ;;  %v4143_v16 = vld [vmem:[#allocation8 + $0x5f0] sm:$0xff]  ;;  %v4140_v10 = vld [vmem:[#allocation8 + $0x5d8] sm:$0xff] }
 0x3ce   :  { %7444 = vmatmul.mubr.bf16.vlgmr.msra.gmra.mrb[12].mxu0 %v9351_v62  ;;  %v8563_v17 = vcombine.high %v4139_v8, %v4143_v16  ;;  %v8565_v18 = vcombine.high %v4140_v10, %v4144_v12 }
 0x3cf   :  { %7616 = vmatmul.mubr.bf16.vlgmr.msra.gmra.mrb[12].mxu1 %v9351_v62  ;;  %7455 = vmatpush1.bf16.msra.mxu0 %v8506_v14  ;;  %v8524_v62 = vcombine.low %v4100_v30, %v4104_v31  ;;  %v8556_v14 = vcombine.low %v4132_v60, %v4136_v61  ;;  %v8564_v30 = vcombine.low %v4140_v10, %v4144_v12 }
 0x3d0   :  { %7486 = vmatprep.mubr.bf16.mxu0 %v9357_v11  ;;  %7627 = vmatpush1.bf16.msra.mxu1 %v8508_v19  ;;  %v4147_v19 = vld [vmem:[#allocation8 + $0x610] sm:$0xff] }
 0x3d1   :  { %7658 = vmatprep.mubr.bf16.mxu1 %v9357_v11  ;;  %7456 = vmatprep.subr.bf16.mxu0 %v8515_v24  ;;  %v8530_v11 = vcombine.low %v4107_v15, %v4111_v35  ;;  %v4151_v24 = vld [vmem:[#allocation8 + $0x630] sm:$0xff]  ;;  %v4160_v15 = vld [vmem:[#allocation8 + $0x678] sm:$0xff] }
 0x3d2   :  { %7628 = vmatprep.subr.bf16.mxu1 %v8517_v29  ;;  %v8562_v29 = vcombine.low %v4139_v8, %v4143_v16  ;;  %v8571_v31 = vcombine.high %v4147_v19, %v4151_v24  ;;  %v8570_v35 = vcombine.low %v4147_v19, %v4151_v24  ;;  %v4192_v8 = vld [vmem:[#allocation8 + $0x778] sm:$0xff] }
 0x3d3   :  { %7457 = vmatpush1.bf16.msra.mxu0 %v8514_v58  ;;  %v8573_v58 = vcombine.high %v4148_v26, %v4152_v28  ;;  %v4200_v19 = vld [vmem:[#allocation8 + $0x7b8] sm:$0xff] }
 0x3d4   :  { %7629 = vmatpush1.bf16.msra.mxu1 %v8516_v32  ;;  %7458 = vmatprep.subr.bf16.mxu0 %v8523_v33  ;;  %v4155_v32 = vld [vmem:[#allocation8 + $0x650] sm:$0xff] }
 0x3d5   :  { %7630 = vmatprep.subr.bf16.mxu1 %v8525_v34  ;;  %v4159_v33 = vld [vmem:[#allocation8 + $0x670] sm:$0xff]  ;;  %v4156_v34 = vld [vmem:[#allocation8 + $0x658] sm:$0xff] }
 0x3d6   :  { %v8579_v38 = vcombine.high %v4155_v32, %v4159_v33  ;;  %v8578_v42 = vcombine.low %v4155_v32, %v4159_v33  ;;  %v8580_v63 = vcombine.low %v4156_v34, %v4160_v15  ;;  %v4208_v32 = vld [vmem:[#allocation8 + $0x7f8] sm:$0xff] }
 0x3d7   :  { %7459 = vmatpush1.bf16.msra.mxu0 %v8522_v57  ;;  %v8581_v57 = vcombine.high %v4156_v34, %v4160_v15 }
 0x3d8   :  { %7631 = vmatpush1.bf16.msra.mxu1 %v8524_v62  ;;  %7460 = vmatprep.subr.bf16.mxu0 %v8531_v39  ;;  %v4163_v62 = vld [vmem:[#allocation8 + $0x690] sm:$0xff] }
 0x3d9   :  { %7632 = vmatprep.subr.bf16.mxu1 %v8533_v40  ;;  %v4167_v39 = vld [vmem:[#allocation8 + $0x6b0] sm:$0xff]  ;;  %v4164_v40 = vld [vmem:[#allocation8 + $0x698] sm:$0xff] }
 0x3da   :  { %v8587_v44 = vcombine.high %v4163_v62, %v4167_v39  ;;  %v8586_v47 = vcombine.low %v4163_v62, %v4167_v39  ;;  %v8588_v48 = vcombine.low %v4164_v40, %v4168_v41  ;;  %v4216_v62 = vld [vmem:[#allocation8 + $0x838] sm:$0xff] }
 0x3db   :  { %7461 = vmatpush1.bf16.msra.mxu0 %v8530_v11  ;;  %v8589_v11 = vcombine.high %v4164_v40, %v4168_v41 }
 0x3dc   :  { %7633 = vmatpush1.bf16.msra.mxu1 %v8532_v45  ;;  %7462 = vmatprep.subr.bf16.mxu0 %v8539_v27  ;;  %v4171_v45 = vld [vmem:[#allocation8 + $0x6d0] sm:$0xff] }
 0x3dd   :  { %7634 = vmatprep.subr.bf16.mxu1 %v8541_v25  ;;  %v4175_v27 = vld [vmem:[#allocation8 + $0x6f0] sm:$0xff]  ;;  %v4172_v25 = vld [vmem:[#allocation8 + $0x6d8] sm:$0xff] }
 0x3de   :  { %v8595_v49 = vcombine.high %v4171_v45, %v4175_v27  ;;  %v8594_v59 = vcombine.low %v4171_v45, %v4175_v27  ;;  %v8596_v60 = vcombine.low %v4172_v25, %v4176_v46  ;;  %v4220_v45 = vld [vmem:[#allocation8 + $0x858] sm:$0xff] }
 0x3df   :  { %7463 = vmatpush1.bf16.msra.mxu0 %v8538_v50  ;;  %v8597_v50 = vcombine.high %v4172_v25, %v4176_v46  ;;  %v4224_v27 = vld [vmem:[#allocation8 + $0x878] sm:$0xff] }
 0x3e0   :  { %7635 = vmatpush1.bf16.msra.mxu1 %v8540_v51  ;;  %7464 = vmatprep.subr.bf16.mxu0 %v8547_v52  ;;  %v4179_v51 = vld [vmem:[#allocation8 + $0x710] sm:$0xff] }
 0x3e1   :  { %7636 = vmatprep.subr.bf16.mxu1 %v8549_v54  ;;  %v4183_v52 = vld [vmem:[#allocation8 + $0x730] sm:$0xff]  ;;  %v4180_v54 = vld [vmem:[#allocation8 + $0x718] sm:$0xff] }
 0x3e2   :  { %v8603_v61 = vcombine.high %v4179_v51, %v4183_v52  ;;  %v8602_v16 = vcombine.low %v4179_v51, %v4183_v52  ;;  %v8604_v10 = vcombine.low %v4180_v54, %v4184_v37  ;;  %v4232_v51 = vld [vmem:[#allocation8 + $0x8b8] sm:$0xff] }
 0x3e3   :  { %7465 = vmatpush1.bf16.msra.mxu0 %v8546_v0  ;;  %v8605_v0 = vcombine.high %v4180_v54, %v4184_v37  ;;  %v8644_v54 = vcombine.low %v4220_v45, %v4224_v27 }
 0x3e4   :  { %7637 = vmatpush1.bf16.msra.mxu1 %v8548_v2  ;;  %7466 = vmatprep.subr.bf16.mxu0 %v8555_v5  ;;  %v4187_v2 = vld [vmem:[#allocation8 + $0x750] sm:$0xff] }
 0x3e5   :  { %7638 = vmatprep.subr.bf16.mxu1 %v8557_v4  ;;  %v4191_v5 = vld [vmem:[#allocation8 + $0x770] sm:$0xff]  ;;  %v4188_v4 = vld [vmem:[#allocation8 + $0x758] sm:$0xff] }
 0x3e6   :  { %v8611_v12 = vcombine.high %v4187_v2, %v4191_v5  ;;  %v8610_v24 = vcombine.low %v4187_v2, %v4191_v5  ;;  %v8612_v26 = vcombine.low %v4188_v4, %v4192_v8  ;;  %v4240_v2 = vld [vmem:[#allocation8 + $0x8f8] sm:$0xff] }
 0x3e7   :  { %7467 = vmatpush1.bf16.msra.mxu0 %v8554_v13  ;;  %v8613_v13 = vcombine.high %v4188_v4, %v4192_v8 }
 0x3e8   :  { %7639 = vmatpush1.bf16.msra.mxu1 %v8556_v14  ;;  %7468 = vmatprep.subr.bf16.mxu0 %v8563_v17  ;;  %v4195_v14 = vld [vmem:[#allocation8 + $0x790] sm:$0xff] }
 0x3e9   :  { %7640 = vmatprep.subr.bf16.mxu1 %v8565_v18  ;;  %v4199_v17 = vld [vmem:[#allocation8 + $0x7b0] sm:$0xff]  ;;  %v4196_v18 = vld [vmem:[#allocation8 + $0x798] sm:$0xff] }
 0x3ea   :  { %v8619_v28 = vcombine.high %v4195_v14, %v4199_v17  ;;  %v8618_v33 = vcombine.low %v4195_v14, %v4199_v17  ;;  %v8620_v34 = vcombine.low %v4196_v18, %v4200_v19 }
 0x3eb   :  { %7469 = vmatpush1.bf16.msra.mxu0 %v8562_v29  ;;  %v8621_v29 = vcombine.high %v4196_v18, %v4200_v19  ;;  %v4251_v19 = vld [vmem:[#allocation8 + $0x950] sm:$0xff] }
 0x3ec   :  { %7641 = vmatpush1.bf16.msra.mxu1 %v8564_v30  ;;  %7470 = vmatprep.subr.bf16.mxu0 %v8571_v31  ;;  %v4203_v30 = vld [vmem:[#allocation8 + $0x7d0] sm:$0xff] }
 0x3ed   :  { %7642 = vmatprep.subr.bf16.mxu1 %v8573_v58  ;;  %v4207_v31 = vld [vmem:[#allocation8 + $0x7f0] sm:$0xff]  ;;  %v4204_v58 = vld [vmem:[#allocation8 + $0x7d8] sm:$0xff] }
 0x3ee   :  { %v8627_v15 = vcombine.high %v4203_v30, %v4207_v31  ;;  %v8626_v39 = vcombine.low %v4203_v30, %v4207_v31  ;;  %v8628_v40 = vcombine.low %v4204_v58, %v4208_v32 }
 0x3ef   :  { %7471 = vmatpush1.bf16.msra.mxu0 %v8570_v35  ;;  %v8629_v35 = vcombine.high %v4204_v58, %v4208_v32  ;;  %v4259_v32 = vld [vmem:[#allocation8 + $0x990] sm:$0xff] }
 0x3f0   :  { %7643 = vmatpush1.bf16.msra.mxu1 %v8572_v36  ;;  %7472 = vmatprep.subr.bf16.mxu0 %v8579_v38  ;;  %v4211_v36 = vld [vmem:[#allocation8 + $0x810] sm:$0xff] }
 0x3f1   :  { %7644 = vmatprep.subr.bf16.mxu1 %v8581_v57  ;;  %v4215_v38 = vld [vmem:[#allocation8 + $0x830] sm:$0xff]  ;;  %v4212_v57 = vld [vmem:[#allocation8 + $0x818] sm:$0xff] }
 0x3f2   :  { %v8635_v41 = vcombine.high %v4211_v36, %v4215_v38  ;;  %v8636_v25 = vcombine.low %v4212_v57, %v4216_v62 }
 0x3f3   :  { %7473 = vmatpush1.bf16.msra.mxu0 %v8578_v42  ;;  %v8637_v42 = vcombine.high %v4212_v57, %v4216_v62  ;;  %v4267_v62 = vld [vmem:[#allocation8 + $0x9d0] sm:$0xff] }
 0x3f4   :  { %7645 = vmatpush1.bf16.msra.mxu1 %v8580_v63  ;;  %7474 = vmatprep.subr.bf16.mxu0 %v8587_v44  ;;  %v4219_v63 = vld [vmem:[#allocation8 + $0x850] sm:$0xff] }
 0x3f5   :  { %7646 = vmatprep.subr.bf16.mxu1 %v8589_v11  ;;  %v4223_v44 = vld [vmem:[#allocation8 + $0x870] sm:$0xff]  ;;  %v8634_v11 = vcombine.low %v4211_v36, %v4215_v38 }
 0x3f6   :  { %v8643_v46 = vcombine.high %v4219_v63, %v4223_v44  ;;  %v8642_v52 = vcombine.low %v4219_v63, %v4223_v44 }
 0x3f7   :  { %7475 = vmatpush1.bf16.msra.mxu0 %v8586_v47  ;;  %v4227_v47 = vld [vmem:[#allocation8 + $0x890] sm:$0xff] }
 0x3f8   :  { %7647 = vmatpush1.bf16.msra.mxu1 %v8588_v48  ;;  %7476 = vmatprep.subr.bf16.mxu0 %v8595_v49  ;;  %v4231_v48 = vld [vmem:[#allocation8 + $0x8b0] sm:$0xff]  ;;  %v8645_v49 = vcombine.high %v4220_v45, %v4224_v27 }
 0x3f9   :  { %7648 = vmatprep.subr.bf16.mxu1 %v8597_v50  ;;  %v4228_v50 = vld [vmem:[#allocation8 + $0x898] sm:$0xff]  ;;  %v8651_v37 = vcombine.high %v4227_v47, %v4231_v48  ;;  %v8650_v5 = vcombine.low %v4227_v47, %v4231_v48  ;;  %v4275_v45 = vld [vmem:[#allocation8 + $0xa10] sm:$0xff] }
 0x3fa   :  { %v4279_v27 = vld [vmem:[#allocation8 + $0xa30] sm:$0xff] }
 0x3fb   :  { %7477 = vmatpush1.bf16.msra.mxu0 %v8594_v59  ;;  %v8653_v59 = vcombine.high %v4228_v50, %v4232_v51 }
 0x3fc   :  { %7649 = vmatpush1.bf16.msra.mxu1 %v8596_v60  ;;  %7478 = vmatprep.subr.bf16.mxu0 %v8603_v61  ;;  %v4235_v60 = vld [vmem:[#allocation8 + $0x8d0] sm:$0xff] }
 0x3fd   :  { %7650 = vmatprep.subr.bf16.mxu1 %v8605_v0  ;;  %v4239_v61 = vld [vmem:[#allocation8 + $0x8f0] sm:$0xff]  ;;  %v4236_v0 = vld [vmem:[#allocation8 + $0x8d8] sm:$0xff] }
 0x3fe   :  { %v8659_v4 = vcombine.high %v4235_v60, %v4239_v61  ;;  %v8661_v8 = vcombine.high %v4236_v0, %v4240_v2  ;;  %v8660_v14 = vcombine.low %v4236_v0, %v4240_v2  ;;  %v4291_v2 = vld [vmem:[#allocation8 + $0xa90] sm:$0xff] }
 0x3ff   :  { %7479 = vmatpush1.bf16.msra.mxu0 %v8602_v16  ;;  %v4243_v16 = vld [vmem:[#allocation8 + $0x910] sm:$0xff] }
 0x400   :  { %7651 = vmatpush1.bf16.msra.mxu1 %v8604_v10  ;;  %7480 = vmatprep.subr.bf16.mxu0 %v8611_v12  ;;  %v4247_v10 = vld [vmem:[#allocation8 + $0x930] sm:$0xff]  ;;  %v4244_v12 = vld [vmem:[#allocation8 + $0x918] sm:$0xff] }
 0x401   :  { %7652 = vmatprep.subr.bf16.mxu1 %v8613_v13  ;;  %v4248_v13 = vld [vmem:[#allocation8 + $0x938] sm:$0xff]  ;;  %v8667_v17 = vcombine.high %v4243_v16, %v4247_v10 }
 0x402   :  { %v8669_v18 = vcombine.high %v4244_v12, %v4248_v13  ;;  %v8668_v30 = vcombine.low %v4244_v12, %v4248_v13  ;;  %v4299_v13 = vld [vmem:[#allocation8 + $0xad0] sm:$0xff] }
 0x403   :  { %7481 = vmatpush1.bf16.msra.mxu0 %v8610_v24  ;;  %v4255_v24 = vld [vmem:[#allocation8 + $0x970] sm:$0xff] }
 0x404   :  { %7653 = vmatpush1.bf16.msra.mxu1 %v8612_v26  ;;  %7482 = vmatprep.subr.bf16.mxu0 %v8619_v28  ;;  %v4252_v26 = vld [vmem:[#allocation8 + $0x958] sm:$0xff]  ;;  %v8675_v31 = vcombine.high %v4251_v19, %v4255_v24 }
 0x405   :  { %7654 = vmatprep.subr.bf16.mxu1 %v8621_v29  ;;  %v4256_v28 = vld [vmem:[#allocation8 + $0x978] sm:$0xff]  ;;  %v8666_v29 = vcombine.low %v4243_v16, %v4247_v10 }
 0x406   :  { %v8677_v58 = vcombine.high %v4252_v26, %v4256_v28  ;;  %v8676_v36 = vcombine.low %v4252_v26, %v4256_v28  ;;  %v4307_v28 = vld [vmem:[#allocation8 + $0xb10] sm:$0xff] }
 0x407   :  { %7483 = vmatpush1.bf16.msra.mxu0 %v8618_v33  ;;  %v4263_v33 = vld [vmem:[#allocation8 + $0x9b0] sm:$0xff] }
 0x408   :  { %7655 = vmatpush1.bf16.msra.mxu1 %v8620_v34  ;;  %7484 = vmatprep.subr.bf16.mxu0 %v8627_v15  ;;  %v4260_v34 = vld [vmem:[#allocation8 + $0x998] sm:$0xff]  ;;  %v8683_v38 = vcombine.high %v4259_v32, %v4263_v33 }
 0x409   :  { %7656 = vmatprep.subr.bf16.mxu1 %v8629_v35  ;;  %v4264_v15 = vld [vmem:[#allocation8 + $0x9b8] sm:$0xff]  ;;  %v8674_v35 = vcombine.low %v4251_v19, %v4255_v24 }
 0x40a   :  { %v8685_v57 = vcombine.high %v4260_v34, %v4264_v15  ;;  %v8684_v63 = vcombine.low %v4260_v34, %v4264_v15  ;;  %v4315_v15 = vld [vmem:[#allocation8 + $0xb50] sm:$0xff] }
 0x40b   :  { %7485 = vmatpush1.bf16.msra.mxu0 %v8626_v39  ;;  %v4271_v39 = vld [vmem:[#allocation8 + $0x9f0] sm:$0xff] }
 0x40c   :  { %7657 = vmatpush1.bf16.msra.mxu1 %v8628_v40  ;;  %7497 = vmatprep.subr.bf16.mxu0 %v8635_v41  ;;  %v4268_v40 = vld [vmem:[#allocation8 + $0x9d8] sm:$0xff]  ;;  %v8691_v44 = vcombine.high %v4267_v62, %v4271_v39  ;;  %v8690_v47 = vcombine.low %v4267_v62, %v4271_v39 }
 0x40d   :  { %7669 = vmatprep.subr.bf16.mxu1 %v8637_v42  ;;  %v4272_v41 = vld [vmem:[#allocation8 + $0x9f8] sm:$0xff]  ;;  %v8682_v42 = vcombine.low %v4259_v32, %v4263_v33 }
 0x40e   :  { %7487 = vmatmul.mubr.bf16.vlgmr.msra.gmra.mrb[12].mxu0 %v9353_v3  ;;  %v8692_v48 = vcombine.low %v4268_v40, %v4272_v41 }
 0x40f   :  { %7659 = vmatmul.mubr.bf16.vlgmr.msra.gmra.mrb[12].mxu1 %v9353_v3  ;;  %7498 = vmatpush1.bf16.msra.mxu0 %v8634_v11  ;;  %v8652_v3 = vcombine.low %v4228_v50, %v4232_v51  ;;  %v8693_v11 = vcombine.high %v4268_v40, %v4272_v41  ;;  %v4283_v51 = vld [vmem:[#allocation8 + $0xa50] sm:$0xff] }
 0x410   :  { %7529 = vmatprep.mubr.bf16.mxu0 %v9401_v56  ;;  %7670 = vmatpush1.bf16.msra.mxu1 %v8636_v25  ;;  %v4276_v25 = vld [vmem:[#allocation8 + $0xa18] sm:$0xff]  ;;  %v4323_v41 = vld [vmem:[#allocation8 + $0xb90] sm:$0xff] }
 0x411   :  { %7701 = vmatprep.mubr.bf16.mxu1 %v9401_v56  ;;  %7499 = vmatprep.subr.bf16.mxu0 %v8643_v46  ;;  %v8658_v56 = vcombine.low %v4235_v60, %v4239_v61  ;;  %v4280_v46 = vld [vmem:[#allocation8 + $0xa38] sm:$0xff] }
 0x412   :  { %7671 = vmatprep.subr.bf16.mxu1 %v8645_v49  ;;  %v8699_v49 = vcombine.high %v4275_v45, %v4279_v27  ;;  %v8701_v50 = vcombine.high %v4276_v25, %v4280_v46  ;;  %v8700_v60 = vcombine.low %v4276_v25, %v4280_v46  ;;  %v4331_v46 = vld [vmem:[#allocation8 + $0xbd0] sm:$0xff] }
 0x413   :  { %7500 = vmatpush1.bf16.msra.mxu0 %v8642_v52  ;;  %v4287_v52 = vld [vmem:[#allocation8 + $0xa70] sm:$0xff] }
 0x414   :  { %7672 = vmatpush1.bf16.msra.mxu1 %v8644_v54  ;;  %7501 = vmatprep.subr.bf16.mxu0 %v8651_v37  ;;  %v4284_v54 = vld [vmem:[#allocation8 + $0xa58] sm:$0xff]  ;;  %v8707_v61 = vcombine.high %v4283_v51, %v4287_v52 }
 0x415   :  { %7673 = vmatprep.subr.bf16.mxu1 %v8653_v59  ;;  %v4288_v37 = vld [vmem:[#allocation8 + $0xa78] sm:$0xff]  ;;  %v8698_v59 = vcombine.low %v4275_v45, %v4279_v27 }
 0x416   :  { %v8709_v0 = vcombine.high %v4284_v54, %v4288_v37  ;;  %v8708_v16 = vcombine.low %v4284_v54, %v4288_v37  ;;  %v4339_v37 = vld [vmem:[#allocation8 + $0xc10] sm:$0xff] }
 0x417   :  { %7502 = vmatpush1.bf16.msra.mxu0 %v8650_v5  ;;  %v4295_v5 = vld [vmem:[#allocation8 + $0xab0] sm:$0xff] }
 0x418   :  { %7674 = vmatpush1.bf16.msra.mxu1 %v8652_v3  ;;  %7503 = vmatprep.subr.bf16.mxu0 %v8659_v4  ;;  %v4292_v3 = vld [vmem:[#allocation8 + $0xa98] sm:$0xff]  ;;  %v8715_v10 = vcombine.high %v4291_v2, %v4295_v5 }
 0x419   :  { %7675 = vmatprep.subr.bf16.mxu1 %v8661_v8  ;;  %v4296_v4 = vld [vmem:[#allocation8 + $0xab8] sm:$0xff]  ;;  %v8706_v8 = vcombine.low %v4283_v51, %v4287_v52 }
 0x41a   :  { %v8717_v12 = vcombine.high %v4292_v3, %v4296_v4  ;;  %v8716_v19 = vcombine.low %v4292_v3, %v4296_v4  ;;  %v4347_v4 = vld [vmem:[#allocation8 + $0xc50] sm:$0xff] }
 0x41b   :  { %7504 = vmatpush1.bf16.msra.mxu0 %v8658_v56  ;;  %v4303_v56 = vld [vmem:[#allocation8 + $0xaf0] sm:$0xff] }
 0x41c   :  { %7676 = vmatpush1.bf16.msra.mxu1 %v8660_v14  ;;  %7505 = vmatprep.subr.bf16.mxu0 %v8667_v17  ;;  %v4300_v14 = vld [vmem:[#allocation8 + $0xad8] sm:$0xff]  ;;  %v8723_v24 = vcombine.high %v4299_v13, %v4303_v56 }
 0x41d   :  { %7677 = vmatprep.subr.bf16.mxu1 %v8669_v18  ;;  %v4304_v17 = vld [vmem:[#allocation8 + $0xaf8] sm:$0xff]  ;;  %v8714_v18 = vcombine.low %v4291_v2, %v4295_v5 }
 0x41e   :  { %v8725_v26 = vcombine.high %v4300_v14, %v4304_v17  ;;  %v8724_v32 = vcombine.low %v4300_v14, %v4304_v17  ;;  %v4355_v14 = vld [vmem:[#allocation8 + $0xc90] sm:$0xff] }
 0x41f   :  { %7506 = vmatpush1.bf16.msra.mxu0 %v8666_v29  ;;  %v4311_v29 = vld [vmem:[#allocation8 + $0xb30] sm:$0xff] }
 0x420   :  { %7678 = vmatpush1.bf16.msra.mxu1 %v8668_v30  ;;  %7507 = vmatprep.subr.bf16.mxu0 %v8675_v31  ;;  %v4308_v30 = vld [vmem:[#allocation8 + $0xb18] sm:$0xff]  ;;  %v8731_v33 = vcombine.high %v4307_v28, %v4311_v29  ;;  %v4359_v17 = vld [vmem:[#allocation8 + $0xcb0] sm:$0xff] }
 0x421   :  { %7679 = vmatprep.subr.bf16.mxu1 %v8677_v58  ;;  %v4312_v31 = vld [vmem:[#allocation8 + $0xb38] sm:$0xff]  ;;  %v8722_v58 = vcombine.low %v4299_v13, %v4303_v56 }
 0x422   :  { %v8733_v34 = vcombine.high %v4308_v30, %v4312_v31  ;;  %v8732_v62 = vcombine.low %v4308_v30, %v4312_v31  ;;  %v4363_v31 = vld [vmem:[#allocation8 + $0xcd0] sm:$0xff] }
 0x423   :  { %7508 = vmatpush1.bf16.msra.mxu0 %v8674_v35  ;;  %v4319_v35 = vld [vmem:[#allocation8 + $0xb70] sm:$0xff] }
 0x424   :  { %7680 = vmatpush1.bf16.msra.mxu1 %v8676_v36  ;;  %7509 = vmatprep.subr.bf16.mxu0 %v8683_v38  ;;  %v4316_v36 = vld [vmem:[#allocation8 + $0xb58] sm:$0xff]  ;;  %v8739_v39 = vcombine.high %v4315_v15, %v4319_v35 }
 0x425   :  { %7681 = vmatprep.subr.bf16.mxu1 %v8685_v57  ;;  %v4320_v38 = vld [vmem:[#allocation8 + $0xb78] sm:$0xff]  ;;  %v8730_v57 = vcombine.low %v4307_v28, %v4311_v29  ;;  %v8779_v29 = vcombine.high %v4355_v14, %v4359_v17 }
 0x426   :  { %v8741_v40 = vcombine.high %v4316_v36, %v4320_v38  ;;  %v8740_v45 = vcombine.low %v4316_v36, %v4320_v38  ;;  %v4371_v36 = vld [vmem:[#allocation8 + $0xd10] sm:$0xff] }
 0x427   :  { %7510 = vmatpush1.bf16.msra.mxu0 %v8682_v42  ;;  %v4327_v42 = vld [vmem:[#allocation8 + $0xbb0] sm:$0xff] }
 0x428   :  { %7682 = vmatpush1.bf16.msra.mxu1 %v8684_v63  ;;  %7511 = vmatprep.subr.bf16.mxu0 %v8691_v44  ;;  %v4324_v63 = vld [vmem:[#allocation8 + $0xb98] sm:$0xff]  ;;  %v8747_v27 = vcombine.high %v4323_v41, %v4327_v42  ;;  %v4375_v38 = vld [vmem:[#allocation8 + $0xd30] sm:$0xff] }
 0x429   :  { %7683 = vmatprep.subr.bf16.mxu1 %v8693_v11  ;;  %v4328_v44 = vld [vmem:[#allocation8 + $0xbb8] sm:$0xff]  ;;  %v8738_v11 = vcombine.low %v4315_v15, %v4319_v35 }
 0x42a   :  { %v8749_v25 = vcombine.high %v4324_v63, %v4328_v44  ;;  %v8748_v51 = vcombine.low %v4324_v63, %v4328_v44  ;;  %v4383_v63 = vld [vmem:[#allocation8 + $0xd70] sm:$0xff]  ;;  %v4380_v44 = vld [vmem:[#allocation8 + $0xd58] sm:$0xff] }
 0x42b   :  { %7512 = vmatpush1.bf16.msra.mxu0 %v8690_v47  ;;  %v4335_v47 = vld [vmem:[#allocation8 + $0xbf0] sm:$0xff] }
 0x42c   :  { %7684 = vmatpush1.bf16.msra.mxu1 %v8692_v48  ;;  %7513 = vmatprep.subr.bf16.mxu0 %v8699_v49  ;;  %v4332_v48 = vld [vmem:[#allocation8 + $0xbd8] sm:$0xff]  ;;  %v8755_v52 = vcombine.high %v4331_v46, %v4335_v47 }
 0x42d   :  { %7685 = vmatprep.subr.bf16.mxu1 %v8701_v50  ;;  %v4336_v49 = vld [vmem:[#allocation8 + $0xbf8] sm:$0xff]  ;;  %v8746_v50 = vcombine.low %v4323_v41, %v4327_v42  ;;  %v4379_v42 = vld [vmem:[#allocation8 + $0xd50] sm:$0xff] }
 0x42e   :  { %v8757_v54 = vcombine.high %v4332_v48, %v4336_v49  ;;  %v8756_v2 = vcombine.low %v4332_v48, %v4336_v49  ;;  %v9433_v48 = vld [vmem:[#allocation8 + $0xd90] sm:$0xff] }
 0x42f   :  { %7514 = vmatpush1.bf16.msra.mxu0 %v8698_v59  ;;  %v4343_v59 = vld [vmem:[#allocation8 + $0xc30] sm:$0xff] }
 0x430   :  { %7686 = vmatpush1.bf16.msra.mxu1 %v8700_v60  ;;  %7515 = vmatprep.subr.bf16.mxu0 %v8707_v61  ;;  %v4340_v60 = vld [vmem:[#allocation8 + $0xc18] sm:$0xff]  ;;  %v8763_v5 = vcombine.high %v4339_v37, %v4343_v59  ;;  %v9435_v49 = vld [vmem:[#allocation8 + $0xdb0] sm:$0xff] }
 0x431   :  { %7687 = vmatprep.subr.bf16.mxu1 %v8709_v0  ;;  %v4344_v61 = vld [vmem:[#allocation8 + $0xc38] sm:$0xff]  ;;  %v8754_v0 = vcombine.low %v4331_v46, %v4335_v47  ;;  %v8803_v46 = vcombine.high %v4379_v42, %v4383_v63 }
 0x432   :  { %v8765_v3 = vcombine.high %v4340_v60, %v4344_v61  ;;  %v8764_v13 = vcombine.low %v4340_v60, %v4344_v61  ;;  %v8802_v61 = vcombine.low %v4379_v42, %v4383_v63 }
 0x433   :  { %7516 = vmatpush1.bf16.msra.mxu0 %v8706_v8  ;;  %v4351_v8 = vld [vmem:[#allocation8 + $0xc70] sm:$0xff] }
 0x434   :  { %7688 = vmatpush1.bf16.msra.mxu1 %v8708_v16  ;;  %7517 = vmatprep.subr.bf16.mxu0 %v8715_v10  ;;  %v8762_v16 = vcombine.low %v4339_v37, %v4343_v59  ;;  %v4348_v10 = vld [vmem:[#allocation8 + $0xc58] sm:$0xff]  ;;  %v8771_v56 = vcombine.high %v4347_v4, %v4351_v8 }
 0x435   :  { %7689 = vmatprep.subr.bf16.mxu1 %v8717_v12  ;;  %v4352_v12 = vld [vmem:[#allocation8 + $0xc78] sm:$0xff] }
 0x436   :  { %v8772_v28 = vcombine.low %v4348_v10, %v4352_v12  ;;  %v4392_v37 = vld [vmem:[#allocation8 + $0xdb8] sm:$0xff] }
 0x437   :  { %7518 = vmatpush1.bf16.msra.mxu0 %v8714_v18  ;;  %v8773_v18 = vcombine.high %v4348_v10, %v4352_v12 }
 0x438   :  { %7690 = vmatpush1.bf16.msra.mxu1 %v8716_v19  ;;  %7519 = vmatprep.subr.bf16.mxu0 %v8723_v24  ;;  %v4356_v19 = vld [vmem:[#allocation8 + $0xc98] sm:$0xff] }
 0x439   :  { %7691 = vmatprep.subr.bf16.mxu1 %v8725_v26  ;;  %v4360_v24 = vld [vmem:[#allocation8 + $0xcb8] sm:$0xff]  ;;  %v8770_v26 = vcombine.low %v4347_v4, %v4351_v8 }
 0x43a   :  { %v8781_v30 = vcombine.high %v4356_v19, %v4360_v24 }
 0x43b   :  { %7520 = vmatpush1.bf16.msra.mxu0 %v8722_v58  ;;  %v4367_v58 = vld [vmem:[#allocation8 + $0xcf0] sm:$0xff] }
 0x43c   :  { %7692 = vmatpush1.bf16.msra.mxu1 %v8724_v32  ;;  %7521 = vmatprep.subr.bf16.mxu0 %v8731_v33  ;;  %v4364_v32 = vld [vmem:[#allocation8 + $0xcd8] sm:$0xff]  ;;  %v8787_v15 = vcombine.high %v4363_v31, %v4367_v58 }
 0x43d   :  { %7693 = vmatprep.subr.bf16.mxu1 %v8733_v34  ;;  %v4368_v33 = vld [vmem:[#allocation8 + $0xcf8] sm:$0xff]  ;;  %v8778_v34 = vcombine.low %v4355_v14, %v4359_v17 }
 0x43e   :  { %v8789_v35 = vcombine.high %v4364_v32, %v4368_v33  ;;  %v4400_v14 = vld [vmem:[#allocation8 + $0xdf8] sm:$0xff] }
 0x43f   :  { %7522 = vmatpush1.bf16.msra.mxu0 %v8730_v57  ;;  %v4372_v57 = vld [vmem:[#allocation8 + $0xd18] sm:$0xff] }
 0x440   :  { %7694 = vmatpush1.bf16.msra.mxu1 %v8732_v62  ;;  %7523 = vmatprep.subr.bf16.mxu0 %v8739_v39  ;;  %v4376_v62 = vld [vmem:[#allocation8 + $0xd38] sm:$0xff]  ;;  %v8788_v39 = vcombine.low %v4364_v32, %v4368_v33 }
 0x441   :  { %7695 = vmatprep.subr.bf16.mxu1 %v8741_v40  ;;  %v8795_v40 = vcombine.high %v4371_v36, %v4375_v38  ;;  %v8797_v41 = vcombine.high %v4372_v57, %v4376_v62 }
 0x443   :  { %7524 = vmatpush1.bf16.msra.mxu0 %v8738_v11  ;;  %v4384_v11 = vld [vmem:[#allocation8 + $0xd78] sm:$0xff] }
 0x444   :  { %7696 = vmatpush1.bf16.msra.mxu1 %v8740_v45  ;;  %7525 = vmatprep.subr.bf16.mxu0 %v8747_v27  ;;  %v8794_v45 = vcombine.low %v4371_v36, %v4375_v38  ;;  %v9431_v27 = vld [vmem:[#allocation10] sm:$0xff]  ;;  %v8805_v47 = vcombine.high %v4380_v44, %v4384_v11 }
 0x445   :  { %7697 = vmatprep.subr.bf16.mxu1 %v8749_v25  ;;  %v8796_v25 = vcombine.low %v4372_v57, %v4376_v62  ;;  %v4474_v59 = vrot.slane %v9431_v27, %v9342_v7  ;;  %v4482_v60 = vrot.slane %v9431_v27, %v9345_v9  ;;  %v4407_v62 = vld [vmem:[#allocation8 + $0xe30] sm:$0xff] }
 0x447   :  { %7526 = vmatpush1.bf16.msra.mxu0 %v8746_v50  ;;  %v4470_v50 = vrot.slane %v9431_v27, %v9336_v1 }
 0x448   :  { %7698 = vmatpush1.bf16.msra.mxu1 %v8748_v51  ;;  %7527 = vmatprep.subr.bf16.mxu0 %v8755_v52  ;;  %v9439_v51 = vld [vmem:[#allocation11] sm:$0xff]  ;;  %v4478_v52 = vrot.slane %v9431_v27, %v9339_v6 }
 0x449   :  { %7699 = vmatprep.subr.bf16.mxu1 %v8757_v54  ;;  %v4388_v54 = vld [vmem:[#allocation8 + $0xd98] sm:$0xff]  ;;  %v7776_v8 = vrot.slane %v9439_v51, %v9336_v1  ;;  %v7784_v10 = vrot.slane %v9439_v51, %v9339_v6  ;;  %v7780_v12 = vrot.slane %v9439_v51, %v9342_v7  ;;  %v8810_v1 = vcombine.low %v9433_v48, %v9435_v49 }
 0x44a   :  { %v8812_v7 = vcombine.low %v4388_v54, %v4392_v37 }
 0x44b   :  { %7528 = vmatpush1.bf16.msra.mxu0 %v8754_v0  ;;  %v8804_v0 = vcombine.low %v4380_v44, %v4384_v11 }
 0x44c   :  { %7700 = vmatpush1.bf16.msra.mxu1 %v8756_v2  ;;  %7540 = vmatprep.subr.bf16.mxu0 %v8763_v5  ;;  %v8811_v2 = vcombine.high %v9433_v48, %v9435_v49  ;;  %v9449_v5 = vld [vmem:[#allocation8 + $0xdd0] sm:$0xff] }
 0x44d   :  { %7712 = vmatprep.subr.bf16.mxu1 %v8765_v3  ;;  %v9451_v3 = vld [vmem:[#allocation8 + $0xdf0] sm:$0xff] }
 0x44e   :  { %7530 = vmatmul.mubr.bf16.vlgmr.msra.gmra.mrb[12].mxu0 %v9397_v43  ;;  %v8818_v42 = vcombine.low %v9449_v5, %v9451_v3 }
 0x44f   :  { %7702 = vmatmul.mubr.bf16.vlgmr.msra.gmra.mrb[12].mxu1 %v9397_v43  ;;  %7541 = vmatpush1.bf16.msra.mxu0 %v8762_v16  ;;  %v8780_v43 = vcombine.low %v4356_v19, %v4360_v24 }
 0x450   :  { %7572 = vmatprep.mubr.bf16.mxu0 %v9407_v53  ;;  %7713 = vmatpush1.bf16.msra.mxu1 %v8764_v13  ;;  %v8813_v13 = vcombine.high %v4388_v54, %v4392_v37  ;;  %v4411_v37 = vld [vmem:[#allocation8 + $0xe50] sm:$0xff] }
 0x451   :  { %7744 = vmatprep.mubr.bf16.mxu1 %v9407_v53  ;;  %7542 = vmatprep.subr.bf16.mxu0 %v8771_v56  ;;  %v8786_v53 = vcombine.low %v4363_v31, %v4367_v58  ;;  %v4396_v56 = vld [vmem:[#allocation8 + $0xdd8] sm:$0xff]  ;;  %v8819_v31 = vcombine.high %v9449_v5, %v9451_v3 }
 0x452   :  { %7714 = vmatprep.subr.bf16.mxu1 %v8773_v18  ;;  %v8820_v63 = vcombine.low %v4396_v56, %v4400_v14 }
 0x453   :  { %7543 = vmatpush1.bf16.msra.mxu0 %v8770_v26  ;;  %v7788_v26 = vrot.slane %v9439_v51, %v9345_v9  ;;  %v8821_v9 = vcombine.high %v4396_v56, %v4400_v14 }
 0x454   :  { %7715 = vmatpush1.bf16.msra.mxu1 %v8772_v28  ;;  %7544 = vmatprep.subr.bf16.mxu0 %v8779_v29 }
 0x455   :  { %7716 = vmatprep.subr.bf16.mxu1 %v8781_v30 }
 0x457   :  { %7545 = vmatpush1.bf16.msra.mxu0 %v8778_v34 }
 0x458   :  { %7717 = vmatpush1.bf16.msra.mxu1 %v8780_v43  ;;  %7546 = vmatprep.subr.bf16.mxu0 %v8787_v15  ;;  %v4403_v15 = vld [vmem:[#allocation8 + $0xe10] sm:$0xff] }
 0x459   :  { %7718 = vmatprep.subr.bf16.mxu1 %v8789_v35 }
 0x45b   :  { %7547 = vmatpush1.bf16.msra.mxu0 %v8786_v53  ;;  %v4404_v53 = vld [vmem:[#allocation8 + $0xe18] sm:$0xff] }
 0x45c   :  { %7719 = vmatpush1.bf16.msra.mxu1 %v8788_v39  ;;  %7548 = vmatprep.subr.bf16.mxu0 %v8795_v40  ;;  %v4408_v39 = vld [vmem:[#allocation8 + $0xe38] sm:$0xff] }
 0x45d   :  { %7720 = vmatprep.subr.bf16.mxu1 %v8797_v41  ;;  %v8829_v48 = vcombine.high %v4404_v53, %v4408_v39 }
 0x45f   :  { %7549 = vmatpush1.bf16.msra.mxu0 %v8794_v45 }
 0x460   :  { %7721 = vmatpush1.bf16.msra.mxu1 %v8796_v25  ;;  %7550 = vmatprep.subr.bf16.mxu0 %v8803_v46 }
 0x461   :  { %v7230_v4 = vpop.f32.mrb[8].mxu0  ;;  %v7402_v16 = vpop.f32.mrb[8].mxu1  ;;  %7722 = vmatprep.subr.bf16.mxu1 %v8805_v47  ;;  %v8827_v47 = vcombine.high %v4403_v15, %v4407_v62 }
 0x462   :  { %v8902_v17 = vadd.f32 %v7230_v4, %v4470_v50  ;;  %v8906_v18 = vadd.f32 %v7402_v16, %v4478_v52  ;;  %v7232_v19 = vpop.f32.mrb[9].mxu0  ;;  %v7404_v24 = vpop.f32.mrb[9].mxu1 }
 0x463   :  { %v8903_v28 = vadd.f32 %v7232_v19, %v4474_v59  ;;  %v8907_v29 = vadd.f32 %v7404_v24, %v4482_v60  ;;  %v7234_v6 = vpop.f32.mrb[10].mxu0  ;;  %v7406_v30 = vpop.f32.mrb[10].mxu1  ;;  %7551 = vmatpush1.bf16.msra.mxu0 %v8802_v61  ;;  %v4412_v61 = vld [vmem:[#allocation8 + $0xe58] sm:$0xff] }
 0x464   :  { %v7755_v58 = vmax.f32 %v8902_v17, 0.0  ;;  %v8904_v32 = vadd.f32 %v7234_v6, %v4470_v50  ;;  %v8908_v33 = vadd.f32 %v7406_v30, %v4478_v52  ;;  %7723 = vmatpush1.bf16.msra.mxu1 %v8804_v0  ;;  %v7236_v34 = vpop.f32.mrb[11].mxu0  ;;  %v7408_v43 = vpop.f32.mrb[11].mxu1  ;;  %7552 = vmatprep.subr.bf16.mxu0 %v8811_v2  ;;  %v7757_v35 = vmax.f32 %v8906_v18, 0.0  ;;  %v4416_v0 = vld [vmem:[#allocation8 + $0xe78] sm:$0xff]  ;;  %v4419_v17 = vld [vmem:[#allocation8 + $0xe90] sm:$0xff] }
 0x465   :  { %v7756_v36 = vmax.f32 %v8903_v28, 0.0  ;;  %v8905_v38 = vadd.f32 %v7236_v34, %v4474_v59  ;;  %v8909_v57 = vadd.f32 %v7408_v43, %v4482_v60  ;;  %7724 = vmatprep.subr.bf16.mxu1 %v8813_v13  ;;  %v7758_v11 = vmax.f32 %v8907_v29, 0.0  ;;  %v4415_v59 = vld [vmem:[#allocation8 + $0xe70] sm:$0xff]  ;;  %v4420_v19 = vld [vmem:[#allocation8 + $0xe98] sm:$0xff] }
 0x466   :  { %v7813_v40 = vmul.f32 %v7776_v8, %v7755_v58  ;;  %v7763_v41 = vmax.f32 %v8904_v32, 0.0  ;;  %v7765_v45 = vmax.f32 %v8908_v33, 0.0  ;;  %v7815_v49 = vmul.f32 %v7784_v10, %v7757_v35  ;;  %v4423_v18 = vld [vmem:[#allocation8 + $0xeb0] sm:$0xff]  ;;  %v4424_v24 = vld [vmem:[#allocation8 + $0xeb8] sm:$0xff] }
 0x467   :  { %v7814_v44 = vmul.f32 %v7780_v12, %v7756_v36  ;;  %v7764_v25 = vmax.f32 %v8905_v38, 0.0  ;;  %7553 = vmatpush1.bf16.msra.mxu0 %v8810_v1  ;;  %v7766_v54 = vmax.f32 %v8909_v57, 0.0  ;;  %v8826_v60 = vcombine.low %v4403_v15, %v4407_v62  ;;  %v4427_v30 = vld [vmem:[#allocation8 + $0xed0] sm:$0xff]  ;;  %v4436_v15 = vld [vmem:[#allocation8 + $0xf18] sm:$0xff] }
 0x468   :  { %v7821_v46 = vmul.f32 %v7776_v8, %v7763_v41  ;;  %7725 = vmatpush1.bf16.msra.mxu1 %v8812_v7  ;;  %7554 = vmatprep.subr.bf16.mxu0 %v8819_v31  ;;  %v7816_v2 = vmul.f32 %v7788_v26, %v7758_v11  ;;  %v7823_v3 = vmul.f32 %v7784_v10, %v7765_v45  ;;  %v4431_v7 = vld [vmem:[#allocation8 + $0xef0] sm:$0xff]  ;;  %v4432_v31 = vld [vmem:[#allocation8 + $0xef8] sm:$0xff] }
 0x469   :  { %v7829_v50 = vadd.f32 %v7814_v44, %v7813_v40  ;;  %v7822_v52 = vmul.f32 %v7780_v12, %v7764_v25  ;;  %7726 = vmatprep.subr.bf16.mxu1 %v8821_v9  ;;  %v8828_v8 = vcombine.low %v4404_v53, %v4408_v39  ;;  %v8835_v16 = vcombine.high %v4411_v37, %v4415_v59  ;;  %v4435_v43 = vld [vmem:[#allocation8 + $0xf10] sm:$0xff]  ;;  %v4440_v35 = vld [vmem:[#allocation8 + $0xf38] sm:$0xff] }
 0x46a   :  { %v7824_v56 = vmul.f32 %v7788_v26, %v7766_v54  ;;  %v8837_v14 = vcombine.high %v4412_v61, %v4416_v0  ;;  %v8834_v10 = vcombine.low %v4411_v37, %v4415_v59  ;;  %v8836_v28 = vcombine.low %v4412_v61, %v4416_v0  ;;  %v4428_v26 = vld [vmem:[#allocation8 + $0xed8] sm:$0xff]  ;;  %v4439_v9 = vld [vmem:[#allocation8 + $0xf30] sm:$0xff] }
 0x46b   :  { %v7830_v5 = vadd.f32 %v7829_v50, %v7815_v49  ;;  %v7838_v4 = vadd.f32 %v7822_v52, %v7821_v46  ;;  %7555 = vmatpush1.bf16.msra.mxu0 %v8818_v42  ;;  %v8843_v29 = vcombine.high %v4419_v17, %v4423_v18  ;;  %v8845_v6 = vcombine.high %v4420_v19, %v4424_v24  ;;  %v4443_v53 = vld [vmem:[#allocation8 + $0xf50] sm:$0xff]  ;;  %v4444_v40 = vld [vmem:[#allocation8 + $0xf58] sm:$0xff] }
 0x46c   :  { %7727 = vmatpush1.bf16.msra.mxu1 %v8820_v63  ;;  %7556 = vmatprep.subr.bf16.mxu0 %v8827_v47  ;;  %v8842_v58 = vcombine.low %v4419_v17, %v4423_v18  ;;  %v8844_v32 = vcombine.low %v4420_v19, %v4424_v24  ;;  %v8851_v33 = vcombine.high %v4427_v30, %v4431_v7  ;;  %v4447_v39 = vld [vmem:[#allocation8 + $0xf70] sm:$0xff]  ;;  %v4448_v41 = vld [vmem:[#allocation8 + $0xf78] sm:$0xff] }
 0x46d   :  { %v9467_v13 = vadd.f32 %v7830_v5, %v7816_v2  ;;  %v7839_v12 = vadd.f32 %v7838_v4, %v7823_v3  ;;  %7728 = vmatprep.subr.bf16.mxu1 %v8829_v48  ;;  %v8853_v34 = vcombine.high %v4428_v26, %v4432_v31  ;;  %v8850_v36 = vcombine.low %v4427_v30, %v4431_v7  ;;  %v4451_v45 = vld [vmem:[#allocation8 + $0xf90] sm:$0xff]  ;;  %v4452_v46 = vld [vmem:[#allocation8 + $0xf98] sm:$0xff] }
 0x46e   :  { %v8852_v38 = vcombine.low %v4428_v26, %v4432_v31  ;;  %v8859_v57 = vcombine.high %v4435_v43, %v4439_v9  ;;  %v8861_v62 = vcombine.high %v4436_v15, %v4440_v35  ;;  %v8858_v42 = vcombine.low %v4435_v43, %v4439_v9  ;;  %v4455_v25 = vld [vmem:[#allocation8 + $0xfb0] sm:$0xff]  ;;  %v4456_v47 = vld [vmem:[#allocation8 + $0xfb8] sm:$0xff] }
 0x46f   :  { %v9469_v1 = vadd.f32 %v7839_v12, %v7824_v56  ;;  %7557 = vmatpush1.bf16.msra.mxu0 %v8826_v60  ;;  %v8860_v63 = vcombine.low %v4436_v15, %v4440_v35  ;;  %v8867_v44 = vcombine.high %v4443_v53, %v4447_v39  ;;  %v8869_v11 = vcombine.high %v4444_v40, %v4448_v41  ;;  %v4459_v54 = vld [vmem:[#allocation8 + $0xfd0] sm:$0xff]  ;;  %v4460_v59 = vld [vmem:[#allocation8 + $0xfd8] sm:$0xff] }
 0x470   :  { %7729 = vmatpush1.bf16.msra.mxu1 %v8828_v8  ;;  %7558 = vmatprep.subr.bf16.mxu0 %v8835_v16  ;;  %v8866_v48 = vcombine.low %v4443_v53, %v4447_v39  ;;  %v8868_v49 = vcombine.low %v4444_v40, %v4448_v41  ;;  %v8875_v50 = vcombine.high %v4451_v45, %v4455_v25  ;;  %v4463_v37 = vld [vmem:[#allocation8 + $0xff0] sm:$0xff]  ;;  %v4464_v60 = vld [vmem:[#allocation8 + $0xff8] sm:$0xff] }
 0x471   :  { %7730 = vmatprep.subr.bf16.mxu1 %v8837_v14  ;;  %v8877_v52 = vcombine.high %v4452_v46, %v4456_v47  ;;  %v8874_v61 = vcombine.low %v4451_v45, %v4455_v25  ;;  %v8876_v0 = vcombine.low %v4452_v46, %v4456_v47  ;;  %v8883_v2 = vcombine.high %v4459_v54, %v4463_v37 }
 0x472   :  { %v8885_v5 = vcombine.high %v4460_v59, %v4464_v60  ;;  %v8882_v3 = vcombine.low %v4459_v54, %v4463_v37  ;;  %v8884_v4 = vcombine.low %v4460_v59, %v4464_v60  ;;  %v4486_v8 = vrot.slane %v9431_v27, %v9382_v20 }
 0x473   :  { %7559 = vmatpush1.bf16.msra.mxu0 %v8834_v10  ;;  %v4494_v16 = vrot.slane %v9431_v27, %v9385_v21  ;;  %v4490_v56 = vrot.slane %v9431_v27, %v9388_v22  ;;  %v4498_v12 = vrot.slane %v9431_v27, %v9391_v23  ;;  %v7792_v18 = vrot.slane %v9439_v51, %v9382_v20 }
 0x474   :  { %7731 = vmatpush1.bf16.msra.mxu1 %v8836_v28  ;;  %7560 = vmatprep.subr.bf16.mxu0 %v8843_v29  ;;  %v7796_v28 = vrot.slane %v9439_v51, %v9388_v22  ;;  %v7800_v27 = vrot.slane %v9439_v51, %v9385_v21 }
 0x475   :  { %7732 = vmatprep.subr.bf16.mxu1 %v8845_v6 }
 0x477   :  { %7561 = vmatpush1.bf16.msra.mxu0 %v8842_v58 }
 0x478   :  { %7733 = vmatpush1.bf16.msra.mxu1 %v8844_v32  ;;  %7562 = vmatprep.subr.bf16.mxu0 %v8851_v33 }
 0x479   :  { %7734 = vmatprep.subr.bf16.mxu1 %v8853_v34 }
 0x47b   :  { %7563 = vmatpush1.bf16.msra.mxu0 %v8850_v36 }
 0x47c   :  { %7735 = vmatpush1.bf16.msra.mxu1 %v8852_v38  ;;  %7564 = vmatprep.subr.bf16.mxu0 %v8859_v57  ;;  %v7804_v38 = vrot.slane %v9439_v51, %v9391_v23  ;;  %v7848_v51 = vstv %s9506_s6 }
 0x47d   :  { %7736 = vmatprep.subr.bf16.mxu1 %v8861_v62 }
 0x47f   :  { %7565 = vmatpush1.bf16.msra.mxu0 %v8858_v42 }
 0x480   :  { %7737 = vmatpush1.bf16.msra.mxu1 %v8860_v63  ;;  %7566 = vmatprep.subr.bf16.mxu0 %v8867_v44 }
 0x481   :  { %7738 = vmatprep.subr.bf16.mxu1 %v8869_v11 }
 0x483   :  { %7567 = vmatpush1.bf16.msra.mxu0 %v8866_v48 }
 0x484   :  { %7739 = vmatpush1.bf16.msra.mxu1 %v8868_v49  ;;  %7568 = vmatprep.subr.bf16.mxu0 %v8875_v50 }
 0x485   :  { %7740 = vmatprep.subr.bf16.mxu1 %v8877_v52 }
 0x487   :  { %7569 = vmatpush1.bf16.msra.mxu0 %v8874_v61 }
 0x488   :  { %7741 = vmatpush1.bf16.msra.mxu1 %v8876_v0  ;;  %7570 = vmatprep.subr.bf16.mxu0 %v8883_v2 }
 0x489   :  { %7742 = vmatprep.subr.bf16.mxu1 %v8885_v5 }
 0x48b   :  { %7571 = vmatpush1.bf16.msra.mxu0 %v8882_v3 }
 0x48c   :  { %7743 = vmatpush1.bf16.msra.mxu1 %v8884_v4 }
 0x48e   :  { %7573 = vmatmul.mubr.bf16.vlgmr.msra.gmra.mrb[12].mxu0 %v9399_v55 }
 0x48f   :  { %7745 = vmatmul.mubr.bf16.vlgmr.msra.gmra.mrb[12].mxu1 %v9399_v55 }
 0x561   :  { %v7574_v14 = vpop.f32.mrb[12].mxu0 }
 0x562   :  { %v8910_v17 = vadd.f32 %v7574_v14, %v4486_v8  ;;  %v7746_v19 = vpop.f32.mrb[12].mxu1  ;;  %v7576_v24 = vpop.f32.mrb[13].mxu0 }
 0x563   :  { %v8914_v55 = vadd.f32 %v7746_v19, %v4494_v16  ;;  %v8911_v10 = vadd.f32 %v7576_v24, %v4490_v56  ;;  %v7748_v29 = vpop.f32.mrb[13].mxu1  ;;  %v7578_v6 = vpop.f32.mrb[14].mxu0 }
 0x564   :  { %v7759_v30 = vmax.f32 %v8910_v17, 0.0  ;;  %v8915_v7 = vadd.f32 %v7748_v29, %v4498_v12  ;;  %v8912_v26 = vadd.f32 %v7578_v6, %v4486_v8  ;;  %v7750_v31 = vpop.f32.mrb[14].mxu1  ;;  %v7580_v58 = vpop.f32.mrb[15].mxu0 }
 0x565   :  { %v7760_v32 = vmax.f32 %v8911_v10, 0.0  ;;  %v8916_v33 = vadd.f32 %v7750_v31, %v4494_v16  ;;  %v8913_v20 = vadd.f32 %v7580_v58, %v4490_v56  ;;  %v7752_v34 = vpop.f32.mrb[15].mxu1  ;;  %v7761_v9 = vmax.f32 %v8914_v55, 0.0 }
 0x566   :  { %v7817_v43 = vmul.f32 %v7792_v18, %v7759_v30  ;;  %v7767_v15 = vmax.f32 %v8912_v26, 0.0  ;;  %v8917_v35 = vadd.f32 %v7752_v34, %v4498_v12  ;;  %v7762_v62 = vmax.f32 %v8915_v7, 0.0 }
 0x567   :  { %v7818_v36 = vmul.f32 %v7796_v28, %v7760_v32  ;;  %v7768_v22 = vmax.f32 %v8913_v20, 0.0  ;;  %v7769_v39 = vmax.f32 %v8916_v33, 0.0  ;;  %v7819_v21 = vmul.f32 %v7800_v27, %v7761_v9 }
 0x568   :  { %v7832_v57 = vadd.f32 %v9467_v13, %v7817_v43  ;;  %v7825_v53 = vmul.f32 %v7792_v18, %v7767_v15  ;;  %v7770_v42 = vmax.f32 %v8917_v35, 0.0  ;;  %v7820_v45 = vmul.f32 %v7804_v38, %v7762_v62 }
 0x569   :  { %v7826_v40 = vmul.f32 %v7796_v28, %v7768_v22  ;;  %v7827_v44 = vmul.f32 %v7800_v27, %v7769_v39 }
 0x56a   :  { %v7841_v41 = vadd.f32 %v9469_v1, %v7825_v53  ;;  %v7833_v63 = vadd.f32 %v7832_v57, %v7818_v36  ;;  %v7828_v46 = vmul.f32 %v7804_v38, %v7770_v42 }
 0x56c   :  { %v7842_v11 = vadd.f32 %v7841_v41, %v7826_v40  ;;  %v7834_v25 = vadd.f32 %v7833_v63, %v7819_v21 }
 0x56e   :  { %v7835_v47 = vadd.f32 %v7834_v25, %v7820_v45  ;;  %v7843_v48 = vadd.f32 %v7842_v11, %v7827_v44 }
 0x570   :  { %7836 = vadd.xlane.f32.xlu0 %v7835_v47  ;;  %v7844_v23 = vadd.f32 %v7843_v48, %v7828_v46 }
 0x574   :  { %7845 = vadd.xlane.f32.xlu0 %v7844_v23 }
 0x5fd   :  { %v7837_v13 = vpop.xlane.xlu0 %7836 }
 0x5fe   :  { %v7849_v49 = vadd.f32 %v7848_v51, %v7837_v13 }
 0x600   :  { %7852 = vst.msk [vmem:[%s9507_s7] sm:$0xff] %vm7851_vm0, %v7849_v49 }
 0x601   :  { %v7846_v1 = vpop.xlane.xlu0 %7845 }
 0x602   :  { %v7850_v50 = vadd.f32 %v7848_v51, %v7846_v1 }
 0x604   :  { %7853 = vst.msk [vmem:[%s9507_s7 + $0x8] sm:$0xff] %vm7851_vm0, %v7850_v50 }
 0x605   :  { %7858 = vsyncpa [#allocation4], 1 }
 0x606   :  { %7859 = vsyncpa [#allocation6], 1 }
 0x607   :  { %7860 = vsyncpa [#allocation9], 1 }
 0x608   :  { %7861 = vsyncpa [#allocation12], 1 }

</bundles_post_ra>
